<compile_context>
chip_gen: v7x
topology: tpu7x:2x2x1
jax: 0.10.0
libtpu: 0.0.40
codegen_flags: <defaults>
</compile_context>

<pallas_src>
import functools

import jax
import jax.numpy as jnp
from jax.experimental import pallas as pl
from jax.experimental.pallas import tpu as pltpu

EMB_LEN = 4
H1, H2, H3 = 1024, 512, 256
BN_EPS = 1e-5
TB = 256  # batch tile: multiple of MXU M; ~few MB of activations in VMEM


def nfm_mlp_kernel(pool_ref, w1_ref, b1_ref, w2_ref, b2_ref,
                   w3_ref, b3_ref, w4_ref, out_ref):
    # pool_ref: [TB, E] f32, BatchNorm already folded into (w1, b1).
    h = pool_ref[...]
    # Layer 1: tiny K=E matmul, keep f32.
    h = jnp.maximum(
        jnp.dot(h, w1_ref[...], preferred_element_type=jnp.float32)
        + b1_ref[...], 0.0)
    # Layers 2/3 dominate FLOPs and weight traffic -> bf16 inputs, f32 acc.
    h = jnp.maximum(
        jnp.dot(h.astype(jnp.bfloat16), w2_ref[...],
                preferred_element_type=jnp.float32) + b2_ref[...], 0.0)
    h = jnp.maximum(
        jnp.dot(h.astype(jnp.bfloat16), w3_ref[...],
                preferred_element_type=jnp.float32) + b3_ref[...], 0.0)
    # Layer 4 (N=1): single cheap MXU pass; b4/deg1/sigmoid live in wrapper.
    out_ref[...] = jnp.dot(h, w4_ref[...], preferred_element_type=jnp.float32)


def nfm_pallas(pooled, w1, b1, w2, b2, w3, b3, w4):
    B, E = pooled.shape
    nb = pl.cdiv(B, TB)
    Bp = nb * TB
    if Bp != B:
        pooled = jnp.pad(pooled, ((0, Bp - B), (0, 0)))

    batch_map = lambda i: (i, 0)
    const_map = lambda i: (0, 0)   # weights: resident across grid steps

    out = pl.pallas_call(
        nfm_mlp_kernel,
        out_shape=jax.ShapeDtypeStruct((Bp, 1), jnp.float32),
        grid=(nb,),
        in_specs=[
            pl.BlockSpec((TB, E), batch_map),
            pl.BlockSpec(w1.shape, const_map), pl.BlockSpec(b1.shape, const_map),
            pl.BlockSpec(w2.shape, const_map), pl.BlockSpec(b2.shape, const_map),
            pl.BlockSpec(w3.shape, const_map), pl.BlockSpec(b3.shape, const_map),
            pl.BlockSpec(w4.shape, const_map),
        ],
        out_specs=pl.BlockSpec((TB, 1), batch_map),
        compiler_params=pltpu.CompilerParams(
            dimension_semantics=("parallel",),        # v7x: 2 TCs share batch
            vmem_limit_bytes=32 * 1024 * 1024,        # v5e default (16MiB) bump
        ),
    )(pooled, w1, b1, w2, b2, w3, b3, w4)
    return out[:B]


def init_params(key, n_num, vocab_sizes, emb_len=EMB_LEN):
    ks = list(jax.random.split(key, 16 + 2 * len(vocab_sizes)))
    ki = iter(ks)

    def unif(k, shape, bound):
        return jax.random.uniform(k, shape, jnp.float32, -bound, bound)

    params = {}
    # degree-1 numeric linear: Linear(n_num, 1)
    bnd = 1.0 / jnp.sqrt(n_num)
    params["w_num"] = unif(next(ki), (n_num, 1), bnd)
    params["b_num"] = unif(next(ki), (1,), bnd)
    # degree-1 categorical embeddings (vocab -> 1) and degree-2 (vocab -> E)
    params["emb1"] = [jax.random.normal(next(ki), (v, 1), jnp.float32)
                      for v in vocab_sizes]
    params["emb2"] = [jax.random.normal(next(ki), (v, emb_len), jnp.float32)
                      for v in vocab_sizes]
    # MLP weights stored [in, out] (x @ W == PyTorch x @ W.T layout)
    for name, (fin, fout) in {"1": (emb_len, H1), "2": (H1, H2),
                              "3": (H2, H3), "4": (H3, 1)}.items():
        bnd = 1.0 / jnp.sqrt(fin)
        params["w" + name] = unif(next(ki), (fin, fout), bnd)
        params["b" + name] = unif(next(ki), (1, fout), bnd)
    # BatchNorm1d defaults: gamma=1, beta=0, running_mean=0, running_var=1
    gamma = jnp.ones((emb_len,), jnp.float32)
    beta = jnp.zeros((emb_len,), jnp.float32)
    rmean = jnp.zeros((emb_len,), jnp.float32)
    rvar = jnp.ones((emb_len,), jnp.float32)
    scale = gamma / jnp.sqrt(rvar + BN_EPS)
    params["bn_scale"] = scale.reshape(1, emb_len)
    params["bn_shift"] = (beta - rmean * scale).reshape(1, emb_len)
    return params


@functools.partial(jax.jit, static_argnums=(2,))
def nfm_forward(x, params, n_cat):
    cat_idx = x[:, :n_cat].astype(jnp.int32)
    num_x = x[:, n_cat:]
    B = x.shape[0]

    # --- degree-1 output (tiny: plain JAX glue) -> [B, 1] ---
    deg1 = num_x @ params["w_num"] + params["b_num"]
    for i in range(n_cat):
        deg1 = deg1 + params["emb1"][i][cat_idx[:, i]]

    # --- BInteraction pooling in the wrapper (fuses with gathers) -> [B, E] ---
    emb_sum = jnp.zeros((B, EMB_LEN), jnp.float32)
    emb_sq_sum = jnp.zeros((B, EMB_LEN), jnp.float32)
    for i in range(n_cat):
        e = params["emb2"][i][cat_idx[:, i]]
        emb_sum = emb_sum + e
        emb_sq_sum = emb_sq_sum + e * e
    pooled = 0.5 * (emb_sum * emb_sum - emb_sq_sum)

    # --- fold BatchNorm (eval) into layer 1 ---
    w1_eff = params["bn_scale"].reshape(-1, 1) * params["w1"]      # [E, H1]
    b1_eff = params["bn_shift"] @ params["w1"] + params["b1"]      # [1, H1]

    # --- MXU MLP in Pallas (bf16 for the dominant layer-2/3 weights) ---
    mlp_out = nfm_pallas(
        pooled.astype(jnp.float32),
        w1_eff, b1_eff,
        params["w2"].astype(jnp.bfloat16), params["b2"],
        params["w3"].astype(jnp.bfloat16), params["b3"],
        params["w4"])

    logit = mlp_out + params["b4"] + deg1                          # [B, 1]
    p = jax.nn.sigmoid(logit)
    one_minus_p = jax.nn.sigmoid(-logit)       # numerically stable 1 - p
    return jnp.concatenate([p, one_minus_p], axis=1)               # [B, 2]


if __name__ == "__main__":
    key = jax.random.PRNGKey(0)
    k_param, k_cat, k_num = jax.random.split(key, 3)

    B = 8
    vocab_sizes = (7, 5, 9, 4, 6, 8)          # 6 categorical fields
    n_cat = len(vocab_sizes)
    n_num = 5                                 # 5 numeric features

    params = init_params(k_param, n_num, vocab_sizes)

    # Build input x: categorical ids (stored as floats) followed by numerics.
    cat_cols = []
    cat_keys = jax.random.split(k_cat, n_cat)
    for i, v in enumerate(vocab_sizes):
        cat_cols.append(
            jax.random.randint(cat_keys[i], (B, 1), 0, v).astype(jnp.float32))
    num_cols = jax.random.normal(k_num, (B, n_num), jnp.float32)
    x = jnp.concatenate(cat_cols + [num_cols], axis=1)   # [B, n_cat + n_num]

    out = nfm_forward(x, params, n_cat)
    out = jax.block_until_ready(out)

    assert out.shape == (B, 2), out.shape
    assert bool(jnp.all(jnp.isfinite(out)))
    # rows of [p, 1-p] must sum to 1
    assert bool(jnp.allclose(jnp.sum(out, axis=1), 1.0, atol=1e-5))
    print("KERNEL_OK")
</pallas_src>

<mosaic_0001>
module attributes {stable_mosaic.version = 11 : i64} {
  func.func @nfm_mlp_kernel(%arg0: i32, %arg1: memref<256x4xf32, #tpu.memory_space<vmem>>, %arg2: memref<4x1024xf32, #tpu.memory_space<vmem>>, %arg3: memref<1x1024xf32, #tpu.memory_space<vmem>>, %arg4: memref<1024x512xbf16, #tpu.memory_space<vmem>>, %arg5: memref<1x512xf32, #tpu.memory_space<vmem>>, %arg6: memref<512x256xbf16, #tpu.memory_space<vmem>>, %arg7: memref<1x256xf32, #tpu.memory_space<vmem>>, %arg8: memref<256x1xf32, #tpu.memory_space<vmem>>, %arg9: memref<256x1xf32, #tpu.memory_space<vmem>>) attributes {dimension_semantics = [#tpu.dimension_semantics<parallel>], iteration_bounds = array<i64: 1>, scalar_prefetch = 0 : i64, scratch_operands = 0 : i64, tpu.core_type = #tpu.core_type<tc>, window_params = [{transform_indices = @transform_0, window_bounds = array<i64: 256, 4>}, {pipeline_mode = #tpu.pipeline_mode<synchronous>, transform_indices = @transform_1, window_bounds = array<i64: 4, 1024>}, {pipeline_mode = #tpu.pipeline_mode<synchronous>, transform_indices = @transform_2, window_bounds = array<i64: 1, 1024>}, {pipeline_mode = #tpu.pipeline_mode<synchronous>, transform_indices = @transform_3, window_bounds = array<i64: 1024, 512>}, {pipeline_mode = #tpu.pipeline_mode<synchronous>, transform_indices = @transform_4, window_bounds = array<i64: 1, 512>}, {pipeline_mode = #tpu.pipeline_mode<synchronous>, transform_indices = @transform_5, window_bounds = array<i64: 512, 256>}, {pipeline_mode = #tpu.pipeline_mode<synchronous>, transform_indices = @transform_6, window_bounds = array<i64: 1, 256>}, {pipeline_mode = #tpu.pipeline_mode<synchronous>, transform_indices = @transform_7, window_bounds = array<i64: 256, 1>}, {transform_indices = @transform_8, window_bounds = array<i64: 256, 1>}]} {
    %c0 = arith.constant 0 : index
    %c0_0 = arith.constant 0 : index
    %0 = vector.load %arg1[%c0, %c0_0] : memref<256x4xf32, #tpu.memory_space<vmem>>, vector<256x4xf32>
    %c0_1 = arith.constant 0 : index
    %c0_2 = arith.constant 0 : index
    %1 = vector.load %arg2[%c0_1, %c0_2] : memref<4x1024xf32, #tpu.memory_space<vmem>>, vector<4x1024xf32>
    %cst = arith.constant dense<0.000000e+00> : vector<256x1024xf32>
    %2 = tpu.matmul %0, %1, %cst {dimension_numbers = #tpu.dot_dimension_numbers<[1], [0], [0], [1], [0, 0, 1, 1], [], []>} : vector<256x4xf32>, vector<4x1024xf32>, vector<256x1024xf32> -> vector<256x1024xf32>
    %c0_3 = arith.constant 0 : index
    %c0_4 = arith.constant 0 : index
    %3 = vector.load %arg3[%c0_3, %c0_4] : memref<1x1024xf32, #tpu.memory_space<vmem>>, vector<1x1024xf32>
    %4 = vector.broadcast %3 : vector<1x1024xf32> to vector<256x1024xf32>
    %5 = arith.addf %2, %4 : vector<256x1024xf32>
    %cst_5 = arith.constant 0.000000e+00 : f32
    %6 = vector.broadcast %cst_5 : f32 to vector<256x1024xf32>
    %7 = arith.maximumf %5, %6 : vector<256x1024xf32>
    %8 = arith.truncf %7 : vector<256x1024xf32> to vector<256x1024xbf16>
    %c0_6 = arith.constant 0 : index
    %c0_7 = arith.constant 0 : index
    %9 = vector.load %arg4[%c0_6, %c0_7] : memref<1024x512xbf16, #tpu.memory_space<vmem>>, vector<1024x512xbf16>
    %cst_8 = arith.constant dense<0.000000e+00> : vector<256x512xf32>
    %10 = tpu.matmul %8, %9, %cst_8 {dimension_numbers = #tpu.dot_dimension_numbers<[1], [0], [0], [1], [0, 0, 1, 1], [], []>} : vector<256x1024xbf16>, vector<1024x512xbf16>, vector<256x512xf32> -> vector<256x512xf32>
    %c0_9 = arith.constant 0 : index
    %c0_10 = arith.constant 0 : index
    %11 = vector.load %arg5[%c0_9, %c0_10] : memref<1x512xf32, #tpu.memory_space<vmem>>, vector<1x512xf32>
    %12 = vector.broadcast %11 : vector<1x512xf32> to vector<256x512xf32>
    %13 = arith.addf %10, %12 : vector<256x512xf32>
    %cst_11 = arith.constant 0.000000e+00 : f32
    %14 = vector.broadcast %cst_11 : f32 to vector<256x512xf32>
    %15 = arith.maximumf %13, %14 : vector<256x512xf32>
    %16 = arith.truncf %15 : vector<256x512xf32> to vector<256x512xbf16>
    %c0_12 = arith.constant 0 : index
    %c0_13 = arith.constant 0 : index
    %17 = vector.load %arg6[%c0_12, %c0_13] : memref<512x256xbf16, #tpu.memory_space<vmem>>, vector<512x256xbf16>
    %cst_14 = arith.constant dense<0.000000e+00> : vector<256x256xf32>
    %18 = tpu.matmul %16, %17, %cst_14 {dimension_numbers = #tpu.dot_dimension_numbers<[1], [0], [0], [1], [0, 0, 1, 1], [], []>} : vector<256x512xbf16>, vector<512x256xbf16>, vector<256x256xf32> -> vector<256x256xf32>
    %c0_15 = arith.constant 0 : index
    %c0_16 = arith.constant 0 : index
    %19 = vector.load %arg7[%c0_15, %c0_16] : memref<1x256xf32, #tpu.memory_space<vmem>>, vector<1x256xf32>
    %20 = vector.broadcast %19 : vector<1x256xf32> to vector<256x256xf32>
    %21 = arith.addf %18, %20 : vector<256x256xf32>
    %cst_17 = arith.constant 0.000000e+00 : f32
    %22 = vector.broadcast %cst_17 : f32 to vector<256x256xf32>
    %23 = arith.maximumf %21, %22 : vector<256x256xf32>
    %c0_18 = arith.constant 0 : index
    %c0_19 = arith.constant 0 : index
    %24 = vector.load %arg8[%c0_18, %c0_19] : memref<256x1xf32, #tpu.memory_space<vmem>>, vector<256x1xf32>
    %cst_20 = arith.constant dense<0.000000e+00> : vector<256x1xf32>
    %25 = tpu.matmul %23, %24, %cst_20 {dimension_numbers = #tpu.dot_dimension_numbers<[1], [0], [0], [1], [0, 0, 1, 1], [], []>} : vector<256x256xf32>, vector<256x1xf32>, vector<256x1xf32> -> vector<256x1xf32>
    %c0_21 = arith.constant 0 : index
    %c0_22 = arith.constant 0 : index
    %26 = vector.load %arg9[%c0_21, %c0_22] : memref<256x1xf32, #tpu.memory_space<vmem>>, vector<256x1xf32>
    tpu.vector_store %arg9[%c0_21, %c0_22], %25 {strides = array<i32>} : memref<256x1xf32, #tpu.memory_space<vmem>>, vector<256x1xf32>,
    return
  }
  func.func @transform_0(%arg0: i32) -> (i32, i32) {
    %c0_i32 = arith.constant 0 : i32
    %c0_i32_0 = arith.constant 0 : i32
    return %arg0, %c0_i32 : i32, i32
  }
  func.func @transform_1(%arg0: i32) -> (i32, i32) {
    %c0_i32 = arith.constant 0 : i32
    %c0_i32_0 = arith.constant 0 : i32
    %c0_i32_1 = arith.constant 0 : i32
    return %c0_i32, %c0_i32_0 : i32, i32
  }
  func.func @transform_2(%arg0: i32) -> (i32, i32) {
    %c0_i32 = arith.constant 0 : i32
    %c0_i32_0 = arith.constant 0 : i32
    %c0_i32_1 = arith.constant 0 : i32
    return %c0_i32, %c0_i32_0 : i32, i32
  }
  func.func @transform_3(%arg0: i32) -> (i32, i32) {
    %c0_i32 = arith.constant 0 : i32
    %c0_i32_0 = arith.constant 0 : i32
    %c0_i32_1 = arith.constant 0 : i32
    return %c0_i32, %c0_i32_0 : i32, i32
  }
  func.func @transform_4(%arg0: i32) -> (i32, i32) {
    %c0_i32 = arith.constant 0 : i32
    %c0_i32_0 = arith.constant 0 : i32
    %c0_i32_1 = arith.constant 0 : i32
    return %c0_i32, %c0_i32_0 : i32, i32
  }
  func.func @transform_5(%arg0: i32) -> (i32, i32) {
    %c0_i32 = arith.constant 0 : i32
    %c0_i32_0 = arith.constant 0 : i32
    %c0_i32_1 = arith.constant 0 : i32
    return %c0_i32, %c0_i32_0 : i32, i32
  }
  func.func @transform_6(%arg0: i32) -> (i32, i32) {
    %c0_i32 = arith.constant 0 : i32
    %c0_i32_0 = arith.constant 0 : i32
    %c0_i32_1 = arith.constant 0 : i32
    return %c0_i32, %c0_i32_0 : i32, i32
  }
  func.func @transform_7(%arg0: i32) -> (i32, i32) {
    %c0_i32 = arith.constant 0 : i32
    %c0_i32_0 = arith.constant 0 : i32
    %c0_i32_1 = arith.constant 0 : i32
    return %c0_i32, %c0_i32_0 : i32, i32
  }
  func.func @transform_8(%arg0: i32) -> (i32, i32) {
    %c0_i32 = arith.constant 0 : i32
    %c0_i32_0 = arith.constant 0 : i32
    return %arg0, %c0_i32 : i32, i32
  }
}

</mosaic_0001>

<bundles_post_ra>
// kernel: nfm_forward.1
= control target key start
LH: loop header
LB: loop body
LE: loop exit
PB: predicated region body
PF: predicated region fallthrough
CT: control target
= control target key end

     0   :  { %vm212_vm0 = vcmask 1043456   ;;  %v7740_v1 = vmov 0.0   ;;  %vm115_vm1 = vcmask 31744   ;;  %vm6038_vm2 = vcmask 7168   ;;  %s10727_s1 = inlined_call_operand.vmem [shape: f32[4,1024], index: 1, kind: input, shape index: {}]   ;;  %s10728_s0 = inlined_call_operand.vmem [shape: f32[256,4], index: 0, kind: input, shape index: {}]   ;;  %s10729_s3 = inlined_call_operand.vmem [shape: bf16[1024,512], index: 3, kind: input, shape index: {}]   ;;  %s10730_s2 = inlined_call_operand.vmem [shape: f32[1,1024], index: 2, kind: input, shape index: {}]   ;;  %s10731_s5 = inlined_call_operand.vmem [shape: bf16[512,256], index: 5, kind: input, shape index: {}]   ;;  %s10732_s4 = inlined_call_operand.vmem [shape: f32[1,512], index: 4, kind: input, shape index: {}]   ;;  %s10733_s7 = inlined_call_operand.vmem [shape: f32[256,1], index: 7, kind: input, shape index: {}]   ;;  %s10734_s6 = inlined_call_operand.vmem [shape: f32[1,256], index: 6, kind: input, shape index: {}]   ;;  %s10735_s8 = inlined_call_operand.vmem [shape: f32[256,1], index: 8, kind: output, shape index: {}]  }
   0x1   :  { %v61_v0 = vld [vmem:[%s10727_s1] sm:$0xff]  ;;  %293 = vmatprep.mubr.f32.mxu0 %v7740_v1  ;;  %389 = vmatprep.mubr.f32.mxu1 %v7740_v1  ;;  %v62_v5 = vld [vmem:[%s10727_s1 + $0x8] sm:$0xff]  ;;  %v63_v9 = vld [vmem:[%s10727_s1 + $0x10] sm:$0xff] }
   0x2   :  { %v111_v2 = vcombine.high %v61_v0, %v61_v0  ;;  %v7795_v3 = vld [vmem:[%s10728_s0] sm:$0xff]  ;;  %v7818_v6 = vld [vmem:[%s10728_s0 + $0x8] sm:$0xff]  ;;  %v112_v8 = vcombine.high %v62_v5, %v62_v5  ;;  %v113_v10 = vcombine.high %v63_v9, %v63_v9  ;;  %v7838_v11 = vld [vmem:[%s10728_s0 + $0x10] sm:$0xff] }
   0x3   :  { %v7800_v4 = vld [vmem:[%s10728_s0 + $0x80] sm:$0xff]  ;;  %v7823_v7 = vld [vmem:[%s10728_s0 + $0x88] sm:$0xff]  ;;  %v7843_v12 = vld [vmem:[%s10728_s0 + $0x90] sm:$0xff] }
   0x4   :  { %6075 = vmatprep.subr.msk.mxu0 %vm212_vm0, %v111_v2  ;;  %6579 = vmatprep.subr.msk.mxu1 %vm212_vm0, %v111_v2  ;;  %v7850_v13 = vld [vmem:[%s10727_s1 + $0x18] sm:$0xff]  ;;  %v7229_v15 = vld [vmem:[%s10729_s3 + $0x4] ss:$16 sps:$4 sm:$0xff]   ;;  %v7894_v20 = vld [vmem:[%s10728_s0 + $0x28] sm:$0xff] }
   0x5   :  { %6076 = vmatpush1.msk.msra.mxu0 %vm212_vm0, %v61_v0  ;;  %6580 = vmatpush1.msk.msra.mxu1 %vm212_vm0, %v61_v0  ;;  %v114_v14 = vcombine.high %v7850_v13, %v7850_v13  ;;  %v7867_v16 = vld [vmem:[%s10728_s0 + $0x18] sm:$0xff]  ;;  %v7884_v18 = vld [vmem:[%s10728_s0 + $0x20] sm:$0xff]  ;;  %v7903_v21 = vld [vmem:[%s10728_s0 + $0xa8] sm:$0xff] }
   0x6   :  { %6077 = vmatmul.mubr.msk.f32.vlgmr.msra.gmra.mrb[0].mxu0 %vm115_vm1, %v7795_v3  ;;  %6093 = vmatmul.mubr.msk.f32.vlgmr.msra.gmra.mrb[0].mxu1 %vm115_vm1, %v7800_v4  ;;  %v7872_v17 = vld [vmem:[%s10728_s0 + $0x98] sm:$0xff]  ;;  %v7889_v19 = vld [vmem:[%s10728_s0 + $0xa0] sm:$0xff]  ;;  %v7916_v22 = vld [vmem:[%s10728_s0 + $0x30] sm:$0xff] }
   0x7   :  { %299 = vmatprep.mubr.f32.mxu0 %v7740_v1  ;;  %395 = vmatprep.mubr.f32.mxu1 %v7740_v1  ;;  %v7921_v23 = vld [vmem:[%s10728_s0 + $0xb0] sm:$0xff]  ;;  %v7926_v24 = vld [vmem:[%s10728_s0 + $0x38] sm:$0xff]  ;;  %v7948_v26 = vld [vmem:[%s10728_s0 + $0x40] sm:$0xff] }
   0x8   :  { %6109 = vmatprep.subr.msk.mxu1 %vm212_vm0, %v112_v8  ;;  %6143 = vmatprep.subr.msk.mxu0 %vm212_vm0, %v113_v10  ;;  %v7931_v25 = vld [vmem:[%s10728_s0 + $0xb8] sm:$0xff]  ;;  %v7953_v27 = vld [vmem:[%s10728_s0 + $0xc0] sm:$0xff]  ;;  %v7958_v28 = vld [vmem:[%s10728_s0 + $0x48] sm:$0xff] }
   0x9   :  { %6110 = vmatpush1.msk.msra.mxu1 %vm212_vm0, %v62_v5  ;;  %6144 = vmatpush1.msk.msra.mxu0 %vm212_vm0, %v63_v9  ;;  %v7963_v29 = vld [vmem:[%s10728_s0 + $0xc8] sm:$0xff]  ;;  %v7980_v30 = vld [vmem:[%s10728_s0 + $0x50] sm:$0xff]  ;;  %v7990_v32 = vld [vmem:[%s10728_s0 + $0x58] sm:$0xff] }
   0xa   :  { %6078 = vmatmul.mubr.msk.f32.gmra.mrb[2].mxu0 %vm115_vm1, %v7818_v6  ;;  %6094 = vmatmul.mubr.msk.f32.gmra.mrb[2].mxu1 %vm115_vm1, %v7823_v7  ;;  %v7985_v31 = vld [vmem:[%s10728_s0 + $0xd0] sm:$0xff]  ;;  %v7995_v33 = vld [vmem:[%s10728_s0 + $0xd8] sm:$0xff]  ;;  %v8012_v34 = vld [vmem:[%s10728_s0 + $0x60] sm:$0xff] }
   0xb   :  { %305 = vmatprep.mubr.f32.mxu0 %v7740_v1  ;;  %401 = vmatprep.mubr.f32.mxu1 %v7740_v1  ;;  %v8017_v35 = vld [vmem:[%s10728_s0 + $0xe0] sm:$0xff]  ;;  %v8022_v36 = vld [vmem:[%s10728_s0 + $0x68] sm:$0xff]  ;;  %v8044_v38 = vld [vmem:[%s10728_s0 + $0x70] sm:$0xff] }
   0xc   :  { %6177 = vmatprep.subr.msk.mxu1 %vm212_vm0, %v114_v14  ;;  %3199 = vmatprep.subr.bf16.mxu0 %v7229_v15  ;;  %v8027_v37 = vld [vmem:[%s10728_s0 + $0xe8] sm:$0xff]  ;;  %v8049_v39 = vld [vmem:[%s10728_s0 + $0xf0] sm:$0xff]  ;;  %v8054_v40 = vld [vmem:[%s10728_s0 + $0x78] sm:$0xff] }
   0xd   :  { %v8059_v41 = vld [vmem:[%s10728_s0 + $0xf8] sm:$0xff]  ;;  %v7227_v42 = vld [vmem:[%s10729_s3] ss:$16 sps:$4 sm:$0xff]   ;;  %v7232_v43 = vld [vmem:[%s10729_s3 + $0x24] ss:$16 sps:$4 sm:$0xff]  }
   0xe   :  { %6079 = vmatmul.mubr.msk.f32.gmra.mrb[4].mxu0 %vm115_vm1, %v7838_v11  ;;  %6095 = vmatmul.mubr.msk.f32.gmra.mrb[4].mxu1 %vm115_vm1, %v7843_v12  ;;  %v7230_v44 = vld [vmem:[%s10729_s3 + $0x20] ss:$16 sps:$4 sm:$0xff]   ;;  %v7235_v45 = vld [vmem:[%s10729_s3 + $0x44] ss:$16 sps:$4 sm:$0xff]   ;;  %v7280_v0 = vld [vmem:[%s10729_s3 + $0xc] ss:$16 sps:$4 sm:$0xff]  }
   0xf   :  { %311 = vmatprep.mubr.f32.mxu0 %v7740_v1  ;;  %407 = vmatprep.mubr.f32.mxu1 %v7740_v1  ;;  %v7233_v46 = vld [vmem:[%s10729_s3 + $0x40] ss:$16 sps:$4 sm:$0xff]   ;;  %v7238_v47 = vld [vmem:[%s10729_s3 + $0x64] ss:$16 sps:$4 sm:$0xff]   ;;  %v7284_v15 = vld [vmem:[%s10729_s3 + $0x28] ss:$16 sps:$4 sm:$0xff]  }
  0x10   :  { %v7236_v48 = vld [vmem:[%s10729_s3 + $0x60] ss:$16 sps:$4 sm:$0xff]   ;;  %v7241_v49 = vld [vmem:[%s10729_s3 + $0x84] ss:$16 sps:$4 sm:$0xff]  }
  0x11   :  { %v7239_v50 = vld [vmem:[%s10729_s3 + $0x80] ss:$16 sps:$4 sm:$0xff]   ;;  %v7244_v51 = vld [vmem:[%s10729_s3 + $0xa4] ss:$16 sps:$4 sm:$0xff]  }
  0x12   :  { %6080 = vmatmul.mubr.msk.f32.gmra.mrb[6].mxu0 %vm115_vm1, %v7867_v16  ;;  %6096 = vmatmul.mubr.msk.f32.gmra.mrb[6].mxu1 %vm115_vm1, %v7872_v17  ;;  %v7242_v52 = vld [vmem:[%s10729_s3 + $0xa0] ss:$16 sps:$4 sm:$0xff]   ;;  %v7247_v53 = vld [vmem:[%s10729_s3 + $0xc4] ss:$16 sps:$4 sm:$0xff]  }
  0x13   :  { %317 = vmatprep.mubr.f32.mxu0 %v7740_v1  ;;  %413 = vmatprep.mubr.f32.mxu1 %v7740_v1  ;;  %v7245_v54 = vld [vmem:[%s10729_s3 + $0xc0] ss:$16 sps:$4 sm:$0xff]   ;;  %v7250_v55 = vld [vmem:[%s10729_s3 + $0xe4] ss:$16 sps:$4 sm:$0xff]  }
  0x14   :  { %v7248_v56 = vld [vmem:[%s10729_s3 + $0xe0] ss:$16 sps:$4 sm:$0xff]   ;;  %v7253_v57 = vld [vmem:[%s10729_s3 + $0x104] ss:$16 sps:$4 sm:$0xff]  }
  0x15   :  { %v7251_v58 = vld [vmem:[%s10729_s3 + $0x100] ss:$16 sps:$4 sm:$0xff]   ;;  %v7256_v59 = vld [vmem:[%s10729_s3 + $0x124] ss:$16 sps:$4 sm:$0xff]  }
  0x16   :  { %6081 = vmatmul.mubr.msk.f32.gmra.mrb[8].mxu0 %vm115_vm1, %v7884_v18  ;;  %6097 = vmatmul.mubr.msk.f32.gmra.mrb[8].mxu1 %vm115_vm1, %v7889_v19  ;;  %v7254_v60 = vld [vmem:[%s10729_s3 + $0x120] ss:$16 sps:$4 sm:$0xff]   ;;  %v7259_v61 = vld [vmem:[%s10729_s3 + $0x144] ss:$16 sps:$4 sm:$0xff]  }
  0x17   :  { %323 = vmatprep.mubr.f32.mxu0 %v7740_v1  ;;  %419 = vmatprep.mubr.f32.mxu1 %v7740_v1  ;;  %v7257_v62 = vld [vmem:[%s10729_s3 + $0x140] ss:$16 sps:$4 sm:$0xff]   ;;  %v7262_v63 = vld [vmem:[%s10729_s3 + $0x164] ss:$16 sps:$4 sm:$0xff]  }
  0x18   :  { %v7260_v2 = vld [vmem:[%s10729_s3 + $0x160] ss:$16 sps:$4 sm:$0xff]   ;;  %v7271_v9 = vld [vmem:[%s10729_s3 + $0x1c4] ss:$16 sps:$4 sm:$0xff]  }
  0x19   :  { %v7263_v5 = vld [vmem:[%s10729_s3 + $0x180] ss:$16 sps:$4 sm:$0xff]   ;;  %v7277_v14 = vld [vmem:[%s10729_s3 + $0x204] ss:$16 sps:$4 sm:$0xff]  }
  0x1a   :  { %6082 = vmatmul.mubr.msk.f32.gmra.mrb[10].mxu0 %vm115_vm1, %v7894_v20  ;;  %6098 = vmatmul.mubr.msk.f32.gmra.mrb[10].mxu1 %vm115_vm1, %v7903_v21  ;;  %v7266_v8 = vld [vmem:[%s10729_s3 + $0x1a0] ss:$16 sps:$4 sm:$0xff]  }
  0x1b   :  { %329 = vmatprep.mubr.f32.mxu0 %v7740_v1  ;;  %425 = vmatprep.mubr.f32.mxu1 %v7740_v1  ;;  %v7269_v10 = vld [vmem:[%s10729_s3 + $0x1c0] ss:$16 sps:$4 sm:$0xff]  }
  0x1e   :  { %6083 = vmatmul.mubr.msk.f32.gmra.mrb[12].mxu0 %vm115_vm1, %v7916_v22  ;;  %6099 = vmatmul.mubr.msk.f32.gmra.mrb[12].mxu1 %vm115_vm1, %v7921_v23 }
  0x1f   :  { %335 = vmatprep.mubr.f32.mxu0 %v7740_v1  ;;  %431 = vmatprep.mubr.f32.mxu1 %v7740_v1 }
  0x22   :  { %6084 = vmatmul.mubr.msk.f32.gmra.mrb[14].mxu0 %vm115_vm1, %v7926_v24  ;;  %6100 = vmatmul.mubr.msk.f32.gmra.mrb[14].mxu1 %vm115_vm1, %v7931_v25 }
  0x23   :  { %341 = vmatprep.mubr.f32.mxu0 %v7740_v1  ;;  %437 = vmatprep.mubr.f32.mxu1 %v7740_v1 }
  0x26   :  { %6085 = vmatmul.mubr.msk.f32.gmra.mrb[16].mxu0 %vm115_vm1, %v7948_v26  ;;  %6101 = vmatmul.mubr.msk.f32.gmra.mrb[16].mxu1 %vm115_vm1, %v7953_v27 }
  0x27   :  { %347 = vmatprep.mubr.f32.mxu0 %v7740_v1  ;;  %443 = vmatprep.mubr.f32.mxu1 %v7740_v1 }
  0x2a   :  { %6086 = vmatmul.mubr.msk.f32.gmra.mrb[18].mxu0 %vm115_vm1, %v7958_v28  ;;  %6102 = vmatmul.mubr.msk.f32.gmra.mrb[18].mxu1 %vm115_vm1, %v7963_v29 }
  0x2b   :  { %353 = vmatprep.mubr.f32.mxu0 %v7740_v1  ;;  %449 = vmatprep.mubr.f32.mxu1 %v7740_v1 }
  0x2e   :  { %6087 = vmatmul.mubr.msk.f32.gmra.mrb[20].mxu0 %vm115_vm1, %v7980_v30  ;;  %6103 = vmatmul.mubr.msk.f32.gmra.mrb[20].mxu1 %vm115_vm1, %v7985_v31 }
  0x2f   :  { %359 = vmatprep.mubr.f32.mxu0 %v7740_v1  ;;  %455 = vmatprep.mubr.f32.mxu1 %v7740_v1 }
  0x32   :  { %6088 = vmatmul.mubr.msk.f32.gmra.mrb[22].mxu0 %vm115_vm1, %v7990_v32  ;;  %6104 = vmatmul.mubr.msk.f32.gmra.mrb[22].mxu1 %vm115_vm1, %v7995_v33 }
  0x33   :  { %365 = vmatprep.mubr.f32.mxu0 %v7740_v1  ;;  %461 = vmatprep.mubr.f32.mxu1 %v7740_v1 }
  0x36   :  { %6089 = vmatmul.mubr.msk.f32.gmra.mrb[24].mxu0 %vm115_vm1, %v8012_v34  ;;  %6105 = vmatmul.mubr.msk.f32.gmra.mrb[24].mxu1 %vm115_vm1, %v8017_v35 }
  0x37   :  { %371 = vmatprep.mubr.f32.mxu0 %v7740_v1  ;;  %467 = vmatprep.mubr.f32.mxu1 %v7740_v1 }
  0x3a   :  { %6090 = vmatmul.mubr.msk.f32.gmra.mrb[26].mxu0 %vm115_vm1, %v8022_v36  ;;  %6106 = vmatmul.mubr.msk.f32.gmra.mrb[26].mxu1 %vm115_vm1, %v8027_v37 }
  0x3b   :  { %377 = vmatprep.mubr.f32.mxu0 %v7740_v1  ;;  %473 = vmatprep.mubr.f32.mxu1 %v7740_v1 }
  0x3e   :  { %6091 = vmatmul.mubr.msk.f32.gmra.mrb[28].mxu0 %vm115_vm1, %v8044_v38  ;;  %6107 = vmatmul.mubr.msk.f32.gmra.mrb[28].mxu1 %vm115_vm1, %v8049_v39 }
  0x3f   :  { %383 = vmatprep.mubr.f32.mxu0 %v7740_v1  ;;  %479 = vmatprep.mubr.f32.mxu1 %v7740_v1 }
  0x42   :  { %6092 = vmatmul.mubr.msk.f32.gmra.mrb[30].mxu0 %vm115_vm1, %v8054_v40  ;;  %6108 = vmatmul.mubr.msk.f32.gmra.mrb[30].mxu1 %vm115_vm1, %v8059_v41 }
  0x43   :  { %550 = vmatprep.mubr.f32.mxu1 %v7740_v1  ;;  %807 = vmatprep.mubr.f32.mxu0 %v7740_v1 }
  0x46   :  { %6111 = vmatmul.mubr.msk.f32.vlgmr.msra.gmra.mrb[32].mxu1 %vm115_vm1, %v7795_v3  ;;  %6145 = vmatmul.mubr.msk.f32.vlgmr.msra.gmra.mrb[32].mxu0 %vm115_vm1, %v7795_v3  ;;  %v7265_v3 = vld [vmem:[%s10729_s3 + $0x184] ss:$16 sps:$4 sm:$0xff]  }
  0x47   :  { %556 = vmatprep.mubr.f32.mxu1 %v7740_v1  ;;  %813 = vmatprep.mubr.f32.mxu0 %v7740_v1 }
  0x48   :  { %6178 = vmatpush1.msk.msra.mxu1 %vm212_vm0, %v7850_v13  ;;  %3200 = vmatpush1.bf16.msra.mxu0 %v7227_v42  ;;  %v7272_v13 = vld [vmem:[%s10729_s3 + $0x1e0] ss:$16 sps:$4 sm:$0xff]   ;;  %v7314_v42 = vld [vmem:[%s10729_s3 + $0xc8] ss:$16 sps:$4 sm:$0xff]  }
  0x49   :  { %3201 = vmatprep.subr.bf16.mxu0 %v7232_v43  ;;  %3971 = vmatprep.subr.bf16.mxu1 %v7280_v0 }
  0x4a   :  { %6112 = vmatmul.mubr.msk.f32.gmra.mrb[34].mxu1 %vm115_vm1, %v7818_v6  ;;  %6146 = vmatmul.mubr.msk.f32.gmra.mrb[34].mxu0 %vm115_vm1, %v7818_v6  ;;  %v7268_v6 = vld [vmem:[%s10729_s3 + $0x1a4] ss:$16 sps:$4 sm:$0xff]  }
  0x4b   :  { %562 = vmatprep.mubr.f32.mxu1 %v7740_v1  ;;  %819 = vmatprep.mubr.f32.mxu0 %v7740_v1 }
  0x4c   :  { %3202 = vmatpush1.bf16.msra.mxu0 %v7230_v44 }
  0x4d   :  { %3203 = vmatprep.subr.bf16.mxu0 %v7235_v45  ;;  %v7322_v45 = vld [vmem:[%s10729_s3 + $0xec] ss:$16 sps:$4 sm:$0xff]  }
  0x4e   :  { %6113 = vmatmul.mubr.msk.f32.gmra.mrb[36].mxu1 %vm115_vm1, %v7838_v11  ;;  %6147 = vmatmul.mubr.msk.f32.gmra.mrb[36].mxu0 %vm115_vm1, %v7838_v11  ;;  %v7274_v11 = vld [vmem:[%s10729_s3 + $0x1e4] ss:$16 sps:$4 sm:$0xff]  }
  0x4f   :  { %568 = vmatprep.mubr.f32.mxu1 %v7740_v1  ;;  %825 = vmatprep.mubr.f32.mxu0 %v7740_v1 }
  0x50   :  { %3204 = vmatpush1.bf16.msra.mxu0 %v7233_v46 }
  0x51   :  { %3205 = vmatprep.subr.bf16.mxu0 %v7238_v47 }
  0x52   :  { %6114 = vmatmul.mubr.msk.f32.gmra.mrb[38].mxu1 %vm115_vm1, %v7867_v16  ;;  %6148 = vmatmul.mubr.msk.f32.gmra.mrb[38].mxu0 %vm115_vm1, %v7867_v16  ;;  %v7292_v16 = vld [vmem:[%s10729_s3 + $0x4c] ss:$16 sps:$4 sm:$0xff]  }
  0x53   :  { %574 = vmatprep.mubr.f32.mxu1 %v7740_v1  ;;  %831 = vmatprep.mubr.f32.mxu0 %v7740_v1 }
  0x54   :  { %3206 = vmatpush1.bf16.msra.mxu0 %v7236_v48 }
  0x55   :  { %3207 = vmatprep.subr.bf16.mxu0 %v7241_v49 }
  0x56   :  { %6115 = vmatmul.mubr.msk.f32.gmra.mrb[40].mxu1 %vm115_vm1, %v7884_v18  ;;  %6149 = vmatmul.mubr.msk.f32.gmra.mrb[40].mxu0 %vm115_vm1, %v7884_v18  ;;  %v7290_v18 = vld [vmem:[%s10729_s3 + $0x48] ss:$16 sps:$4 sm:$0xff]  }
  0x57   :  { %580 = vmatprep.mubr.f32.mxu1 %v7740_v1  ;;  %837 = vmatprep.mubr.f32.mxu0 %v7740_v1 }
  0x58   :  { %3208 = vmatpush1.bf16.msra.mxu0 %v7239_v50 }
  0x59   :  { %3209 = vmatprep.subr.bf16.mxu0 %v7244_v51  ;;  %v7713_v51 = vld [vmem:[%s10728_s0 + $0x30] sm:$0xff] }
  0x5a   :  { %6116 = vmatmul.mubr.msk.f32.gmra.mrb[42].mxu1 %vm115_vm1, %v7894_v20  ;;  %6150 = vmatmul.mubr.msk.f32.gmra.mrb[42].mxu0 %vm115_vm1, %v7894_v20  ;;  %v7298_v20 = vld [vmem:[%s10729_s3 + $0x6c] ss:$16 sps:$4 sm:$0xff]  }
  0x5b   :  { %586 = vmatprep.mubr.f32.mxu1 %v7740_v1  ;;  %843 = vmatprep.mubr.f32.mxu0 %v7740_v1 }
  0x5c   :  { %3210 = vmatpush1.bf16.msra.mxu0 %v7242_v52 }
  0x5d   :  { %3211 = vmatprep.subr.bf16.mxu0 %v7247_v53 }
  0x5e   :  { %6117 = vmatmul.mubr.msk.f32.gmra.mrb[44].mxu1 %vm115_vm1, %v7916_v22  ;;  %6151 = vmatmul.mubr.msk.f32.gmra.mrb[44].mxu0 %vm115_vm1, %v7916_v22  ;;  %v7296_v22 = vld [vmem:[%s10729_s3 + $0x68] ss:$16 sps:$4 sm:$0xff]  }
  0x5f   :  { %592 = vmatprep.mubr.f32.mxu1 %v7740_v1  ;;  %849 = vmatprep.mubr.f32.mxu0 %v7740_v1 }
  0x60   :  { %3212 = vmatpush1.bf16.msra.mxu0 %v7245_v54 }
  0x61   :  { %3213 = vmatprep.subr.bf16.mxu0 %v7250_v55 }
  0x62   :  { %6118 = vmatmul.mubr.msk.f32.gmra.mrb[46].mxu1 %vm115_vm1, %v7926_v24  ;;  %6152 = vmatmul.mubr.msk.f32.gmra.mrb[46].mxu0 %vm115_vm1, %v7926_v24  ;;  %v7304_v24 = vld [vmem:[%s10729_s3 + $0x8c] ss:$16 sps:$4 sm:$0xff]  }
  0x63   :  { %598 = vmatprep.mubr.f32.mxu1 %v7740_v1  ;;  %855 = vmatprep.mubr.f32.mxu0 %v7740_v1 }
  0x64   :  { %3214 = vmatpush1.bf16.msra.mxu0 %v7248_v56 }
  0x65   :  { %3215 = vmatprep.subr.bf16.mxu0 %v7253_v57  ;;  %v7320_v57 = vld [vmem:[%s10729_s3 + $0xe8] ss:$16 sps:$4 sm:$0xff]  }
  0x66   :  { %6119 = vmatmul.mubr.msk.f32.gmra.mrb[48].mxu1 %vm115_vm1, %v7948_v26  ;;  %6153 = vmatmul.mubr.msk.f32.gmra.mrb[48].mxu0 %vm115_vm1, %v7948_v26  ;;  %v7302_v26 = vld [vmem:[%s10729_s3 + $0x88] ss:$16 sps:$4 sm:$0xff]  }
  0x67   :  { %604 = vmatprep.mubr.f32.mxu1 %v7740_v1  ;;  %861 = vmatprep.mubr.f32.mxu0 %v7740_v1 }
  0x68   :  { %3216 = vmatpush1.bf16.msra.mxu0 %v7251_v58 }
  0x69   :  { %3217 = vmatprep.subr.bf16.mxu0 %v7256_v59 }
  0x6a   :  { %6120 = vmatmul.mubr.msk.f32.gmra.mrb[50].mxu1 %vm115_vm1, %v7958_v28  ;;  %6154 = vmatmul.mubr.msk.f32.gmra.mrb[50].mxu0 %vm115_vm1, %v7958_v28  ;;  %v7310_v28 = vld [vmem:[%s10729_s3 + $0xac] ss:$16 sps:$4 sm:$0xff]  }
  0x6b   :  { %610 = vmatprep.mubr.f32.mxu1 %v7740_v1  ;;  %867 = vmatprep.mubr.f32.mxu0 %v7740_v1 }
  0x6c   :  { %3218 = vmatpush1.bf16.msra.mxu0 %v7254_v60 }
  0x6d   :  { %3219 = vmatprep.subr.bf16.mxu0 %v7259_v61 }
  0x6e   :  { %6121 = vmatmul.mubr.msk.f32.gmra.mrb[52].mxu1 %vm115_vm1, %v7980_v30  ;;  %6155 = vmatmul.mubr.msk.f32.gmra.mrb[52].mxu0 %vm115_vm1, %v7980_v30 }
  0x6f   :  { %616 = vmatprep.mubr.f32.mxu1 %v7740_v1  ;;  %873 = vmatprep.mubr.f32.mxu0 %v7740_v1 }
  0x70   :  { %3220 = vmatpush1.bf16.msra.mxu0 %v7257_v62  ;;  %v7328_v62 = vld [vmem:[%s10729_s3 + $0x10c] ss:$16 sps:$4 sm:$0xff]  }
  0x71   :  { %3221 = vmatprep.subr.bf16.mxu0 %v7262_v63 }
  0x72   :  { %6122 = vmatmul.mubr.msk.f32.gmra.mrb[54].mxu1 %vm115_vm1, %v7990_v32  ;;  %6156 = vmatmul.mubr.msk.f32.gmra.mrb[54].mxu0 %vm115_vm1, %v7990_v32  ;;  %v7308_v32 = vld [vmem:[%s10729_s3 + $0xa8] ss:$16 sps:$4 sm:$0xff]  }
  0x73   :  { %622 = vmatprep.mubr.f32.mxu1 %v7740_v1  ;;  %879 = vmatprep.mubr.f32.mxu0 %v7740_v1 }
  0x74   :  { %3222 = vmatpush1.bf16.msra.mxu0 %v7260_v2 }
  0x75   :  { %3223 = vmatprep.subr.bf16.mxu0 %v7265_v3 }
  0x76   :  { %6123 = vmatmul.mubr.msk.f32.gmra.mrb[56].mxu1 %vm115_vm1, %v8012_v34  ;;  %6157 = vmatmul.mubr.msk.f32.gmra.mrb[56].mxu0 %vm115_vm1, %v8012_v34  ;;  %v7316_v34 = vld [vmem:[%s10729_s3 + $0xcc] ss:$16 sps:$4 sm:$0xff]  }
  0x77   :  { %628 = vmatprep.mubr.f32.mxu1 %v7740_v1  ;;  %885 = vmatprep.mubr.f32.mxu0 %v7740_v1 }
  0x78   :  { %3224 = vmatpush1.bf16.msra.mxu0 %v7263_v5 }
  0x79   :  { %3225 = vmatprep.subr.bf16.mxu0 %v7268_v6 }
  0x7a   :  { %6124 = vmatmul.mubr.msk.f32.gmra.mrb[58].mxu1 %vm115_vm1, %v8022_v36  ;;  %6158 = vmatmul.mubr.msk.f32.gmra.mrb[58].mxu0 %vm115_vm1, %v8022_v36 }
  0x7b   :  { %634 = vmatprep.mubr.f32.mxu1 %v7740_v1  ;;  %891 = vmatprep.mubr.f32.mxu0 %v7740_v1 }
  0x7c   :  { %3226 = vmatpush1.bf16.msra.mxu0 %v7266_v8 }
  0x7d   :  { %3227 = vmatprep.subr.bf16.mxu0 %v7271_v9  ;;  %v7714_v9 = vld [vmem:[%s10728_s0 + $0x38] sm:$0xff] }
  0x7e   :  { %6125 = vmatmul.mubr.msk.f32.gmra.mrb[60].mxu1 %vm115_vm1, %v8044_v38  ;;  %6159 = vmatmul.mubr.msk.f32.gmra.mrb[60].mxu0 %vm115_vm1, %v8044_v38 }
  0x7f   :  { %640 = vmatprep.mubr.f32.mxu1 %v7740_v1  ;;  %897 = vmatprep.mubr.f32.mxu0 %v7740_v1 }
  0x80   :  { %3228 = vmatpush1.bf16.msra.mxu0 %v7269_v10 }
  0x81   :  { %3229 = vmatprep.subr.bf16.mxu0 %v7274_v11 }
  0x82   :  { %6126 = vmatmul.mubr.msk.f32.gmra.mrb[62].mxu1 %vm115_vm1, %v8054_v40  ;;  %6160 = vmatmul.mubr.msk.f32.gmra.mrb[62].mxu0 %vm115_vm1, %v8054_v40 }
  0x83   :  { %646 = vmatprep.mubr.f32.mxu1 %v7740_v1  ;;  %903 = vmatprep.mubr.f32.mxu0 %v7740_v1 }
  0x84   :  { %3230 = vmatpush1.bf16.msra.mxu0 %v7272_v13 }
  0x85   :  { %3392 = vmatprep.subr.bf16.mxu0 %v7277_v14 }
  0x86   :  { %6127 = vmatmul.mubr.msk.f32.gmra.mrb[64].mxu1 %vm115_vm1, %v7800_v4  ;;  %6161 = vmatmul.mubr.msk.f32.gmra.mrb[64].mxu0 %vm115_vm1, %v7800_v4  ;;  %v7278_v4 = vld [vmem:[%s10729_s3 + $0x8] ss:$16 sps:$4 sm:$0xff]  }
  0x87   :  { %652 = vmatprep.mubr.f32.mxu1 %v7740_v1  ;;  %909 = vmatprep.mubr.f32.mxu0 %v7740_v1 }
  0x8a   :  { %6128 = vmatmul.mubr.msk.f32.gmra.mrb[66].mxu1 %vm115_vm1, %v7823_v7  ;;  %6162 = vmatmul.mubr.msk.f32.gmra.mrb[66].mxu0 %vm115_vm1, %v7823_v7  ;;  %v7286_v7 = vld [vmem:[%s10729_s3 + $0x2c] ss:$16 sps:$4 sm:$0xff]  }
  0x8b   :  { %658 = vmatprep.mubr.f32.mxu1 %v7740_v1  ;;  %915 = vmatprep.mubr.f32.mxu0 %v7740_v1 }
  0x8e   :  { %6129 = vmatmul.mubr.msk.f32.gmra.mrb[68].mxu1 %vm115_vm1, %v7843_v12  ;;  %6163 = vmatmul.mubr.msk.f32.gmra.mrb[68].mxu0 %vm115_vm1, %v7843_v12  ;;  %v7707_v12 = vld [vmem:[%s10728_s0] sm:$0xff] }
  0x8f   :  { %664 = vmatprep.mubr.f32.mxu1 %v7740_v1  ;;  %921 = vmatprep.mubr.f32.mxu0 %v7740_v1 }
  0x92   :  { %6130 = vmatmul.mubr.msk.f32.gmra.mrb[70].mxu1 %vm115_vm1, %v7872_v17  ;;  %6164 = vmatmul.mubr.msk.f32.gmra.mrb[70].mxu0 %vm115_vm1, %v7872_v17  ;;  %v7708_v17 = vld [vmem:[%s10728_s0 + $0x8] sm:$0xff] }
  0x93   :  { %670 = vmatprep.mubr.f32.mxu1 %v7740_v1  ;;  %927 = vmatprep.mubr.f32.mxu0 %v7740_v1 }
  0x96   :  { %6131 = vmatmul.mubr.msk.f32.gmra.mrb[72].mxu1 %vm115_vm1, %v7889_v19  ;;  %6165 = vmatmul.mubr.msk.f32.gmra.mrb[72].mxu0 %vm115_vm1, %v7889_v19  ;;  %v67_v19 = vlaneseq }
  0x97   :  { %676 = vmatprep.mubr.f32.mxu1 %v7740_v1  ;;  %933 = vmatprep.mubr.f32.mxu0 %v7740_v1 }
  0x9a   :  { %6132 = vmatmul.mubr.msk.f32.gmra.mrb[74].mxu1 %vm115_vm1, %v7903_v21  ;;  %6166 = vmatmul.mubr.msk.f32.gmra.mrb[74].mxu0 %vm115_vm1, %v7903_v21  ;;  %v7709_v21 = vld [vmem:[%s10728_s0 + $0x10] sm:$0xff] }
  0x9b   :  { %682 = vmatprep.mubr.f32.mxu1 %v7740_v1  ;;  %939 = vmatprep.mubr.f32.mxu0 %v7740_v1 }
  0x9e   :  { %6133 = vmatmul.mubr.msk.f32.gmra.mrb[76].mxu1 %vm115_vm1, %v7921_v23  ;;  %6167 = vmatmul.mubr.msk.f32.gmra.mrb[76].mxu0 %vm115_vm1, %v7921_v23  ;;  %v8401_v23 = vshrl.u32 %v67_v19, 7 }
  0x9f   :  { %688 = vmatprep.mubr.f32.mxu1 %v7740_v1  ;;  %945 = vmatprep.mubr.f32.mxu0 %v7740_v1 }
  0xa0   :  { %10787 = vst [vmem:[#allocation2_spill] sm:$0xff] %v8401_v23  ;;  %v8426_v30 = vsub.s32 1, %v8401_v23 }
  0xa2   :  { %6134 = vmatmul.mubr.msk.f32.gmra.mrb[78].mxu1 %vm115_vm1, %v7931_v25  ;;  %6168 = vmatmul.mubr.msk.f32.gmra.mrb[78].mxu0 %vm115_vm1, %v7931_v25  ;;  %v7710_v25 = vld [vmem:[%s10728_s0 + $0x18] sm:$0xff]  ;;  %10789 = vst [vmem:[#allocation4_spill] sm:$0xff] %v8426_v30 }
  0xa3   :  { %694 = vmatprep.mubr.f32.mxu1 %v7740_v1  ;;  %951 = vmatprep.mubr.f32.mxu0 %v7740_v1 }
  0xa6   :  { %6135 = vmatmul.mubr.msk.f32.gmra.mrb[80].mxu1 %vm115_vm1, %v7953_v27  ;;  %6169 = vmatmul.mubr.msk.f32.gmra.mrb[80].mxu0 %vm115_vm1, %v7953_v27  ;;  %v8415_v27 = vsub.s32 0, %v8401_v23 }
  0xa7   :  { %700 = vmatprep.mubr.f32.mxu1 %v7740_v1  ;;  %957 = vmatprep.mubr.f32.mxu0 %v7740_v1 }
  0xa8   :  { %10788 = vst [vmem:[#allocation3_spill] sm:$0xff] %v8415_v27 }
  0xaa   :  { %6136 = vmatmul.mubr.msk.f32.gmra.mrb[82].mxu1 %vm115_vm1, %v7963_v29  ;;  %6170 = vmatmul.mubr.msk.f32.gmra.mrb[82].mxu0 %vm115_vm1, %v7963_v29  ;;  %v8423_v29 = vld [vmem:[%s10730_s2] sm:$0xff] }
  0xab   :  { %706 = vmatprep.mubr.f32.mxu1 %v7740_v1  ;;  %963 = vmatprep.mubr.f32.mxu0 %v7740_v1  ;;  %v8445_v36 = vrot.slane %v8423_v29, %v8426_v30 }
  0xae   :  { %6137 = vmatmul.mubr.msk.f32.gmra.mrb[84].mxu1 %vm115_vm1, %v7985_v31  ;;  %6171 = vmatmul.mubr.msk.f32.gmra.mrb[84].mxu0 %vm115_vm1, %v7985_v31  ;;  %v7711_v31 = vld [vmem:[%s10728_s0 + $0x20] sm:$0xff] }
  0xaf   :  { %712 = vmatprep.mubr.f32.mxu1 %v7740_v1  ;;  %969 = vmatprep.mubr.f32.mxu0 %v7740_v1 }
  0xb2   :  { %6138 = vmatmul.mubr.msk.f32.gmra.mrb[86].mxu1 %vm115_vm1, %v7995_v33  ;;  %6172 = vmatmul.mubr.msk.f32.gmra.mrb[86].mxu0 %vm115_vm1, %v7995_v33  ;;  %v8438_v33 = vrot.slane %v8423_v29, %v8415_v27 }
  0xb3   :  { %718 = vmatprep.mubr.f32.mxu1 %v7740_v1  ;;  %975 = vmatprep.mubr.f32.mxu0 %v7740_v1 }
  0xb6   :  { %6139 = vmatmul.mubr.msk.f32.gmra.mrb[88].mxu1 %vm115_vm1, %v8017_v35  ;;  %6173 = vmatmul.mubr.msk.f32.gmra.mrb[88].mxu0 %vm115_vm1, %v8017_v35 }
  0xb7   :  { %724 = vmatprep.mubr.f32.mxu1 %v7740_v1  ;;  %981 = vmatprep.mubr.f32.mxu0 %v7740_v1 }
  0xba   :  { %6140 = vmatmul.mubr.msk.f32.gmra.mrb[90].mxu1 %vm115_vm1, %v8027_v37  ;;  %6174 = vmatmul.mubr.msk.f32.gmra.mrb[90].mxu0 %vm115_vm1, %v8027_v37 }
  0xbb   :  { %730 = vmatprep.mubr.f32.mxu1 %v7740_v1  ;;  %987 = vmatprep.mubr.f32.mxu0 %v7740_v1 }
  0xbe   :  { %6141 = vmatmul.mubr.msk.f32.gmra.mrb[92].mxu1 %vm115_vm1, %v8049_v39  ;;  %6175 = vmatmul.mubr.msk.f32.gmra.mrb[92].mxu0 %vm115_vm1, %v8049_v39  ;;  %v7712_v39 = vld [vmem:[%s10728_s0 + $0x28] sm:$0xff] }
  0xbf   :  { %736 = vmatprep.mubr.f32.mxu1 %v7740_v1  ;;  %993 = vmatprep.mubr.f32.mxu0 %v7740_v1 }
  0xc2   :  { %6142 = vmatmul.mubr.msk.f32.gmra.mrb[94].mxu1 %vm115_vm1, %v8059_v41  ;;  %6176 = vmatmul.mubr.msk.f32.gmra.mrb[94].mxu0 %vm115_vm1, %v8059_v41 }
  0xc3   :  { %1064 = vmatprep.mubr.f32.mxu1 %v7740_v1 }
  0xc6   :  { %6179 = vmatmul.mubr.msk.f32.vlgmr.msra.gmra.mrb[96].mxu1 %vm115_vm1, %v7707_v12 }
  0xc7   :  { %1070 = vmatprep.mubr.f32.mxu1 %v7740_v1  ;;  %3972 = vmatpush1.bf16.msra.mxu1 %v7278_v4  ;;  %v7275_v4 = vld [vmem:[%s10729_s3 + $0x200] ss:$16 sps:$4 sm:$0xff]  }
  0xc8   :  { %3973 = vmatprep.subr.bf16.mxu1 %v7286_v7 }
  0xca   :  { %6180 = vmatmul.mubr.msk.f32.gmra.mrb[98].mxu1 %vm115_vm1, %v7708_v17  ;;  %v7326_v17 = vld [vmem:[%s10729_s3 + $0x108] ss:$16 sps:$4 sm:$0xff]  }
  0xcb   :  { %1076 = vmatprep.mubr.f32.mxu1 %v7740_v1  ;;  %3974 = vmatpush1.bf16.msra.mxu1 %v7284_v15  ;;  %v7283_v15 = vld [vmem:[%s10729_s3 + $0x224] ss:$16 sps:$4 sm:$0xff]  }
  0xcc   :  { %3975 = vmatprep.subr.bf16.mxu1 %v7292_v16 }
  0xce   :  { %6181 = vmatmul.mubr.msk.f32.gmra.mrb[100].mxu1 %vm115_vm1, %v7709_v21  ;;  %v7331_v21 = vld [vmem:[%s10729_s3 + $0x12c] ss:$16 sps:$4 sm:$0xff]  }
  0xcf   :  { %1082 = vmatprep.mubr.f32.mxu1 %v7740_v1  ;;  %3976 = vmatpush1.bf16.msra.mxu1 %v7290_v18 }
  0xd0   :  { %3977 = vmatprep.subr.bf16.mxu1 %v7298_v20 }
  0xd2   :  { %6182 = vmatmul.mubr.msk.f32.gmra.mrb[102].mxu1 %vm115_vm1, %v7710_v25  ;;  %v7715_v25 = vld [vmem:[%s10728_s0 + $0x40] sm:$0xff] }
  0xd3   :  { %1088 = vmatprep.mubr.f32.mxu1 %v7740_v1  ;;  %3978 = vmatpush1.bf16.msra.mxu1 %v7296_v22 }
  0xd4   :  { %3979 = vmatprep.subr.bf16.mxu1 %v7304_v24 }
  0xd6   :  { %6183 = vmatmul.mubr.msk.f32.gmra.mrb[104].mxu1 %vm115_vm1, %v7711_v31 }
  0xd7   :  { %1094 = vmatprep.mubr.f32.mxu1 %v7740_v1  ;;  %3980 = vmatpush1.bf16.msra.mxu1 %v7302_v26 }
  0xd8   :  { %3981 = vmatprep.subr.bf16.mxu1 %v7310_v28 }
  0xd9   :  { %v295_v35 = vpop.f32.mrb[0].mxu0  ;;  %v391_v37 = vpop.f32.mrb[0].mxu1 }
  0xda   :  { %v297_v38 = vpop.f32.mrb[1].mxu0  ;;  %6184 = vmatmul.mubr.msk.f32.gmra.mrb[106].mxu1 %vm115_vm1, %v7712_v39  ;;  %v392_v40 = vadd.f32 %v391_v37, %v8438_v33  ;;  %v393_v41 = vpop.f32.mrb[1].mxu1  ;;  %v296_v43 = vadd.f32 %v295_v35, %v8438_v33  ;;  %v7289_v35 = vld [vmem:[%s10729_s3 + $0x244] ss:$16 sps:$4 sm:$0xff]  }
  0xdb   :  { %1100 = vmatprep.mubr.f32.mxu1 %v7740_v1  ;;  %3982 = vmatpush1.bf16.msra.mxu1 %v7308_v32  ;;  %v394_v44 = vadd.f32 %v393_v41, %v8445_v36  ;;  %v298_v46 = vadd.f32 %v297_v38, %v8445_v36  ;;  %v7329_v38 = vld [vmem:[%s10729_s3 + $0x128] ss:$16 sps:$4 sm:$0xff]  }
  0xdc   :  { %3983 = vmatprep.subr.bf16.mxu1 %v7316_v34  ;;  %v1385_v52 = vmax.f32 %v392_v40, 0.0  ;;  %v1257_v58 = vmax.f32 %v296_v43, 0.0  ;;  %v7281_v34 = vld [vmem:[%s10729_s3 + $0x220] ss:$16 sps:$4 sm:$0xff]   ;;  %v7337_v43 = vld [vmem:[%s10729_s3 + $0x14c] ss:$16 sps:$4 sm:$0xff]  }
  0xdd   :  { %v301_v47 = vpop.f32.mrb[2].mxu0  ;;  %v397_v48 = vpop.f32.mrb[2].mxu1  ;;  %v1386_v60 = vmax.f32 %v394_v44, 0.0  ;;  %v1258_v63 = vmax.f32 %v298_v46, 0.0 }
  0xde   :  { %v302_v49 = vadd.f32 %v301_v47, %v8438_v33  ;;  %v303_v50 = vpop.f32.mrb[3].mxu0  ;;  %6185 = vmatmul.mubr.msk.f32.gmra.mrb[108].mxu1 %vm115_vm1, %v7713_v51  ;;  %v398_v53 = vadd.f32 %v397_v48, %v8438_v33  ;;  %v399_v54 = vpop.f32.mrb[3].mxu1  ;;  %v7716_v51 = vld [vmem:[%s10728_s0 + $0x48] sm:$0xff] }
  0xdf   :  { %v304_v55 = vadd.f32 %v303_v50, %v8445_v36  ;;  %1106 = vmatprep.mubr.f32.mxu1 %v7740_v1  ;;  %v400_v56 = vadd.f32 %v399_v54, %v8445_v36  ;;  %3984 = vmatpush1.bf16.msra.mxu1 %v7314_v42 }
  0xe0   :  { %v1265_v59 = vmax.f32 %v302_v49, 0.0  ;;  %v1393_v61 = vmax.f32 %v398_v53, 0.0  ;;  %3985 = vmatprep.subr.bf16.mxu1 %v7322_v45 }
  0xe1   :  { %v1266_v0 = vmax.f32 %v304_v55, 0.0  ;;  %v307_v2 = vpop.f32.mrb[4].mxu0  ;;  %v1394_v3 = vmax.f32 %v400_v56, 0.0  ;;  %v403_v5 = vpop.f32.mrb[4].mxu1  ;;  %v7287_v56 = vld [vmem:[%s10729_s3 + $0x240] ss:$16 sps:$4 sm:$0xff]  }
  0xe2   :  { %v8477_v6 = vpack.c.bf16 %v1265_v59, %v1257_v58  ;;  %v309_v8 = vpop.f32.mrb[5].mxu0  ;;  %6186 = vmatmul.mubr.msk.f32.gmra.mrb[110].mxu1 %vm115_vm1, %v7714_v9  ;;  %v404_v10 = vadd.f32 %v403_v5, %v8438_v33  ;;  %v405_v11 = vpop.f32.mrb[5].mxu1  ;;  %v8484_v13 = vpack.c.bf16 %v1393_v61, %v1385_v52  ;;  %v308_v12 = vadd.f32 %v307_v2, %v8438_v33  ;;  %v7295_v59 = vld [vmem:[%s10729_s3 + $0x264] ss:$16 sps:$4 sm:$0xff]   ;;  %v7335_v61 = vld [vmem:[%s10729_s3 + $0x148] ss:$16 sps:$4 sm:$0xff]  }
  0xe3   :  { %v8486_v14 = vpack.c.bf16 %v1266_v0, %v1258_v63  ;;  %1112 = vmatprep.mubr.f32.mxu1 %v7740_v1  ;;  %v406_v7 = vadd.f32 %v405_v11, %v8445_v36  ;;  %3986 = vmatpush1.bf16.msra.mxu1 %v7320_v57  ;;  %v8497_v16 = vpack.c.bf16 %v1394_v3, %v1386_v60  ;;  %v7340_v2 = vld [vmem:[%s10729_s3 + $0x16c] ss:$16 sps:$4 sm:$0xff]  }
  0xe4   :  { %3987 = vmatprep.subr.bf16.mxu1 %v7328_v62  ;;  %v310_v18 = vadd.f32 %v309_v8, %v8445_v36  ;;  %v1401_v26 = vmax.f32 %v404_v10, 0.0  ;;  %v1273_v39 = vmax.f32 %v308_v12, 0.0  ;;  %v7717_v8 = vld [vmem:[%s10728_s0 + $0x50] sm:$0xff] }
  0xe5   :  { %v313_v19 = vpop.f32.mrb[6].mxu0  ;;  %3231 = vmatprep.mubr.bf16.mxu0 %v8486_v14  ;;  %v409_v20 = vpop.f32.mrb[6].mxu1  ;;  %v1402_v41 = vmax.f32 %v406_v7, 0.0  ;;  %v7293_v7 = vld [vmem:[%s10729_s3 + $0x260] ss:$16 sps:$4 sm:$0xff]  }
  0xe6   :  { %v314_v22 = vadd.f32 %v313_v19, %v8438_v33  ;;  %v315_v24 = vpop.f32.mrb[7].mxu0  ;;  %6187 = vmatmul.mubr.msk.f32.gmra.mrb[112].mxu1 %vm115_vm1, %v7715_v25  ;;  %3232 = vmatmul.mubr.bf16.vlgmr.msra.gmra.mrb[96].mxu0 %v8477_v6  ;;  %v410_v28 = vadd.f32 %v409_v20, %v8438_v33  ;;  %v411_v31 = vpop.f32.mrb[7].mxu1  ;;  %v1274_v44 = vmax.f32 %v310_v18, 0.0  ;;  %v7301_v12 = vld [vmem:[%s10729_s3 + $0x284] ss:$16 sps:$4 sm:$0xff]  }
  0xe7   :  { %v316_v32 = vadd.f32 %v315_v24, %v8445_v36  ;;  %3393 = vmatpush1.bf16.msra.mxu0 %v7275_v4  ;;  %1118 = vmatprep.mubr.f32.mxu1 %v7740_v1  ;;  %v412_v37 = vadd.f32 %v411_v31, %v8445_v36 }
  0xe8   :  { %v1281_v40 = vmax.f32 %v314_v22, 0.0  ;;  %3394 = vmatprep.subr.bf16.mxu0 %v7283_v15  ;;  %v1409_v42 = vmax.f32 %v410_v28, 0.0  ;;  %3988 = vmatpush1.bf16.msra.mxu1 %v7326_v17  ;;  %v7338_v17 = vld [vmem:[%s10729_s3 + $0x168] ss:$16 sps:$4 sm:$0xff]   ;;  %v7346_v22 = vld [vmem:[%s10729_s3 + $0x18c] ss:$16 sps:$4 sm:$0xff]  }
  0xe9   :  { %v1282_v45 = vmax.f32 %v316_v32, 0.0  ;;  %v319_v46 = vpop.f32.mrb[8].mxu0  ;;  %v1410_v47 = vmax.f32 %v412_v37, 0.0  ;;  %v415_v48 = vpop.f32.mrb[8].mxu1  ;;  %3989 = vmatprep.subr.bf16.mxu1 %v7331_v21 }
  0xea   :  { %v8529_v49 = vpack.c.bf16 %v1281_v40, %v1273_v39  ;;  %v321_v50 = vpop.f32.mrb[9].mxu0  ;;  %6188 = vmatmul.mubr.msk.f32.gmra.mrb[114].mxu1 %vm115_vm1, %v7716_v51  ;;  %v416_v52 = vadd.f32 %v415_v48, %v8438_v33  ;;  %v417_v53 = vpop.f32.mrb[9].mxu1  ;;  %v8536_v54 = vpack.c.bf16 %v1409_v42, %v1401_v26  ;;  %v320_v58 = vadd.f32 %v319_v46, %v8438_v33  ;;  %v7344_v46 = vld [vmem:[%s10729_s3 + $0x188] ss:$16 sps:$4 sm:$0xff]   ;;  %v7349_v51 = vld [vmem:[%s10729_s3 + $0x1ac] ss:$16 sps:$4 sm:$0xff]  }
  0xeb   :  { %v8538_v55 = vpack.c.bf16 %v1282_v45, %v1274_v44  ;;  %1124 = vmatprep.mubr.f32.mxu1 %v7740_v1  ;;  %3395 = vmatpush1.bf16.msra.mxu0 %v7281_v34  ;;  %v418_v57 = vadd.f32 %v417_v53, %v8445_v36  ;;  %v8549_v60 = vpack.c.bf16 %v1410_v47, %v1402_v41  ;;  %v7299_v41 = vld [vmem:[%s10729_s3 + $0x280] ss:$16 sps:$4 sm:$0xff]   ;;  %v7307_v44 = vld [vmem:[%s10729_s3 + $0x2a4] ss:$16 sps:$4 sm:$0xff]  }
  0xec   :  { %3396 = vmatprep.subr.bf16.mxu0 %v7289_v35  ;;  %3990 = vmatpush1.bf16.msra.mxu1 %v7329_v38  ;;  %v322_v62 = vadd.f32 %v321_v50, %v8445_v36  ;;  %v1417_v9 = vmax.f32 %v416_v52, 0.0  ;;  %v1289_v18 = vmax.f32 %v320_v58, 0.0  ;;  %v7718_v35 = vld [vmem:[%s10728_s0 + $0x58] sm:$0xff] }
  0xed   :  { %v325_v63 = vpop.f32.mrb[10].mxu0  ;;  %3241 = vmatprep.mubr.bf16.mxu0 %v8538_v55  ;;  %v421_v0 = vpop.f32.mrb[10].mxu1  ;;  %3991 = vmatprep.subr.bf16.mxu1 %v7337_v43  ;;  %v1418_v20 = vmax.f32 %v418_v57, 0.0 }
  0xee   :  { %v326_v3 = vadd.f32 %v325_v63, %v8438_v33  ;;  %v327_v5 = vpop.f32.mrb[11].mxu0  ;;  %6189 = vmatmul.mubr.msk.f32.gmra.mrb[116].mxu1 %vm115_vm1, %v7717_v8  ;;  %3242 = vmatmul.mubr.bf16.gmra.mrb[100].mxu0 %v8529_v49  ;;  %v422_v10 = vadd.f32 %v421_v0, %v8438_v33  ;;  %v423_v11 = vpop.f32.mrb[11].mxu1  ;;  %v1290_v24 = vmax.f32 %v322_v62, 0.0  ;;  %v7305_v62 = vld [vmem:[%s10729_s3 + $0x2a0] ss:$16 sps:$4 sm:$0xff]  }
  0xef   :  { %v328_v4 = vadd.f32 %v327_v5, %v8445_v36  ;;  %1130 = vmatprep.mubr.f32.mxu1 %v7740_v1  ;;  %3397 = vmatpush1.bf16.msra.mxu0 %v7287_v56  ;;  %v424_v15 = vadd.f32 %v423_v11, %v8445_v36  ;;  %v7719_v56 = vld [vmem:[%s10728_s0 + $0x60] sm:$0xff] }
  0xf0   :  { %v1297_v19 = vmax.f32 %v326_v3, 0.0  ;;  %3398 = vmatprep.subr.bf16.mxu0 %v7295_v59  ;;  %v1425_v21 = vmax.f32 %v422_v10, 0.0  ;;  %3992 = vmatpush1.bf16.msra.mxu1 %v7335_v61  ;;  %v7313_v0 = vld [vmem:[%s10729_s3 + $0x2c4] ss:$16 sps:$4 sm:$0xff]   ;;  %v7355_v10 = vld [vmem:[%s10729_s3 + $0x1cc] ss:$16 sps:$4 sm:$0xff]  }
  0xf1   :  { %v1298_v25 = vmax.f32 %v328_v4, 0.0  ;;  %v331_v26 = vpop.f32.mrb[12].mxu0  ;;  %v1426_v28 = vmax.f32 %v424_v15, 0.0  ;;  %v427_v31 = vpop.f32.mrb[12].mxu1  ;;  %3993 = vmatprep.subr.bf16.mxu1 %v7340_v2  ;;  %v7347_v2 = vld [vmem:[%s10729_s3 + $0x1a8] ss:$16 sps:$4 sm:$0xff]  }
  0xf2   :  { %v8581_v32 = vpack.c.bf16 %v1297_v19, %v1289_v18  ;;  %v333_v34 = vpop.f32.mrb[13].mxu0  ;;  %6190 = vmatmul.mubr.msk.f32.gmra.mrb[118].mxu1 %vm115_vm1, %v7718_v35  ;;  %v428_v37 = vadd.f32 %v427_v31, %v8438_v33  ;;  %v429_v38 = vpop.f32.mrb[13].mxu1  ;;  %v8588_v39 = vpack.c.bf16 %v1425_v21, %v1417_v9  ;;  %v332_v43 = vadd.f32 %v331_v26, %v8438_v33  ;;  %v7720_v19 = vld [vmem:[%s10728_s0 + $0x68] sm:$0xff]  ;;  %v7319_v31 = vld [vmem:[%s10729_s3 + $0x2e4] ss:$16 sps:$4 sm:$0xff]  }
  0xf3   :  { %v8590_v40 = vpack.c.bf16 %v1298_v25, %v1290_v24  ;;  %1136 = vmatprep.mubr.f32.mxu1 %v7740_v1  ;;  %3399 = vmatpush1.bf16.msra.mxu0 %v7293_v7  ;;  %v430_v42 = vadd.f32 %v429_v38, %v8445_v36  ;;  %v8601_v45 = vpack.c.bf16 %v1426_v28, %v1418_v20  ;;  %v7311_v25 = vld [vmem:[%s10729_s3 + $0x2c0] ss:$16 sps:$4 sm:$0xff]   ;;  %v7353_v35 = vld [vmem:[%s10729_s3 + $0x1c8] ss:$16 sps:$4 sm:$0xff]  }
  0xf4   :  { %3400 = vmatprep.subr.bf16.mxu0 %v7301_v12  ;;  %3994 = vmatpush1.bf16.msra.mxu1 %v7338_v17  ;;  %v334_v47 = vadd.f32 %v333_v34, %v8445_v36  ;;  %v1433_v57 = vmax.f32 %v428_v37, 0.0  ;;  %v1305_v3 = vmax.f32 %v332_v43, 0.0 }
  0xf5   :  { %v337_v48 = vpop.f32.mrb[14].mxu0  ;;  %3251 = vmatprep.mubr.bf16.mxu0 %v8590_v40  ;;  %v433_v50 = vpop.f32.mrb[14].mxu1  ;;  %3995 = vmatprep.subr.bf16.mxu1 %v7346_v22  ;;  %v1434_v8 = vmax.f32 %v430_v42, 0.0  ;;  %v7358_v42 = vld [vmem:[%s10729_s3 + $0x1ec] ss:$16 sps:$4 sm:$0xff]  }
  0xf6   :  { %v338_v52 = vadd.f32 %v337_v48, %v8438_v33  ;;  %v339_v53 = vpop.f32.mrb[15].mxu0  ;;  %6191 = vmatmul.mubr.msk.f32.gmra.mrb[120].mxu1 %vm115_vm1, %v7719_v56  ;;  %3252 = vmatmul.mubr.bf16.gmra.mrb[104].mxu0 %v8581_v32  ;;  %v434_v58 = vadd.f32 %v433_v50, %v8438_v33  ;;  %v435_v59 = vpop.f32.mrb[15].mxu1  ;;  %v1306_v11 = vmax.f32 %v334_v47, 0.0  ;;  %v7325_v56 = vld [vmem:[%s10729_s3 + $0x304] ss:$16 sps:$4 sm:$0xff]  }
  0xf7   :  { %v340_v61 = vadd.f32 %v339_v53, %v8445_v36  ;;  %1142 = vmatprep.mubr.f32.mxu1 %v7740_v1  ;;  %3401 = vmatpush1.bf16.msra.mxu0 %v7299_v41  ;;  %v436_v63 = vadd.f32 %v435_v59, %v8445_v36  ;;  %v7317_v53 = vld [vmem:[%s10729_s3 + $0x2e0] ss:$16 sps:$4 sm:$0xff]  }
  0xf8   :  { %v1313_v5 = vmax.f32 %v338_v52, 0.0  ;;  %3402 = vmatprep.subr.bf16.mxu0 %v7307_v44  ;;  %v1441_v9 = vmax.f32 %v434_v58, 0.0  ;;  %3996 = vmatpush1.bf16.msra.mxu1 %v7344_v46  ;;  %v7721_v46 = vld [vmem:[%s10728_s0 + $0x70] sm:$0xff] }
  0xf9   :  { %v1314_v4 = vmax.f32 %v340_v61, 0.0  ;;  %v343_v7 = vpop.f32.mrb[16].mxu0  ;;  %v1442_v12 = vmax.f32 %v436_v63, 0.0  ;;  %v439_v15 = vpop.f32.mrb[16].mxu1  ;;  %3997 = vmatprep.subr.bf16.mxu1 %v7349_v51  ;;  %v7376_v63 = vld [vmem:[%s10729_s3 + $0x20c] ss:$16 sps:$4 sm:$0xff]  }
  0xfa   :  { %v8633_v17 = vpack.c.bf16 %v1313_v5, %v1305_v3  ;;  %v345_v18 = vpop.f32.mrb[17].mxu0  ;;  %6192 = vmatmul.mubr.msk.f32.gmra.mrb[122].mxu1 %vm115_vm1, %v7720_v19  ;;  %v440_v20 = vadd.f32 %v439_v15, %v8438_v33  ;;  %v441_v21 = vpop.f32.mrb[17].mxu1  ;;  %v8640_v22 = vpack.c.bf16 %v1441_v9, %v1433_v57  ;;  %v344_v28 = vadd.f32 %v343_v7, %v8438_v33  ;;  %v7356_v57 = vld [vmem:[%s10729_s3 + $0x1e8] ss:$16 sps:$4 sm:$0xff]   ;;  %v7323_v19 = vld [vmem:[%s10729_s3 + $0x300] ss:$16 sps:$4 sm:$0xff]  }
  0xfb   :  { %v8642_v24 = vpack.c.bf16 %v1314_v4, %v1306_v11  ;;  %1148 = vmatprep.mubr.f32.mxu1 %v7740_v1  ;;  %3403 = vmatpush1.bf16.msra.mxu0 %v7305_v62  ;;  %v442_v26 = vadd.f32 %v441_v21, %v8445_v36  ;;  %v8653_v34 = vpack.c.bf16 %v1442_v12, %v1434_v8  ;;  %v7722_v11 = vld [vmem:[%s10728_s0 + $0x78] sm:$0xff]  ;;  %v7334_v21 = vld [vmem:[%s10729_s3 + $0x324] ss:$16 sps:$4 sm:$0xff]  }
  0xfc   :  { %10790 = vst [vmem:[#allocation5_spill] sm:$0xff] %v8640_v22  ;;  %3404 = vmatprep.subr.bf16.mxu0 %v7313_v0  ;;  %3998 = vmatpush1.bf16.msra.mxu1 %v7347_v2  ;;  %v346_v37 = vadd.f32 %v345_v18, %v8445_v36  ;;  %v1449_v47 = vmax.f32 %v440_v20, 0.0  ;;  %v1321_v58 = vmax.f32 %v344_v28, 0.0 }
  0xfd   :  { %v349_v38 = vpop.f32.mrb[18].mxu0  ;;  %3261 = vmatprep.mubr.bf16.mxu0 %v8642_v24  ;;  %v445_v41 = vpop.f32.mrb[18].mxu1  ;;  %3999 = vmatprep.subr.bf16.mxu1 %v7355_v10  ;;  %v1450_v61 = vmax.f32 %v442_v26, 0.0 }
  0xfe   :  { %v350_v43 = vadd.f32 %v349_v38, %v8438_v33  ;;  %v351_v44 = vpop.f32.mrb[19].mxu0  ;;  %6193 = vmatmul.mubr.msk.f32.gmra.mrb[124].mxu1 %vm115_vm1, %v7721_v46  ;;  %3262 = vmatmul.mubr.bf16.gmra.mrb[108].mxu0 %v8633_v17  ;;  %v446_v48 = vadd.f32 %v445_v41, %v8438_v33  ;;  %v447_v50 = vpop.f32.mrb[19].mxu1  ;;  %v1322_v0 = vmax.f32 %v346_v37, 0.0  ;;  %v7723_v38 = vld [vmem:[%s10728_s0 + $0x80] sm:$0xff] }
  0xff   :  { %v352_v51 = vadd.f32 %v351_v44, %v8445_v36  ;;  %1154 = vmatprep.mubr.f32.mxu1 %v7740_v1  ;;  %3405 = vmatpush1.bf16.msra.mxu0 %v7311_v25  ;;  %v448_v52 = vadd.f32 %v447_v50, %v8445_v36 }
 0x100   :  { %v1329_v59 = vmax.f32 %v350_v43, 0.0  ;;  %v1457_v62 = vmax.f32 %v446_v48, 0.0  ;;  %3406 = vmatprep.subr.bf16.mxu0 %v7319_v31  ;;  %4000 = vmatpush1.bf16.msra.mxu1 %v7353_v35 }
 0x101   :  { %v1330_v2 = vmax.f32 %v352_v51, 0.0  ;;  %v355_v3 = vpop.f32.mrb[20].mxu0  ;;  %v1458_v5 = vmax.f32 %v448_v52, 0.0  ;;  %v451_v8 = vpop.f32.mrb[20].mxu1  ;;  %4001 = vmatprep.subr.bf16.mxu1 %v7358_v42 }
 0x102   :  { %v8685_v9 = vpack.c.bf16 %v1329_v59, %v1321_v58  ;;  %v357_v10 = vpop.f32.mrb[21].mxu0  ;;  %6194 = vmatmul.mubr.msk.f32.gmra.mrb[126].mxu1 %vm115_vm1, %v7722_v11  ;;  %v452_v4 = vadd.f32 %v451_v8, %v8438_v33  ;;  %v453_v7 = vpop.f32.mrb[21].mxu1  ;;  %v8692_v12 = vpack.c.bf16 %v1457_v62, %v1449_v47  ;;  %v356_v20 = vadd.f32 %v355_v3, %v8438_v33  ;;  %v7332_v47 = vld [vmem:[%s10729_s3 + $0x320] ss:$16 sps:$4 sm:$0xff]  }
 0x103   :  { %v8694_v15 = vpack.c.bf16 %v1330_v2, %v1322_v0  ;;  %1160 = vmatprep.mubr.f32.mxu1 %v7740_v1  ;;  %3407 = vmatpush1.bf16.msra.mxu0 %v7317_v53  ;;  %v454_v18 = vadd.f32 %v453_v7, %v8445_v36  ;;  %v8705_v25 = vpack.c.bf16 %v1458_v5, %v1450_v61  ;;  %v7343_v53 = vld [vmem:[%s10729_s3 + $0x344] ss:$16 sps:$4 sm:$0xff]   ;;  %v7724_v0 = vld [vmem:[%s10728_s0 + $0x88] sm:$0xff]  ;;  %v7341_v11 = vld [vmem:[%s10729_s3 + $0x340] ss:$16 sps:$4 sm:$0xff]  }
 0x104   :  { %3408 = vmatprep.subr.bf16.mxu0 %v7325_v56  ;;  %4002 = vmatpush1.bf16.msra.mxu1 %v7356_v57  ;;  %v358_v26 = vadd.f32 %v357_v10, %v8445_v36  ;;  %v1465_v41 = vmax.f32 %v452_v4, 0.0  ;;  %v1337_v48 = vmax.f32 %v356_v20, 0.0  ;;  %v7352_v7 = vld [vmem:[%s10729_s3 + $0x364] ss:$16 sps:$4 sm:$0xff]  }
 0x105   :  { %10791 = vst [vmem:[#allocation6_spill] sm:$0xff] %v8705_v25  ;;  %v361_v28 = vpop.f32.mrb[22].mxu0  ;;  %3271 = vmatprep.mubr.bf16.mxu0 %v8694_v15  ;;  %v457_v31 = vpop.f32.mrb[22].mxu1  ;;  %4164 = vmatprep.subr.bf16.mxu1 %v7376_v63  ;;  %v1466_v51 = vmax.f32 %v454_v18, 0.0 }
 0x106   :  { %v362_v35 = vadd.f32 %v361_v28, %v8438_v33  ;;  %v363_v37 = vpop.f32.mrb[23].mxu0  ;;  %6195 = vmatmul.mubr.msk.f32.gmra.mrb[128].mxu1 %vm115_vm1, %v7723_v38  ;;  %3272 = vmatmul.mubr.bf16.gmra.mrb[112].mxu0 %v8685_v9  ;;  %v458_v42 = vadd.f32 %v457_v31, %v8438_v33  ;;  %v459_v43 = vpop.f32.mrb[23].mxu1  ;;  %v1338_v56 = vmax.f32 %v358_v26, 0.0  ;;  %v7725_v31 = vld [vmem:[%s10728_s0 + $0x90] sm:$0xff] }
 0x107   :  { %v364_v44 = vadd.f32 %v363_v37, %v8445_v36  ;;  %1166 = vmatprep.mubr.f32.mxu1 %v7740_v1  ;;  %v460_v46 = vadd.f32 %v459_v43, %v8445_v36  ;;  %3409 = vmatpush1.bf16.msra.mxu0 %v7323_v19  ;;  %v10737_v43 = vsub.s32 2, %v8401_v23 }
 0x108   :  { %v1345_v50 = vmax.f32 %v362_v35, 0.0  ;;  %v1473_v52 = vmax.f32 %v458_v42, 0.0  ;;  %3410 = vmatprep.subr.bf16.mxu0 %v7334_v21 }
 0x109   :  { %v1346_v57 = vmax.f32 %v364_v44, 0.0  ;;  %v367_v58 = vpop.f32.mrb[24].mxu0  ;;  %v1474_v59 = vmax.f32 %v460_v46, 0.0  ;;  %v463_v61 = vpop.f32.mrb[24].mxu1  ;;  %v7350_v44 = vld [vmem:[%s10729_s3 + $0x360] ss:$16 sps:$4 sm:$0xff]  }
 0x10a   :  { %v8725_v62 = vpack.c.bf16 %v1345_v50, %v1337_v48  ;;  %v369_v63 = vpop.f32.mrb[25].mxu0  ;;  %6196 = vmatmul.mubr.msk.f32.gmra.mrb[130].mxu1 %vm115_vm1, %v7724_v0  ;;  %v464_v2 = vadd.f32 %v463_v61, %v8438_v33  ;;  %v465_v3 = vpop.f32.mrb[25].mxu1  ;;  %v8732_v5 = vpack.c.bf16 %v1473_v52, %v1465_v41  ;;  %v368_v4 = vadd.f32 %v367_v58, %v8438_v33  ;;  %v7726_v0 = vld [vmem:[%s10728_s0 + $0x98] sm:$0xff] }
 0x10b   :  { %v8734_v8 = vpack.c.bf16 %v1346_v57, %v1338_v56  ;;  %1172 = vmatprep.mubr.f32.mxu1 %v7740_v1  ;;  %v466_v10 = vadd.f32 %v465_v3, %v8445_v36  ;;  %3411 = vmatpush1.bf16.msra.mxu0 %v7332_v47  ;;  %v8745_v18 = vpack.c.bf16 %v1474_v59, %v1466_v51  ;;  %v7361_v51 = vld [vmem:[%s10729_s3 + $0x384] ss:$16 sps:$4 sm:$0xff]   ;;  %v85_v59 = vsub.s32 4, %v8401_v23 }
 0x10c   :  { %3412 = vmatprep.subr.bf16.mxu0 %v7343_v53  ;;  %v370_v19 = vadd.f32 %v369_v63, %v8445_v36  ;;  %v1481_v35 = vmax.f32 %v464_v2, 0.0  ;;  %v1353_v46 = vmax.f32 %v368_v4, 0.0 }
 0x10d   :  { %v373_v20 = vpop.f32.mrb[26].mxu0  ;;  %3281 = vmatprep.mubr.bf16.mxu0 %v8734_v8  ;;  %v469_v21 = vpop.f32.mrb[26].mxu1  ;;  %v1482_v48 = vmax.f32 %v466_v10, 0.0  ;;  %v10736_v10 = vsub.s32 3, %v8401_v23 }
 0x10e   :  { %v374_v26 = vadd.f32 %v373_v20, %v8438_v33  ;;  %v375_v28 = vpop.f32.mrb[27].mxu0  ;;  %6197 = vmatmul.mubr.msk.f32.gmra.mrb[132].mxu1 %vm115_vm1, %v7725_v31  ;;  %3282 = vmatmul.mubr.bf16.gmra.mrb[116].mxu0 %v8725_v62  ;;  %v470_v37 = vadd.f32 %v469_v21, %v8438_v33  ;;  %v471_v38 = vpop.f32.mrb[27].mxu1  ;;  %v1354_v52 = vmax.f32 %v370_v19, 0.0  ;;  %v89_v19 = vsub.s32 5, %v8401_v23  ;;  %v7359_v20 = vld [vmem:[%s10729_s3 + $0x380] ss:$16 sps:$4 sm:$0xff]  }
 0x10f   :  { %v376_v41 = vadd.f32 %v375_v28, %v8445_v36  ;;  %1178 = vmatprep.mubr.f32.mxu1 %v7740_v1  ;;  %v472_v42 = vadd.f32 %v471_v38, %v8445_v36  ;;  %3413 = vmatpush1.bf16.msra.mxu0 %v7341_v11  ;;  %v8796_v38 = vrot.slane %v8423_v29, %v10737_v43 }
 0x110   :  { %v1361_v47 = vmax.f32 %v374_v26, 0.0  ;;  %v1489_v50 = vmax.f32 %v470_v37, 0.0  ;;  %3414 = vmatprep.subr.bf16.mxu0 %v7352_v7  ;;  %v7364_v26 = vld [vmem:[%s10729_s3 + $0x3a4] ss:$16 sps:$4 sm:$0xff]  }
 0x111   :  { %v1362_v53 = vmax.f32 %v376_v41, 0.0  ;;  %v379_v56 = vpop.f32.mrb[28].mxu0  ;;  %v1490_v57 = vmax.f32 %v472_v42, 0.0  ;;  %v475_v58 = vpop.f32.mrb[28].mxu1  ;;  %v8799_v41 = vrot.slane %v8423_v29, %v85_v59 }
 0x112   :  { %v8767_v61 = vpack.c.bf16 %v1361_v47, %v1353_v46  ;;  %v381_v63 = vpop.f32.mrb[29].mxu0  ;;  %6198 = vmatmul.mubr.msk.f32.gmra.mrb[134].mxu1 %vm115_vm1, %v7726_v0  ;;  %v476_v2 = vadd.f32 %v475_v58, %v8438_v33  ;;  %v477_v3 = vpop.f32.mrb[29].mxu1  ;;  %v8775_v11 = vpack.c.bf16 %v1489_v50, %v1481_v35  ;;  %v380_v21 = vadd.f32 %v379_v56, %v8438_v33  ;;  %v7727_v46 = vld [vmem:[%s10728_s0 + $0xa0] sm:$0xff] }
 0x113   :  { %v8777_v4 = vpack.c.bf16 %v1362_v53, %v1354_v52  ;;  %1184 = vmatprep.mubr.f32.mxu1 %v7740_v1  ;;  %v478_v7 = vadd.f32 %v477_v3, %v8445_v36  ;;  %3415 = vmatpush1.bf16.msra.mxu0 %v7350_v44  ;;  %v8789_v28 = vpack.c.bf16 %v1490_v57, %v1482_v48  ;;  %v7367_v0 = vld [vmem:[%s10729_s3 + $0x3c4] ss:$16 sps:$4 sm:$0xff]  }
 0x114   :  { %3416 = vmatprep.subr.bf16.mxu0 %v7361_v51  ;;  %v382_v31 = vadd.f32 %v381_v63, %v8445_v36  ;;  %v1497_v47 = vmax.f32 %v476_v2, 0.0  ;;  %v8811_v51 = vrot.slane %v8423_v29, %v10736_v10  ;;  %v8817_v56 = vrot.slane %v8423_v29, %v89_v19 }
 0x115   :  { %v385_v35 = vpop.f32.mrb[30].mxu0  ;;  %3291 = vmatprep.mubr.bf16.mxu0 %v8777_v4  ;;  %v481_v37 = vpop.f32.mrb[30].mxu1  ;;  %v1369_v57 = vmax.f32 %v380_v21, 0.0  ;;  %v1498_v59 = vmax.f32 %v478_v7, 0.0 }
 0x116   :  { %v386_v42 = vadd.f32 %v385_v35, %v8438_v33  ;;  %v387_v44 = vpop.f32.mrb[31].mxu0  ;;  %6199 = vmatmul.mubr.msk.f32.gmra.mrb[136].mxu1 %vm115_vm1, %v7727_v46  ;;  %3292 = vmatmul.mubr.bf16.gmra.mrb[120].mxu0 %v8767_v61  ;;  %v482_v48 = vadd.f32 %v481_v37, %v8438_v33  ;;  %v483_v50 = vpop.f32.mrb[31].mxu1  ;;  %v7362_v33 = vld [vmem:[%s10729_s3 + $0x3a0] ss:$16 sps:$4 sm:$0xff]   ;;  %v1370_v2 = vmax.f32 %v382_v31, 0.0 }
 0x117   :  { %v388_v52 = vadd.f32 %v387_v44, %v8445_v36  ;;  %1190 = vmatprep.mubr.f32.mxu1 %v7740_v1  ;;  %v484_v53 = vadd.f32 %v483_v50, %v8445_v36  ;;  %3417 = vmatpush1.bf16.msra.mxu0 %v7359_v20  ;;  %v7728_v20 = vld [vmem:[%s10728_s0 + $0xa8] sm:$0xff] }
 0x118   :  { %v1377_v58 = vmax.f32 %v386_v42, 0.0  ;;  %v1505_v63 = vmax.f32 %v482_v48, 0.0  ;;  %3418 = vmatprep.subr.bf16.mxu0 %v7364_v26  ;;  %v7365_v48 = vld [vmem:[%s10729_s3 + $0x3c0] ss:$16 sps:$4 sm:$0xff]  }
 0x119   :  { %v1378_v3 = vmax.f32 %v388_v52, 0.0  ;;  %v1506_v36 = vmax.f32 %v484_v53, 0.0  ;;  %v552_v35 = vpop.f32.mrb[32].mxu1  ;;  %v809_v29 = vpop.f32.mrb[32].mxu0  ;;  %v7370_v53 = vld [vmem:[%s10729_s3 + $0x3e4] ss:$16 sps:$4 sm:$0xff]  }
 0x11a   :  { %v8825_v19 = vpack.c.bf16 %v1377_v58, %v1369_v57  ;;  %6200 = vmatmul.mubr.msk.f32.gmra.mrb[138].mxu1 %vm115_vm1, %v7728_v20  ;;  %v553_v7 = vadd.f32 %v552_v35, %v8796_v38  ;;  %v810_v21 = vadd.f32 %v809_v29, %v8799_v41  ;;  %v554_v26 = vpop.f32.mrb[33].mxu1  ;;  %v811_v37 = vpop.f32.mrb[33].mxu0  ;;  %v8833_v42 = vpack.c.bf16 %v1505_v63, %v1497_v47  ;;  %v7729_v57 = vld [vmem:[%s10728_s0 + $0xb0] sm:$0xff] }
 0x11b   :  { %v8835_v31 = vpack.c.bf16 %v1378_v3, %v1370_v2  ;;  %1196 = vmatprep.mubr.f32.mxu1 %v7740_v1  ;;  %v555_v44 = vadd.f32 %v554_v26, %v8811_v51  ;;  %v812_v46 = vadd.f32 %v811_v37, %v8817_v56  ;;  %3419 = vmatpush1.bf16.msra.mxu0 %v7362_v33 }
 0x11c   :  { %3420 = vmatprep.subr.bf16.mxu0 %v7367_v0  ;;  %v8843_v50 = vpack.c.bf16 %v1506_v36, %v1498_v59  ;;  %v1259_v33 = vmax.f32 %v553_v7, 0.0  ;;  %v1261_v58 = vmax.f32 %v810_v21, 0.0  ;;  %v7368_v7 = vld [vmem:[%s10729_s3 + $0x3e0] ss:$16 sps:$4 sm:$0xff]  }
 0x11d   :  { %3301 = vmatprep.mubr.bf16.mxu0 %v8835_v31  ;;  %v558_v47 = vpop.f32.mrb[34].mxu1  ;;  %v815_v52 = vpop.f32.mrb[34].mxu0  ;;  %v1260_v3 = vmax.f32 %v555_v44, 0.0  ;;  %v1262_v36 = vmax.f32 %v812_v46, 0.0  ;;  %v7373_v44 = vld [vmem:[%s10729_s3 + $0x404] ss:$16 sps:$4 sm:$0xff]  }
 0x11e   :  { %6201 = vmatmul.mubr.msk.f32.gmra.mrb[140].mxu1 %vm115_vm1, %v7729_v57  ;;  %3302 = vmatmul.mubr.bf16.gmra.mrb[124].mxu0 %v8825_v19  ;;  %v559_v59 = vadd.f32 %v558_v47, %v8796_v38  ;;  %v816_v63 = vadd.f32 %v815_v52, %v8799_v41  ;;  %v560_v0 = vpop.f32.mrb[35].mxu1  ;;  %v817_v2 = vpop.f32.mrb[35].mxu0  ;;  %v7730_v46 = vld [vmem:[%s10728_s0 + $0xb8] sm:$0xff] }
 0x11f   :  { %3311 = vmatprep.mubr.bf16.mxu0 %v8497_v16  ;;  %1202 = vmatprep.mubr.f32.mxu1 %v7740_v1  ;;  %v561_v35 = vadd.f32 %v560_v0, %v8811_v51  ;;  %v818_v29 = vadd.f32 %v817_v2, %v8817_v56 }
 0x120   :  { %v1267_v20 = vmax.f32 %v559_v59, 0.0  ;;  %v1269_v26 = vmax.f32 %v816_v63, 0.0  ;;  %3421 = vmatpush1.bf16.msra.mxu0 %v7365_v48 }
 0x121   :  { %v1268_v21 = vmax.f32 %v561_v35, 0.0  ;;  %v1270_v37 = vmax.f32 %v818_v29, 0.0  ;;  %v564_v47 = vpop.f32.mrb[36].mxu1  ;;  %v821_v52 = vpop.f32.mrb[36].mxu0  ;;  %3422 = vmatprep.subr.bf16.mxu0 %v7370_v53 }
 0x122   :  { %6202 = vmatmul.mubr.msk.f32.gmra.mrb[142].mxu1 %vm115_vm1, %v7730_v46  ;;  %v8870_v48 = vpack.c.bf16 %v1267_v20, %v1259_v33  ;;  %v8872_v57 = vpack.c.bf16 %v1269_v26, %v1261_v58  ;;  %v565_v59 = vadd.f32 %v564_v47, %v8796_v38  ;;  %v822_v63 = vadd.f32 %v821_v52, %v8799_v41  ;;  %v566_v0 = vpop.f32.mrb[37].mxu1  ;;  %v823_v53 = vpop.f32.mrb[37].mxu0  ;;  %v7731_v20 = vld [vmem:[%s10728_s0 + $0xc0] sm:$0xff] }
 0x123   :  { %1208 = vmatprep.mubr.f32.mxu1 %v7740_v1  ;;  %v8877_v2 = vpack.c.bf16 %v1268_v21, %v1260_v3  ;;  %v8879_v35 = vpack.c.bf16 %v1270_v37, %v1262_v36  ;;  %v567_v29 = vadd.f32 %v566_v0, %v8811_v51  ;;  %v824_v46 = vadd.f32 %v823_v53, %v8817_v56 }
 0x124   :  { %10792 = vst [vmem:[#allocation7_spill] sm:$0xff] %v8870_v48  ;;  %10793 = vst [vmem:[#allocation8_spill] sm:$0xff] %v8872_v57  ;;  %3423 = vmatpush1.bf16.msra.mxu0 %v7368_v7  ;;  %v1275_v3 = vmax.f32 %v565_v59, 0.0  ;;  %v1277_v26 = vmax.f32 %v822_v63, 0.0 }
 0x125   :  { %10794 = vst [vmem:[#allocation9_spill] sm:$0xff] %v8879_v35  ;;  %v570_v33 = vpop.f32.mrb[38].mxu1  ;;  %v827_v58 = vpop.f32.mrb[38].mxu0  ;;  %3585 = vmatprep.subr.bf16.mxu0 %v7373_v44  ;;  %v1276_v7 = vmax.f32 %v567_v29, 0.0  ;;  %v1278_v52 = vmax.f32 %v824_v46, 0.0 }
 0x126   :  { %6203 = vmatmul.mubr.msk.f32.gmra.mrb[144].mxu1 %vm115_vm1, %v7731_v20  ;;  %3312 = vmatmul.mubr.bf16.gmra.mrb[128].mxu0 %v8484_v13  ;;  %v571_v36 = vadd.f32 %v570_v33, %v8796_v38  ;;  %v828_v21 = vadd.f32 %v827_v58, %v8799_v41  ;;  %v572_v37 = vpop.f32.mrb[39].mxu1  ;;  %v829_v47 = vpop.f32.mrb[39].mxu0  ;;  %v7732_v58 = vld [vmem:[%s10728_s0 + $0xc8] sm:$0xff] }
 0x127   :  { %3321 = vmatprep.mubr.bf16.mxu0 %v8549_v60  ;;  %1214 = vmatprep.mubr.f32.mxu1 %v7740_v1  ;;  %v573_v44 = vadd.f32 %v572_v37, %v8811_v51  ;;  %v830_v0 = vadd.f32 %v829_v47, %v8817_v56 }
 0x128   :  { %v1283_v53 = vmax.f32 %v571_v36, 0.0  ;;  %v1285_v20 = vmax.f32 %v828_v21, 0.0 }
 0x129   :  { %v1284_v59 = vmax.f32 %v573_v44, 0.0  ;;  %v1286_v63 = vmax.f32 %v830_v0, 0.0  ;;  %v576_v10 = vpop.f32.mrb[40].mxu1  ;;  %v833_v33 = vpop.f32.mrb[40].mxu0 }
 0x12a   :  { %6204 = vmatmul.mubr.msk.f32.gmra.mrb[146].mxu1 %vm115_vm1, %v7732_v58  ;;  %v8898_v43 = vpack.c.bf16 %v1283_v53, %v1275_v3  ;;  %v8900_v29 = vpack.c.bf16 %v1285_v20, %v1277_v26  ;;  %v577_v46 = vadd.f32 %v576_v10, %v8796_v38  ;;  %v834_v37 = vadd.f32 %v833_v33, %v8799_v41  ;;  %v578_v36 = vpop.f32.mrb[41].mxu1  ;;  %v835_v21 = vpop.f32.mrb[41].mxu0  ;;  %v7733_v10 = vld [vmem:[%s10728_s0 + $0xd0] sm:$0xff] }
 0x12b   :  { %1220 = vmatprep.mubr.f32.mxu1 %v7740_v1  ;;  %v8905_v47 = vpack.c.bf16 %v1284_v59, %v1276_v7  ;;  %v8907_v44 = vpack.c.bf16 %v1286_v63, %v1278_v52  ;;  %v579_v0 = vadd.f32 %v578_v36, %v8811_v51  ;;  %v836_v58 = vadd.f32 %v835_v21, %v8817_v56 }
 0x12c   :  { %10795 = vst [vmem:[#allocation10_spill] sm:$0xff] %v8900_v29  ;;  %v1291_v26 = vmax.f32 %v577_v46, 0.0  ;;  %v1293_v20 = vmax.f32 %v834_v37, 0.0 }
 0x12d   :  { %10796 = vst [vmem:[#allocation11_spill] sm:$0xff] %v8905_v47  ;;  %10797 = vst [vmem:[#allocation12_spill] sm:$0xff] %v8907_v44  ;;  %v582_v3 = vpop.f32.mrb[42].mxu1  ;;  %v839_v53 = vpop.f32.mrb[42].mxu0  ;;  %v1292_v33 = vmax.f32 %v579_v0, 0.0  ;;  %v1294_v36 = vmax.f32 %v836_v58, 0.0 }
 0x12e   :  { %6205 = vmatmul.mubr.msk.f32.gmra.mrb[148].mxu1 %vm115_vm1, %v7733_v10  ;;  %3322 = vmatmul.mubr.bf16.gmra.mrb[132].mxu0 %v8536_v54  ;;  %v583_v7 = vadd.f32 %v582_v3, %v8796_v38  ;;  %v840_v52 = vadd.f32 %v839_v53, %v8799_v41  ;;  %v584_v59 = vpop.f32.mrb[43].mxu1  ;;  %v841_v63 = vpop.f32.mrb[43].mxu0  ;;  %v7734_v53 = vld [vmem:[%s10728_s0 + $0xd8] sm:$0xff] }
 0x12f   :  { %3331 = vmatprep.mubr.bf16.mxu0 %v8601_v45  ;;  %1226 = vmatprep.mubr.f32.mxu1 %v7740_v1  ;;  %v585_v21 = vadd.f32 %v584_v59, %v8811_v51  ;;  %v842_v10 = vadd.f32 %v841_v63, %v8817_v56 }
 0x130   :  { %v1299_v30 = vmax.f32 %v583_v7, 0.0  ;;  %v1301_v27 = vmax.f32 %v840_v52, 0.0 }
 0x131   :  { %v1300_v46 = vmax.f32 %v585_v21, 0.0  ;;  %v1302_v37 = vmax.f32 %v842_v10, 0.0  ;;  %v588_v29 = vpop.f32.mrb[44].mxu1  ;;  %v845_v3 = vpop.f32.mrb[44].mxu0 }
 0x132   :  { %6206 = vmatmul.mubr.msk.f32.gmra.mrb[150].mxu1 %vm115_vm1, %v7734_v53  ;;  %v8926_v44 = vpack.c.bf16 %v1299_v30, %v1291_v26  ;;  %v8928_v0 = vpack.c.bf16 %v1301_v27, %v1293_v20  ;;  %v589_v58 = vadd.f32 %v588_v29, %v8796_v38  ;;  %v846_v59 = vadd.f32 %v845_v3, %v8799_v41  ;;  %v590_v7 = vpop.f32.mrb[45].mxu1  ;;  %v847_v52 = vpop.f32.mrb[45].mxu0  ;;  %v7735_v27 = vld [vmem:[%s10728_s0 + $0xe0] sm:$0xff] }
 0x133   :  { %1232 = vmatprep.mubr.f32.mxu1 %v7740_v1  ;;  %v8933_v63 = vpack.c.bf16 %v1300_v46, %v1292_v33  ;;  %v8935_v21 = vpack.c.bf16 %v1302_v37, %v1294_v36  ;;  %v591_v10 = vadd.f32 %v590_v7, %v8811_v51  ;;  %v848_v53 = vadd.f32 %v847_v52, %v8817_v56 }
 0x134   :  { %10798 = vst [vmem:[#allocation13_spill] sm:$0xff] %v8928_v0  ;;  %v1307_v29 = vmax.f32 %v589_v58, 0.0  ;;  %v1309_v20 = vmax.f32 %v846_v59, 0.0 }
 0x135   :  { %10799 = vst [vmem:[#allocation14_spill] sm:$0xff] %v8935_v21  ;;  %v594_v30 = vpop.f32.mrb[46].mxu1  ;;  %v851_v26 = vpop.f32.mrb[46].mxu0  ;;  %v1308_v3 = vmax.f32 %v591_v10, 0.0  ;;  %v1310_v7 = vmax.f32 %v848_v53, 0.0 }
 0x136   :  { %6207 = vmatmul.mubr.msk.f32.gmra.mrb[152].mxu1 %vm115_vm1, %v7735_v27  ;;  %3332 = vmatmul.mubr.bf16.gmra.mrb[136].mxu0 %v8588_v39  ;;  %v595_v33 = vadd.f32 %v594_v30, %v8796_v38  ;;  %v852_v36 = vadd.f32 %v851_v26, %v8799_v41  ;;  %v596_v46 = vpop.f32.mrb[47].mxu1  ;;  %v853_v37 = vpop.f32.mrb[47].mxu0  ;;  %v7736_v26 = vld [vmem:[%s10728_s0 + $0xe8] sm:$0xff] }
 0x137   :  { %3341 = vmatprep.mubr.bf16.mxu0 %v8653_v34  ;;  %1238 = vmatprep.mubr.f32.mxu1 %v7740_v1  ;;  %v597_v52 = vadd.f32 %v596_v46, %v8811_v51  ;;  %v854_v27 = vadd.f32 %v853_v37, %v8817_v56 }
 0x138   :  { %v1315_v0 = vmax.f32 %v595_v33, 0.0  ;;  %v1317_v21 = vmax.f32 %v852_v36, 0.0 }
 0x139   :  { %v1316_v58 = vmax.f32 %v597_v52, 0.0  ;;  %v1318_v59 = vmax.f32 %v854_v27, 0.0  ;;  %v600_v57 = vpop.f32.mrb[48].mxu1  ;;  %v857_v30 = vpop.f32.mrb[48].mxu0 }
 0x13a   :  { %6208 = vmatmul.mubr.msk.f32.gmra.mrb[154].mxu1 %vm115_vm1, %v7736_v26  ;;  %v8954_v35 = vpack.c.bf16 %v1315_v0, %v1307_v29  ;;  %v8956_v10 = vpack.c.bf16 %v1317_v21, %v1309_v20  ;;  %v601_v53 = vadd.f32 %v600_v57, %v8796_v38  ;;  %v858_v46 = vadd.f32 %v857_v30, %v8799_v41  ;;  %v602_v33 = vpop.f32.mrb[49].mxu1  ;;  %v859_v36 = vpop.f32.mrb[49].mxu0  ;;  %v7737_v57 = vld [vmem:[%s10728_s0 + $0xf0] sm:$0xff] }
 0x13b   :  { %1244 = vmatprep.mubr.f32.mxu1 %v7740_v1  ;;  %v8961_v37 = vpack.c.bf16 %v1316_v58, %v1308_v3  ;;  %v8963_v52 = vpack.c.bf16 %v1318_v59, %v1310_v7  ;;  %v603_v27 = vadd.f32 %v602_v33, %v8811_v51  ;;  %v860_v26 = vadd.f32 %v859_v36, %v8817_v56 }
 0x13c   :  { %10800 = vst [vmem:[#allocation15_spill] sm:$0xff] %v8956_v10  ;;  %v1323_v21 = vmax.f32 %v601_v53, 0.0  ;;  %v1325_v20 = vmax.f32 %v858_v46, 0.0 }
 0x13d   :  { %10801 = vst [vmem:[#allocation16_spill] sm:$0xff] %v8963_v52  ;;  %v606_v0 = vpop.f32.mrb[50].mxu1  ;;  %v863_v29 = vpop.f32.mrb[50].mxu0  ;;  %v1324_v30 = vmax.f32 %v603_v27, 0.0  ;;  %v1326_v33 = vmax.f32 %v860_v26, 0.0 }
 0x13e   :  { %6209 = vmatmul.mubr.msk.f32.gmra.mrb[156].mxu1 %vm115_vm1, %v7737_v57  ;;  %3342 = vmatmul.mubr.bf16.gmra.mrb[140].mxu0 %v8640_v22  ;;  %v607_v3 = vadd.f32 %v606_v0, %v8796_v38  ;;  %v864_v7 = vadd.f32 %v863_v29, %v8799_v41  ;;  %v608_v58 = vpop.f32.mrb[51].mxu1  ;;  %v865_v59 = vpop.f32.mrb[51].mxu0  ;;  %v7738_v29 = vld [vmem:[%s10728_s0 + $0xf8] sm:$0xff] }
 0x13f   :  { %3351 = vmatprep.mubr.bf16.mxu0 %v8705_v25  ;;  %1250 = vmatprep.mubr.f32.mxu1 %v7740_v1  ;;  %v609_v36 = vadd.f32 %v608_v58, %v8811_v51  ;;  %v866_v57 = vadd.f32 %v865_v59, %v8817_v56 }
 0x140   :  { %v1331_v10 = vmax.f32 %v607_v3, 0.0  ;;  %v1333_v52 = vmax.f32 %v864_v7, 0.0 }
 0x141   :  { %v1332_v53 = vmax.f32 %v609_v36, 0.0  ;;  %v1334_v46 = vmax.f32 %v866_v57, 0.0  ;;  %v612_v22 = vpop.f32.mrb[52].mxu1  ;;  %v869_v0 = vpop.f32.mrb[52].mxu0 }
 0x142   :  { %6210 = vmatmul.mubr.msk.f32.gmra.mrb[158].mxu1 %vm115_vm1, %v7738_v29  ;;  %v8982_v25 = vpack.c.bf16 %v1331_v10, %v1323_v21  ;;  %v8984_v1 = vpack.c.bf16 %v1333_v52, %v1325_v20  ;;  %v613_v27 = vadd.f32 %v612_v22, %v8796_v38  ;;  %v870_v26 = vadd.f32 %v869_v0, %v8799_v41  ;;  %v614_v3 = vpop.f32.mrb[53].mxu1  ;;  %v871_v7 = vpop.f32.mrb[53].mxu0  ;;  %v7374_v10 = vld [vmem:[%s10729_s3 + $0x208] ss:$16 sps:$4 sm:$0xff]   ;;  %v7382_v21 = vld [vmem:[%s10729_s3 + $0x22c] ss:$16 sps:$4 sm:$0xff]  }
 0x143   :  { %4003 = vmatprep.mubr.bf16.mxu1 %v8486_v14  ;;  %v8989_v58 = vpack.c.bf16 %v1332_v53, %v1324_v30  ;;  %v8991_v59 = vpack.c.bf16 %v1334_v46, %v1326_v33  ;;  %v615_v36 = vadd.f32 %v614_v3, %v8811_v51  ;;  %v872_v57 = vadd.f32 %v871_v7, %v8817_v56 }
 0x144   :  { %10802 = vst [vmem:[#allocation17_spill] sm:$0xff] %v8984_v1  ;;  %v1339_v14 = vmax.f32 %v613_v27, 0.0  ;;  %v1341_v20 = vmax.f32 %v870_v26, 0.0  ;;  %v7380_v27 = vld [vmem:[%s10729_s3 + $0x228] ss:$16 sps:$4 sm:$0xff]  }
 0x145   :  { %10803 = vst [vmem:[#allocation18_spill] sm:$0xff] %v8991_v59  ;;  %v618_v52 = vpop.f32.mrb[54].mxu1  ;;  %v875_v22 = vpop.f32.mrb[54].mxu0  ;;  %v1340_v0 = vmax.f32 %v615_v36, 0.0  ;;  %v1342_v29 = vmax.f32 %v872_v57, 0.0 }
 0x146   :  { %3352 = vmatmul.mubr.bf16.gmra.mrb[144].mxu0 %v8692_v12  ;;  %4004 = vmatmul.mubr.bf16.vlgmr.msra.gmra.mrb[160].mxu1 %v8477_v6  ;;  %v619_v30 = vadd.f32 %v618_v52, %v8796_v38  ;;  %v876_v33 = vadd.f32 %v875_v22, %v8799_v41  ;;  %v620_v53 = vpop.f32.mrb[55].mxu1  ;;  %v877_v46 = vpop.f32.mrb[55].mxu0 }
 0x147   :  { %3361 = vmatprep.mubr.bf16.mxu0 %v8745_v18  ;;  %4013 = vmatprep.mubr.bf16.mxu1 %v8538_v55  ;;  %v621_v3 = vadd.f32 %v620_v53, %v8811_v51  ;;  %v878_v7 = vadd.f32 %v877_v46, %v8817_v56  ;;  %v7388_v55 = vld [vmem:[%s10729_s3 + $0x24c] ss:$16 sps:$4 sm:$0xff]  }
 0x148   :  { %v1347_v1 = vmax.f32 %v619_v30, 0.0  ;;  %v1349_v6 = vmax.f32 %v876_v33, 0.0  ;;  %4165 = vmatpush1.bf16.msra.mxu1 %v7374_v10 }
 0x149   :  { %v1348_v26 = vmax.f32 %v621_v3, 0.0  ;;  %v1350_v52 = vmax.f32 %v878_v7, 0.0  ;;  %v624_v22 = vpop.f32.mrb[56].mxu1  ;;  %v881_v59 = vpop.f32.mrb[56].mxu0  ;;  %4166 = vmatprep.subr.bf16.mxu1 %v7382_v21 }
 0x14a   :  { %v9015_v36 = vpack.c.bf16 %v1347_v1, %v1339_v14  ;;  %v9017_v57 = vpack.c.bf16 %v1349_v6, %v1341_v20  ;;  %v625_v30 = vadd.f32 %v624_v22, %v8796_v38  ;;  %v882_v10 = vadd.f32 %v881_v59, %v8799_v41  ;;  %v626_v33 = vpop.f32.mrb[57].mxu1  ;;  %v883_v53 = vpop.f32.mrb[57].mxu0  ;;  %v7386_v1 = vld [vmem:[%s10729_s3 + $0x248] ss:$16 sps:$4 sm:$0xff]   ;;  %v7394_v59 = vld [vmem:[%s10729_s3 + $0x26c] ss:$16 sps:$4 sm:$0xff]  }
 0x14b   :  { %v9021_v46 = vpack.c.bf16 %v1348_v26, %v1340_v0  ;;  %v9023_v3 = vpack.c.bf16 %v1350_v52, %v1342_v29  ;;  %v627_v21 = vadd.f32 %v626_v33, %v8811_v51  ;;  %v884_v7 = vadd.f32 %v883_v53, %v8817_v56 }
 0x14c   :  { %10804 = vst [vmem:[#allocation19_spill] sm:$0xff] %v9017_v57  ;;  %4167 = vmatpush1.bf16.msra.mxu1 %v7380_v27  ;;  %v1355_v0 = vmax.f32 %v625_v30, 0.0  ;;  %v1357_v29 = vmax.f32 %v882_v10, 0.0  ;;  %v7392_v30 = vld [vmem:[%s10729_s3 + $0x268] ss:$16 sps:$4 sm:$0xff]  }
 0x14d   :  { %10805 = vst [vmem:[#allocation20_spill] sm:$0xff] %v9023_v3  ;;  %v630_v14 = vpop.f32.mrb[58].mxu1  ;;  %v887_v20 = vpop.f32.mrb[58].mxu0  ;;  %4168 = vmatprep.subr.bf16.mxu1 %v7388_v55  ;;  %v1356_v22 = vmax.f32 %v627_v21, 0.0  ;;  %v1358_v55 = vmax.f32 %v884_v7, 0.0 }
 0x14e   :  { %3362 = vmatmul.mubr.bf16.gmra.mrb[148].mxu0 %v8732_v5  ;;  %4014 = vmatmul.mubr.bf16.gmra.mrb[164].mxu1 %v8529_v49  ;;  %v631_v6 = vadd.f32 %v630_v14, %v8796_v38  ;;  %v888_v27 = vadd.f32 %v887_v20, %v8799_v41  ;;  %v632_v26 = vpop.f32.mrb[59].mxu1  ;;  %v889_v52 = vpop.f32.mrb[59].mxu0 }
 0x14f   :  { %3371 = vmatprep.mubr.bf16.mxu0 %v8789_v28  ;;  %4023 = vmatprep.mubr.bf16.mxu1 %v8590_v40  ;;  %v633_v33 = vadd.f32 %v632_v26, %v8811_v51  ;;  %v890_v53 = vadd.f32 %v889_v52, %v8817_v56  ;;  %v7400_v40 = vld [vmem:[%s10729_s3 + $0x28c] ss:$16 sps:$4 sm:$0xff]  }
 0x150   :  { %v1363_v57 = vmax.f32 %v631_v6, 0.0  ;;  %v1365_v49 = vmax.f32 %v888_v27, 0.0  ;;  %4169 = vmatpush1.bf16.msra.mxu1 %v7386_v1 }
 0x151   :  { %v1364_v10 = vmax.f32 %v633_v33, 0.0  ;;  %v1366_v14 = vmax.f32 %v890_v53, 0.0  ;;  %v636_v20 = vpop.f32.mrb[60].mxu1  ;;  %v893_v3 = vpop.f32.mrb[60].mxu0  ;;  %4170 = vmatprep.subr.bf16.mxu1 %v7394_v59 }
 0x152   :  { %v9047_v21 = vpack.c.bf16 %v1363_v57, %v1355_v0  ;;  %v9049_v7 = vpack.c.bf16 %v1365_v49, %v1357_v29  ;;  %v637_v6 = vadd.f32 %v636_v20, %v8796_v38  ;;  %v894_v1 = vadd.f32 %v893_v3, %v8799_v41  ;;  %v638_v27 = vpop.f32.mrb[61].mxu1  ;;  %v895_v26 = vpop.f32.mrb[61].mxu0  ;;  %v7398_v57 = vld [vmem:[%s10729_s3 + $0x288] ss:$16 sps:$4 sm:$0xff]   ;;  %v7406_v3 = vld [vmem:[%s10729_s3 + $0x2ac] ss:$16 sps:$4 sm:$0xff]  }
 0x153   :  { %v9053_v52 = vpack.c.bf16 %v1364_v10, %v1356_v22  ;;  %v9055_v33 = vpack.c.bf16 %v1366_v14, %v1358_v55  ;;  %v639_v59 = vadd.f32 %v638_v27, %v8811_v51  ;;  %v896_v53 = vadd.f32 %v895_v26, %v8817_v56 }
 0x154   :  { %10806 = vst [vmem:[#allocation21_spill] sm:$0xff] %v9049_v7  ;;  %4171 = vmatpush1.bf16.msra.mxu1 %v7392_v30  ;;  %v1371_v22 = vmax.f32 %v637_v6, 0.0  ;;  %v1373_v55 = vmax.f32 %v894_v1, 0.0  ;;  %v7404_v6 = vld [vmem:[%s10729_s3 + $0x2a8] ss:$16 sps:$4 sm:$0xff]  }
 0x155   :  { %10807 = vst [vmem:[#allocation22_spill] sm:$0xff] %v9055_v33  ;;  %v642_v0 = vpop.f32.mrb[62].mxu1  ;;  %v899_v29 = vpop.f32.mrb[62].mxu0  ;;  %4172 = vmatprep.subr.bf16.mxu1 %v7400_v40  ;;  %v1372_v20 = vmax.f32 %v639_v59, 0.0  ;;  %v1374_v40 = vmax.f32 %v896_v53, 0.0 }
 0x156   :  { %3372 = vmatmul.mubr.bf16.gmra.mrb[152].mxu0 %v8775_v11  ;;  %4024 = vmatmul.mubr.bf16.gmra.mrb[168].mxu1 %v8581_v32  ;;  %v643_v49 = vadd.f32 %v642_v0, %v8796_v38  ;;  %v900_v30 = vadd.f32 %v899_v29, %v8799_v41  ;;  %v644_v10 = vpop.f32.mrb[63].mxu1  ;;  %v901_v14 = vpop.f32.mrb[63].mxu0 }
 0x157   :  { %3381 = vmatprep.mubr.bf16.mxu0 %v8843_v50  ;;  %4033 = vmatprep.mubr.bf16.mxu1 %v8642_v24  ;;  %v645_v27 = vadd.f32 %v644_v10, %v8811_v51  ;;  %v902_v26 = vadd.f32 %v901_v14, %v8817_v56  ;;  %v7412_v24 = vld [vmem:[%s10729_s3 + $0x2cc] ss:$16 sps:$4 sm:$0xff]  }
 0x158   :  { %v1379_v7 = vmax.f32 %v643_v49, 0.0  ;;  %v1381_v32 = vmax.f32 %v900_v30, 0.0  ;;  %4173 = vmatpush1.bf16.msra.mxu1 %v7398_v57 }
 0x159   :  { %v1380_v1 = vmax.f32 %v645_v27, 0.0  ;;  %v1382_v0 = vmax.f32 %v902_v26, 0.0  ;;  %v648_v29 = vpop.f32.mrb[64].mxu1  ;;  %v905_v33 = vpop.f32.mrb[64].mxu0  ;;  %4174 = vmatprep.subr.bf16.mxu1 %v7406_v3 }
 0x15a   :  { %v9079_v59 = vpack.c.bf16 %v1379_v7, %v1371_v22  ;;  %v9081_v53 = vpack.c.bf16 %v1381_v32, %v1373_v55  ;;  %v649_v49 = vadd.f32 %v648_v29, %v8796_v38  ;;  %v906_v57 = vadd.f32 %v905_v33, %v8799_v41  ;;  %v650_v30 = vpop.f32.mrb[65].mxu1  ;;  %v907_v10 = vpop.f32.mrb[65].mxu0  ;;  %v7410_v7 = vld [vmem:[%s10729_s3 + $0x2c8] ss:$16 sps:$4 sm:$0xff]   ;;  %v7418_v33 = vld [vmem:[%s10729_s3 + $0x2ec] ss:$16 sps:$4 sm:$0xff]  }
 0x15b   :  { %v9085_v14 = vpack.c.bf16 %v1380_v1, %v1372_v20  ;;  %v9087_v27 = vpack.c.bf16 %v1382_v0, %v1374_v40  ;;  %v651_v3 = vadd.f32 %v650_v30, %v8811_v51  ;;  %v908_v26 = vadd.f32 %v907_v10, %v8817_v56 }
 0x15c   :  { %10808 = vst [vmem:[#allocation23_spill] sm:$0xff] %v9081_v53  ;;  %4175 = vmatpush1.bf16.msra.mxu1 %v7404_v6  ;;  %v1387_v20 = vmax.f32 %v649_v49, 0.0  ;;  %v1389_v40 = vmax.f32 %v906_v57, 0.0  ;;  %v7416_v49 = vld [vmem:[%s10729_s3 + $0x2e8] ss:$16 sps:$4 sm:$0xff]  }
 0x15d   :  { %10809 = vst [vmem:[#allocation24_spill] sm:$0xff] %v9087_v27  ;;  %v654_v22 = vpop.f32.mrb[66].mxu1  ;;  %v911_v55 = vpop.f32.mrb[66].mxu0  ;;  %4176 = vmatprep.subr.bf16.mxu1 %v7412_v24  ;;  %v1388_v29 = vmax.f32 %v651_v3, 0.0  ;;  %v1390_v24 = vmax.f32 %v908_v26, 0.0 }
 0x15e   :  { %3382 = vmatmul.mubr.bf16.gmra.mrb[156].mxu0 %v8833_v42  ;;  %4034 = vmatmul.mubr.bf16.gmra.mrb[172].mxu1 %v8633_v17  ;;  %v655_v32 = vadd.f32 %v654_v22, %v8796_v38  ;;  %v912_v6 = vadd.f32 %v911_v55, %v8799_v41  ;;  %v656_v1 = vpop.f32.mrb[67].mxu1  ;;  %v913_v0 = vpop.f32.mrb[67].mxu0 }
 0x15f   :  { %3424 = vmatprep.mubr.bf16.mxu0 %v8877_v2  ;;  %4043 = vmatprep.mubr.bf16.mxu1 %v8694_v15  ;;  %v657_v30 = vadd.f32 %v656_v1, %v8811_v51  ;;  %v914_v10 = vadd.f32 %v913_v0, %v8817_v56  ;;  %v7424_v15 = vld [vmem:[%s10729_s3 + $0x30c] ss:$16 sps:$4 sm:$0xff]   ;;  %v7371_v0 = vld [vmem:[%s10729_s3 + $0x400] ss:$16 sps:$4 sm:$0xff]  }
 0x160   :  { %v1395_v53 = vmax.f32 %v655_v32, 0.0  ;;  %v1397_v17 = vmax.f32 %v912_v6, 0.0  ;;  %4177 = vmatpush1.bf16.msra.mxu1 %v7410_v7 }
 0x161   :  { %v1396_v57 = vmax.f32 %v657_v30, 0.0  ;;  %v1398_v22 = vmax.f32 %v914_v10, 0.0  ;;  %v660_v55 = vpop.f32.mrb[68].mxu1  ;;  %v917_v27 = vpop.f32.mrb[68].mxu0  ;;  %4178 = vmatprep.subr.bf16.mxu1 %v7418_v33 }
 0x162   :  { %v9111_v3 = vpack.c.bf16 %v1395_v53, %v1387_v20  ;;  %v9113_v26 = vpack.c.bf16 %v1397_v17, %v1389_v40  ;;  %v661_v32 = vadd.f32 %v660_v55, %v8796_v38  ;;  %v918_v7 = vadd.f32 %v917_v27, %v8799_v41  ;;  %v662_v6 = vpop.f32.mrb[69].mxu1  ;;  %v919_v1 = vpop.f32.mrb[69].mxu0  ;;  %v7379_v20 = vld [vmem:[%s10729_s3 + $0x424] ss:$16 sps:$4 sm:$0xff]   ;;  %v7422_v17 = vld [vmem:[%s10729_s3 + $0x308] ss:$16 sps:$4 sm:$0xff]  }
 0x163   :  { %v9120_v30 = vpack.c.bf16 %v1396_v57, %v1388_v29  ;;  %v9122_v33 = vpack.c.bf16 %v1398_v22, %v1390_v24  ;;  %v663_v10 = vadd.f32 %v662_v6, %v8811_v51  ;;  %v920_v53 = vadd.f32 %v919_v1, %v8817_v56 }
 0x164   :  { %10810 = vst [vmem:[#allocation25_spill] sm:$0xff] %v9113_v26  ;;  %4179 = vmatpush1.bf16.msra.mxu1 %v7416_v49  ;;  %v1403_v29 = vmax.f32 %v661_v32, 0.0  ;;  %v1405_v24 = vmax.f32 %v918_v7, 0.0  ;;  %v7427_v49 = vld [vmem:[%s10729_s3 + $0x32c] ss:$16 sps:$4 sm:$0xff]  }
 0x165   :  { %10811 = vst [vmem:[#allocation26_spill] sm:$0xff] %v9122_v33  ;;  %v666_v27 = vpop.f32.mrb[70].mxu1  ;;  %v923_v40 = vpop.f32.mrb[70].mxu0  ;;  %4180 = vmatprep.subr.bf16.mxu1 %v7424_v15  ;;  %v7377_v15 = vld [vmem:[%s10729_s3 + $0x420] ss:$16 sps:$4 sm:$0xff]   ;;  %v1406_v32 = vmax.f32 %v920_v53, 0.0 }
 0x166   :  { %3425 = vmatmul.mubr.bf16.vlgmr.msra.gmra.mrb[96].mxu0 %v8870_v48  ;;  %4044 = vmatmul.mubr.bf16.gmra.mrb[176].mxu1 %v8685_v9  ;;  %v667_v57 = vadd.f32 %v666_v27, %v8796_v38  ;;  %v924_v22 = vadd.f32 %v923_v40, %v8799_v41  ;;  %v668_v55 = vpop.f32.mrb[71].mxu1  ;;  %v925_v6 = vpop.f32.mrb[71].mxu0  ;;  %v1404_v9 = vmax.f32 %v663_v10, 0.0  ;;  %v7385_v27 = vld [vmem:[%s10729_s3 + $0x444] ss:$16 sps:$4 sm:$0xff]  }
 0x167   :  { %3586 = vmatpush1.bf16.msra.mxu0 %v7371_v0  ;;  %3434 = vmatprep.mubr.bf16.mxu0 %v8905_v47  ;;  %v669_v7 = vadd.f32 %v668_v55, %v8811_v51  ;;  %v926_v1 = vadd.f32 %v925_v6, %v8817_v56  ;;  %v7425_v10 = vld [vmem:[%s10729_s3 + $0x328] ss:$16 sps:$4 sm:$0xff]  }
 0x168   :  { %4053 = vmatprep.mubr.bf16.mxu1 %v8734_v8  ;;  %3587 = vmatprep.subr.bf16.mxu0 %v7379_v20  ;;  %v1411_v0 = vmax.f32 %v667_v57, 0.0  ;;  %v1413_v40 = vmax.f32 %v924_v22, 0.0 }
 0x169   :  { %v1412_v26 = vmax.f32 %v669_v7, 0.0  ;;  %v1414_v33 = vmax.f32 %v926_v1, 0.0  ;;  %v672_v47 = vpop.f32.mrb[72].mxu1  ;;  %v929_v48 = vpop.f32.mrb[72].mxu0  ;;  %4181 = vmatpush1.bf16.msra.mxu1 %v7422_v17 }
 0x16a   :  { %v9152_v53 = vpack.c.bf16 %v1411_v0, %v1403_v29  ;;  %v9154_v55 = vpack.c.bf16 %v1413_v40, %v1405_v24  ;;  %v673_v8 = vadd.f32 %v672_v47, %v8796_v38  ;;  %v930_v20 = vadd.f32 %v929_v48, %v8799_v41  ;;  %v674_v6 = vpop.f32.mrb[73].mxu1  ;;  %v931_v57 = vpop.f32.mrb[73].mxu0  ;;  %4182 = vmatprep.subr.bf16.mxu1 %v7427_v49  ;;  %v7383_v29 = vld [vmem:[%s10729_s3 + $0x440] ss:$16 sps:$4 sm:$0xff]   ;;  %v7433_v48 = vld [vmem:[%s10729_s3 + $0x34c] ss:$16 sps:$4 sm:$0xff]  }
 0x16b   :  { %3588 = vmatpush1.bf16.msra.mxu0 %v7377_v15  ;;  %v9158_v22 = vpack.c.bf16 %v1412_v26, %v1404_v9  ;;  %v9160_v7 = vpack.c.bf16 %v1414_v33, %v1406_v32  ;;  %v675_v17 = vadd.f32 %v674_v6, %v8811_v51  ;;  %v932_v1 = vadd.f32 %v931_v57, %v8817_v56  ;;  %v7391_v47 = vld [vmem:[%s10729_s3 + $0x464] ss:$16 sps:$4 sm:$0xff]   ;;  %v7431_v24 = vld [vmem:[%s10729_s3 + $0x348] ss:$16 sps:$4 sm:$0xff]   ;;  %v7436_v40 = vld [vmem:[%s10729_s3 + $0x36c] ss:$16 sps:$4 sm:$0xff]  }
 0x16c   :  { %10812 = vst [vmem:[#allocation27_spill] sm:$0xff] %v9154_v55  ;;  %3589 = vmatprep.subr.bf16.mxu0 %v7385_v27  ;;  %v1419_v49 = vmax.f32 %v673_v8, 0.0  ;;  %v1421_v15 = vmax.f32 %v930_v20, 0.0  ;;  %v7389_v20 = vld [vmem:[%s10729_s3 + $0x460] ss:$16 sps:$4 sm:$0xff]  }
 0x16d   :  { %10813 = vst [vmem:[#allocation28_spill] sm:$0xff] %v9160_v7  ;;  %v678_v26 = vpop.f32.mrb[74].mxu1  ;;  %v935_v33 = vpop.f32.mrb[74].mxu0  ;;  %4183 = vmatpush1.bf16.msra.mxu1 %v7425_v10  ;;  %v1420_v10 = vmax.f32 %v675_v17, 0.0  ;;  %v1422_v6 = vmax.f32 %v932_v1, 0.0 }
 0x16e   :  { %3435 = vmatmul.mubr.bf16.gmra.mrb[100].mxu0 %v8898_v43  ;;  %4054 = vmatmul.mubr.bf16.gmra.mrb[180].mxu1 %v8725_v62  ;;  %v679_v9 = vadd.f32 %v678_v26, %v8796_v38  ;;  %v936_v32 = vadd.f32 %v935_v33, %v8799_v41  ;;  %v680_v27 = vpop.f32.mrb[75].mxu1  ;;  %v937_v0 = vpop.f32.mrb[75].mxu0  ;;  %v7397_v57 = vld [vmem:[%s10729_s3 + $0x484] ss:$16 sps:$4 sm:$0xff]  }
 0x16f   :  { %3444 = vmatprep.mubr.bf16.mxu0 %v8933_v63  ;;  %4063 = vmatprep.mubr.bf16.mxu1 %v8777_v4  ;;  %v681_v62 = vadd.f32 %v680_v27, %v8811_v51  ;;  %v938_v8 = vadd.f32 %v937_v0, %v8817_v56 }
 0x170   :  { %3590 = vmatpush1.bf16.msra.mxu0 %v7383_v29  ;;  %v1427_v26 = vmax.f32 %v679_v9, 0.0  ;;  %v1429_v33 = vmax.f32 %v936_v32, 0.0  ;;  %4184 = vmatprep.subr.bf16.mxu1 %v7433_v48  ;;  %v7434_v29 = vld [vmem:[%s10729_s3 + $0x368] ss:$16 sps:$4 sm:$0xff]  }
 0x171   :  { %3591 = vmatprep.subr.bf16.mxu0 %v7391_v47  ;;  %v1428_v4 = vmax.f32 %v681_v62, 0.0  ;;  %v1430_v17 = vmax.f32 %v938_v8, 0.0  ;;  %v684_v1 = vpop.f32.mrb[76].mxu1  ;;  %v941_v55 = vpop.f32.mrb[76].mxu0  ;;  %4185 = vmatpush1.bf16.msra.mxu1 %v7431_v24 }
 0x172   :  { %v9196_v27 = vpack.c.bf16 %v1427_v26, %v1419_v49  ;;  %v9198_v0 = vpack.c.bf16 %v1429_v33, %v1421_v15  ;;  %v685_v7 = vadd.f32 %v684_v1, %v8796_v38  ;;  %v942_v9 = vadd.f32 %v941_v55, %v8799_v41  ;;  %v686_v32 = vpop.f32.mrb[77].mxu1  ;;  %v943_v48 = vpop.f32.mrb[77].mxu0  ;;  %4186 = vmatprep.subr.bf16.mxu1 %v7436_v40  ;;  %v7395_v49 = vld [vmem:[%s10729_s3 + $0x480] ss:$16 sps:$4 sm:$0xff]   ;;  %v7442_v55 = vld [vmem:[%s10729_s3 + $0x38c] ss:$16 sps:$4 sm:$0xff]  }
 0x173   :  { %v9202_v47 = vpack.c.bf16 %v1428_v4, %v1420_v10  ;;  %v9204_v62 = vpack.c.bf16 %v1430_v17, %v1422_v6  ;;  %v687_v24 = vadd.f32 %v686_v32, %v8811_v51  ;;  %v944_v8 = vadd.f32 %v943_v48, %v8817_v56  ;;  %v7403_v15 = vld [vmem:[%s10729_s3 + $0x4a4] ss:$16 sps:$4 sm:$0xff]   ;;  %v7440_v6 = vld [vmem:[%s10729_s3 + $0x388] ss:$16 sps:$4 sm:$0xff]   ;;  %v7445_v1 = vld [vmem:[%s10729_s3 + $0x3ac] ss:$16 sps:$4 sm:$0xff]  }
 0x174   :  { %10814 = vst [vmem:[#allocation29_spill] sm:$0xff] %v9198_v0  ;;  %3592 = vmatpush1.bf16.msra.mxu0 %v7389_v20  ;;  %v1435_v20 = vmax.f32 %v685_v7, 0.0  ;;  %v1437_v26 = vmax.f32 %v942_v9, 0.0  ;;  %v7401_v9 = vld [vmem:[%s10729_s3 + $0x4a0] ss:$16 sps:$4 sm:$0xff]  }
 0x175   :  { %10815 = vst [vmem:[#allocation30_spill] sm:$0xff] %v9204_v62  ;;  %3593 = vmatprep.subr.bf16.mxu0 %v7397_v57  ;;  %v690_v40 = vpop.f32.mrb[78].mxu1  ;;  %v947_v10 = vpop.f32.mrb[78].mxu0  ;;  %4187 = vmatpush1.bf16.msra.mxu1 %v7434_v29  ;;  %v1436_v29 = vmax.f32 %v687_v24, 0.0  ;;  %v1438_v32 = vmax.f32 %v944_v8, 0.0 }
 0x176   :  { %3445 = vmatmul.mubr.bf16.gmra.mrb[104].mxu0 %v8926_v44  ;;  %4064 = vmatmul.mubr.bf16.gmra.mrb[184].mxu1 %v8767_v61  ;;  %v691_v33 = vadd.f32 %v690_v40, %v8796_v38  ;;  %v948_v57 = vadd.f32 %v947_v10, %v8799_v41  ;;  %v692_v4 = vpop.f32.mrb[79].mxu1  ;;  %v949_v17 = vpop.f32.mrb[79].mxu0  ;;  %v7409_v10 = vld [vmem:[%s10729_s3 + $0x4c4] ss:$16 sps:$4 sm:$0xff]  }
 0x177   :  { %3454 = vmatprep.mubr.bf16.mxu0 %v8961_v37  ;;  %4073 = vmatprep.mubr.bf16.mxu1 %v8835_v31  ;;  %v693_v61 = vadd.f32 %v692_v4, %v8811_v51  ;;  %v950_v7 = vadd.f32 %v949_v17, %v8817_v56 }
 0x178   :  { %3594 = vmatpush1.bf16.msra.mxu0 %v7395_v49  ;;  %v1443_v48 = vmax.f32 %v691_v33, 0.0  ;;  %v1445_v40 = vmax.f32 %v948_v57, 0.0  ;;  %4188 = vmatprep.subr.bf16.mxu1 %v7442_v55  ;;  %v7443_v49 = vld [vmem:[%s10729_s3 + $0x3a8] ss:$16 sps:$4 sm:$0xff]  }
 0x179   :  { %3595 = vmatprep.subr.bf16.mxu0 %v7403_v15  ;;  %v1444_v31 = vmax.f32 %v693_v61, 0.0  ;;  %v1446_v24 = vmax.f32 %v950_v7, 0.0  ;;  %v696_v8 = vpop.f32.mrb[80].mxu1  ;;  %v953_v0 = vpop.f32.mrb[80].mxu0  ;;  %4189 = vmatpush1.bf16.msra.mxu1 %v7440_v6 }
 0x17a   :  { %v9240_v4 = vpack.c.bf16 %v1443_v48, %v1435_v20  ;;  %v9242_v17 = vpack.c.bf16 %v1445_v40, %v1437_v26  ;;  %v697_v33 = vadd.f32 %v696_v8, %v8796_v38  ;;  %v954_v57 = vadd.f32 %v953_v0, %v8799_v41  ;;  %v698_v62 = vpop.f32.mrb[81].mxu1  ;;  %v955_v55 = vpop.f32.mrb[81].mxu0  ;;  %4190 = vmatprep.subr.bf16.mxu1 %v7445_v1  ;;  %v7407_v20 = vld [vmem:[%s10729_s3 + $0x4c0] ss:$16 sps:$4 sm:$0xff]   ;;  %v7451_v0 = vld [vmem:[%s10729_s3 + $0x3cc] ss:$16 sps:$4 sm:$0xff]  }
 0x17b   :  { %v9246_v15 = vpack.c.bf16 %v1444_v31, %v1436_v29  ;;  %v9248_v61 = vpack.c.bf16 %v1446_v24, %v1438_v32  ;;  %v699_v6 = vadd.f32 %v698_v62, %v8811_v51  ;;  %v956_v7 = vadd.f32 %v955_v55, %v8817_v56  ;;  %v7415_v29 = vld [vmem:[%s10729_s3 + $0x4e4] ss:$16 sps:$4 sm:$0xff]   ;;  %v7449_v62 = vld [vmem:[%s10729_s3 + $0x3c8] ss:$16 sps:$4 sm:$0xff]   ;;  %v7454_v24 = vld [vmem:[%s10729_s3 + $0x3ec] ss:$16 sps:$4 sm:$0xff]  }
 0x17c   :  { %10816 = vst [vmem:[#allocation31_spill] sm:$0xff] %v9242_v17  ;;  %3596 = vmatpush1.bf16.msra.mxu0 %v7401_v9  ;;  %v1451_v32 = vmax.f32 %v697_v33, 0.0  ;;  %v1453_v9 = vmax.f32 %v954_v57, 0.0 }
 0x17d   :  { %10817 = vst [vmem:[#allocation32_spill] sm:$0xff] %v9248_v61  ;;  %3597 = vmatprep.subr.bf16.mxu0 %v7409_v10  ;;  %v702_v26 = vpop.f32.mrb[82].mxu1  ;;  %v959_v1 = vpop.f32.mrb[82].mxu0  ;;  %4191 = vmatpush1.bf16.msra.mxu1 %v7443_v49  ;;  %v1452_v8 = vmax.f32 %v699_v6, 0.0  ;;  %v1454_v49 = vmax.f32 %v956_v7, 0.0 }
 0x17e   :  { %3455 = vmatmul.mubr.bf16.gmra.mrb[108].mxu0 %v8954_v35  ;;  %4074 = vmatmul.mubr.bf16.gmra.mrb[188].mxu1 %v8825_v19  ;;  %v703_v48 = vadd.f32 %v702_v26, %v8796_v38  ;;  %v960_v40 = vadd.f32 %v959_v1, %v8799_v41  ;;  %v704_v10 = vpop.f32.mrb[83].mxu1  ;;  %v961_v31 = vpop.f32.mrb[83].mxu0  ;;  %v7413_v26 = vld [vmem:[%s10729_s3 + $0x4e0] ss:$16 sps:$4 sm:$0xff]   ;;  %v7421_v1 = vld [vmem:[%s10729_s3 + $0x504] ss:$16 sps:$4 sm:$0xff]  }
 0x17f   :  { %3464 = vmatprep.mubr.bf16.mxu0 %v8989_v58  ;;  %4083 = vmatprep.mubr.bf16.mxu1 %v8497_v16  ;;  %v705_v19 = vadd.f32 %v704_v10, %v8811_v51  ;;  %v962_v33 = vadd.f32 %v961_v31, %v8817_v56 }
 0x180   :  { %3598 = vmatpush1.bf16.msra.mxu0 %v7407_v20  ;;  %v1459_v57 = vmax.f32 %v703_v48, 0.0  ;;  %v1461_v55 = vmax.f32 %v960_v40, 0.0  ;;  %4192 = vmatprep.subr.bf16.mxu1 %v7451_v0  ;;  %v7452_v20 = vld [vmem:[%s10729_s3 + $0x3e8] ss:$16 sps:$4 sm:$0xff]  }
 0x181   :  { %v1460_v17 = vmax.f32 %v705_v19, 0.0  ;;  %v1462_v16 = vmax.f32 %v962_v33, 0.0  ;;  %3599 = vmatprep.subr.bf16.mxu0 %v7415_v29  ;;  %v708_v6 = vpop.f32.mrb[84].mxu1  ;;  %v965_v7 = vpop.f32.mrb[84].mxu0  ;;  %4193 = vmatpush1.bf16.msra.mxu1 %v7449_v62 }
 0x182   :  { %v9284_v48 = vpack.c.bf16 %v1459_v57, %v1451_v32  ;;  %v9286_v40 = vpack.c.bf16 %v1461_v55, %v1453_v9  ;;  %v709_v10 = vadd.f32 %v708_v6, %v8796_v38  ;;  %v966_v31 = vadd.f32 %v965_v7, %v8799_v41  ;;  %v710_v61 = vpop.f32.mrb[85].mxu1  ;;  %v967_v0 = vpop.f32.mrb[85].mxu0  ;;  %4194 = vmatprep.subr.bf16.mxu1 %v7454_v24  ;;  %v7419_v32 = vld [vmem:[%s10729_s3 + $0x500] ss:$16 sps:$4 sm:$0xff]   ;;  %v7472_v9 = vld [vmem:[%s10729_s3 + $0x40c] ss:$16 sps:$4 sm:$0xff]  }
 0x183   :  { %v9290_v19 = vpack.c.bf16 %v1460_v17, %v1452_v8  ;;  %v9292_v29 = vpack.c.bf16 %v1462_v16, %v1454_v49  ;;  %v711_v62 = vadd.f32 %v710_v61, %v8811_v51  ;;  %v968_v33 = vadd.f32 %v967_v0, %v8817_v56  ;;  %v7430_v17 = vld [vmem:[%s10729_s3 + $0x524] ss:$16 sps:$4 sm:$0xff]  }
 0x184   :  { %10818 = vst [vmem:[#allocation33_spill] sm:$0xff] %v9286_v40  ;;  %3600 = vmatpush1.bf16.msra.mxu0 %v7413_v26  ;;  %v1467_v61 = vmax.f32 %v709_v10, 0.0  ;;  %v1469_v24 = vmax.f32 %v966_v31, 0.0  ;;  %v7428_v10 = vld [vmem:[%s10729_s3 + $0x520] ss:$16 sps:$4 sm:$0xff]  }
 0x185   :  { %v714_v57 = vpop.f32.mrb[86].mxu1  ;;  %v971_v55 = vpop.f32.mrb[86].mxu0  ;;  %3601 = vmatprep.subr.bf16.mxu0 %v7421_v1  ;;  %4195 = vmatpush1.bf16.msra.mxu1 %v7452_v20  ;;  %v1468_v1 = vmax.f32 %v711_v62, 0.0  ;;  %v1470_v6 = vmax.f32 %v968_v33, 0.0 }
 0x186   :  { %3465 = vmatmul.mubr.bf16.gmra.mrb[112].mxu0 %v8982_v25  ;;  %4084 = vmatmul.mubr.bf16.gmra.mrb[192].mxu1 %v8484_v13  ;;  %v715_v8 = vadd.f32 %v714_v57, %v8796_v38  ;;  %v972_v49 = vadd.f32 %v971_v55, %v8799_v41  ;;  %v716_v26 = vpop.f32.mrb[87].mxu1  ;;  %v973_v16 = vpop.f32.mrb[87].mxu0 }
 0x187   :  { %3474 = vmatprep.mubr.bf16.mxu0 %v9021_v46  ;;  %4093 = vmatprep.mubr.bf16.mxu1 %v8549_v60  ;;  %v717_v7 = vadd.f32 %v716_v26, %v8811_v51  ;;  %v974_v20 = vadd.f32 %v973_v16, %v8817_v56  ;;  %v7439_v60 = vld [vmem:[%s10729_s3 + $0x544] ss:$16 sps:$4 sm:$0xff]  }
 0x188   :  { %v1475_v0 = vmax.f32 %v715_v8, 0.0  ;;  %v1477_v13 = vmax.f32 %v972_v49, 0.0  ;;  %3602 = vmatpush1.bf16.msra.mxu0 %v7419_v32  ;;  %4357 = vmatprep.subr.bf16.mxu1 %v7472_v9 }
 0x189   :  { %v1476_v31 = vmax.f32 %v717_v7, 0.0  ;;  %v1478_v57 = vmax.f32 %v974_v20, 0.0  ;;  %v720_v55 = vpop.f32.mrb[88].mxu1  ;;  %v977_v40 = vpop.f32.mrb[88].mxu0  ;;  %3603 = vmatprep.subr.bf16.mxu0 %v7430_v17 }
 0x18a   :  { %v9319_v62 = vpack.c.bf16 %v1475_v0, %v1467_v61  ;;  %v9321_v33 = vpack.c.bf16 %v1477_v13, %v1469_v24  ;;  %v721_v32 = vadd.f32 %v720_v55, %v8796_v38  ;;  %v978_v8 = vadd.f32 %v977_v40, %v8799_v41  ;;  %v722_v49 = vpop.f32.mrb[89].mxu1  ;;  %v979_v26 = vpop.f32.mrb[89].mxu0  ;;  %v7437_v61 = vld [vmem:[%s10729_s3 + $0x540] ss:$16 sps:$4 sm:$0xff]   ;;  %v7448_v40 = vld [vmem:[%s10729_s3 + $0x564] ss:$16 sps:$4 sm:$0xff]  }
 0x18b   :  { %v9325_v9 = vpack.c.bf16 %v1476_v31, %v1468_v1  ;;  %v9327_v16 = vpack.c.bf16 %v1478_v57, %v1470_v6  ;;  %v723_v17 = vadd.f32 %v722_v49, %v8811_v51  ;;  %v980_v7 = vadd.f32 %v979_v26, %v8817_v56 }
 0x18c   :  { %10819 = vst [vmem:[#allocation34_spill] sm:$0xff] %v9321_v33  ;;  %3604 = vmatpush1.bf16.msra.mxu0 %v7428_v10  ;;  %v1483_v1 = vmax.f32 %v721_v32, 0.0  ;;  %v1485_v6 = vmax.f32 %v978_v8, 0.0  ;;  %v93_v32 = vsub.s32 6, %v8401_v23  ;;  %v97_v8 = vsub.s32 7, %v8401_v23 }
 0x18d   :  { %10820 = vst [vmem:[#allocation35_spill] sm:$0xff] %v9327_v16  ;;  %v726_v24 = vpop.f32.mrb[90].mxu1  ;;  %v983_v20 = vpop.f32.mrb[90].mxu0  ;;  %3605 = vmatprep.subr.bf16.mxu0 %v7439_v60  ;;  %v1484_v57 = vmax.f32 %v723_v17, 0.0  ;;  %v1486_v55 = vmax.f32 %v980_v7, 0.0 }
 0x18e   :  { %3475 = vmatmul.mubr.bf16.gmra.mrb[116].mxu0 %v9015_v36  ;;  %4094 = vmatmul.mubr.bf16.gmra.mrb[196].mxu1 %v8536_v54  ;;  %v727_v0 = vadd.f32 %v726_v24, %v8796_v38  ;;  %v984_v13 = vadd.f32 %v983_v20, %v8799_v41  ;;  %v728_v10 = vpop.f32.mrb[91].mxu1  ;;  %v985_v31 = vpop.f32.mrb[91].mxu0  ;;  %v7446_v24 = vld [vmem:[%s10729_s3 + $0x560] ss:$16 sps:$4 sm:$0xff]   ;;  %v7457_v7 = vld [vmem:[%s10729_s3 + $0x584] ss:$16 sps:$4 sm:$0xff]  }
 0x18f   :  { %3484 = vmatprep.mubr.bf16.mxu0 %v9053_v52  ;;  %4103 = vmatprep.mubr.bf16.mxu1 %v8601_v45  ;;  %v729_v60 = vadd.f32 %v728_v10, %v8811_v51  ;;  %v986_v49 = vadd.f32 %v985_v31, %v8817_v56 }
 0x190   :  { %v1491_v26 = vmax.f32 %v727_v0, 0.0  ;;  %v1493_v54 = vmax.f32 %v984_v13, 0.0  ;;  %3606 = vmatpush1.bf16.msra.mxu0 %v7437_v61 }
 0x191   :  { %v1492_v20 = vmax.f32 %v729_v60, 0.0  ;;  %v1494_v33 = vmax.f32 %v986_v49, 0.0  ;;  %v732_v45 = vpop.f32.mrb[92].mxu1  ;;  %v989_v17 = vpop.f32.mrb[92].mxu0  ;;  %3607 = vmatprep.subr.bf16.mxu0 %v7448_v40 }
 0x192   :  { %v9353_v0 = vpack.c.bf16 %v1491_v26, %v1483_v1  ;;  %v9355_v13 = vpack.c.bf16 %v1493_v54, %v1485_v6  ;;  %v733_v61 = vadd.f32 %v732_v45, %v8796_v38  ;;  %v990_v10 = vadd.f32 %v989_v17, %v8799_v41  ;;  %v734_v31 = vpop.f32.mrb[93].mxu1  ;;  %v991_v23 = vpop.f32.mrb[93].mxu0  ;;  %v7455_v1 = vld [vmem:[%s10729_s3 + $0x580] ss:$16 sps:$4 sm:$0xff]  }
 0x193   :  { %v9359_v16 = vpack.c.bf16 %v1492_v20, %v1484_v57  ;;  %v9361_v60 = vpack.c.bf16 %v1494_v33, %v1486_v55  ;;  %v735_v40 = vadd.f32 %v734_v31, %v8811_v51  ;;  %v992_v49 = vadd.f32 %v991_v23, %v8817_v56  ;;  %v7739_v54 = vld [vmem:[%s10730_s2] sm:$0xff] }
 0x194   :  { %10821 = vst [vmem:[#allocation36_spill] sm:$0xff] %v9355_v13  ;;  %3608 = vmatpush1.bf16.msra.mxu0 %v7446_v24  ;;  %v9371_v45 = vrot.slane %v7739_v54, %v93_v32  ;;  %v9373_v57 = vrot.slane %v7739_v54, %v97_v8  ;;  %v7460_v23 = vld [vmem:[%s10729_s3 + $0x5a4] ss:$16 sps:$4 sm:$0xff]   ;;  %v1499_v33 = vmax.f32 %v733_v61, 0.0  ;;  %v1501_v55 = vmax.f32 %v990_v10, 0.0 }
 0x195   :  { %v738_v6 = vpop.f32.mrb[94].mxu1  ;;  %v995_v26 = vpop.f32.mrb[94].mxu0  ;;  %3609 = vmatprep.subr.bf16.mxu0 %v7457_v7  ;;  %v1500_v8 = vmax.f32 %v735_v40, 0.0  ;;  %v1502_v7 = vmax.f32 %v992_v49, 0.0 }
 0x196   :  { %3485 = vmatmul.mubr.bf16.gmra.mrb[120].mxu0 %v9047_v21  ;;  %4104 = vmatmul.mubr.bf16.gmra.mrb[200].mxu1 %v8588_v39  ;;  %v739_v24 = vadd.f32 %v738_v6, %v8796_v38  ;;  %v996_v20 = vadd.f32 %v995_v26, %v8799_v41  ;;  %v740_v17 = vpop.f32.mrb[95].mxu1  ;;  %v997_v32 = vpop.f32.mrb[95].mxu0  ;;  %v7458_v38 = vld [vmem:[%s10729_s3 + $0x5a0] ss:$16 sps:$4 sm:$0xff]  }
 0x197   :  { %3494 = vmatprep.mubr.bf16.mxu0 %v9085_v14  ;;  %4113 = vmatprep.mubr.bf16.mxu1 %v8653_v34  ;;  %v741_v31 = vadd.f32 %v740_v17, %v8811_v51  ;;  %v998_v54 = vadd.f32 %v997_v32, %v8817_v56  ;;  %v7463_v34 = vld [vmem:[%s10729_s3 + $0x5c4] ss:$16 sps:$4 sm:$0xff]  }
 0x198   :  { %v1507_v13 = vmax.f32 %v739_v24, 0.0  ;;  %v1509_v39 = vmax.f32 %v996_v20, 0.0  ;;  %3610 = vmatpush1.bf16.msra.mxu0 %v7455_v1  ;;  %v10823_v32 = vld [vmem:[#allocation6_spill] sm:$0xff] }
 0x199   :  { %v1508_v41 = vmax.f32 %v741_v31, 0.0  ;;  %v1510_v61 = vmax.f32 %v998_v54, 0.0  ;;  %v1066_v10 = vpop.f32.mrb[96].mxu1  ;;  %3611 = vmatprep.subr.bf16.mxu0 %v7460_v23  ;;  %v7461_v23 = vld [vmem:[%s10729_s3 + $0x5c0] ss:$16 sps:$4 sm:$0xff]  }
 0x19a   :  { %v9392_v40 = vpack.c.bf16 %v1507_v13, %v1499_v33  ;;  %v9394_v51 = vpack.c.bf16 %v1509_v39, %v1501_v55  ;;  %v1067_v56 = vadd.f32 %v1066_v10, %v9371_v45  ;;  %v1068_v49 = vpop.f32.mrb[97].mxu1  ;;  %v7466_v13 = vld [vmem:[%s10729_s3 + $0x5e4] ss:$16 sps:$4 sm:$0xff]   ;;  %v10822_v33 = vld [vmem:[#allocation5_spill] sm:$0xff]  ;;  %v7464_v54 = vld [vmem:[%s10729_s3 + $0x5e0] ss:$16 sps:$4 sm:$0xff]  }
 0x19b   :  { %v9397_v1 = vpack.c.bf16 %v1508_v41, %v1500_v8  ;;  %v9399_v6 = vpack.c.bf16 %v1510_v61, %v1502_v7  ;;  %v1069_v26 = vadd.f32 %v1068_v49, %v9373_v57  ;;  %v7469_v41 = vld [vmem:[%s10729_s3 + $0x604] ss:$16 sps:$4 sm:$0xff]  }
 0x19c   :  { %3612 = vmatpush1.bf16.msra.mxu0 %v7458_v38  ;;  %v1263_v55 = vmax.f32 %v1067_v56, 0.0 }
 0x19d   :  { %v1072_v24 = vpop.f32.mrb[98].mxu1  ;;  %3613 = vmatprep.subr.bf16.mxu0 %v7463_v34  ;;  %v1264_v8 = vmax.f32 %v1069_v26, 0.0 }
 0x19e   :  { %3495 = vmatmul.mubr.bf16.gmra.mrb[124].mxu0 %v9079_v59  ;;  %4114 = vmatmul.mubr.bf16.gmra.mrb[204].mxu1 %v10822_v33  ;;  %v1073_v20 = vadd.f32 %v1072_v24, %v9371_v45  ;;  %v1074_v17 = vpop.f32.mrb[99].mxu1 }
 0x19f   :  { %3504 = vmatprep.mubr.bf16.mxu0 %v9120_v30  ;;  %4123 = vmatprep.mubr.bf16.mxu1 %v10823_v32  ;;  %v1075_v7 = vadd.f32 %v1074_v17, %v9373_v57 }
 0x1a0   :  { %v1271_v31 = vmax.f32 %v1073_v20, 0.0  ;;  %3614 = vmatpush1.bf16.msra.mxu0 %v7461_v23 }
 0x1a1   :  { %v1272_v39 = vmax.f32 %v1075_v7, 0.0  ;;  %v1078_v38 = vpop.f32.mrb[100].mxu1  ;;  %3615 = vmatprep.subr.bf16.mxu0 %v7466_v13 }
 0x1a2   :  { %v9420_v61 = vpack.c.bf16 %v1271_v31, %v1263_v55  ;;  %v1079_v10 = vadd.f32 %v1078_v38, %v9371_v45  ;;  %v1080_v34 = vpop.f32.mrb[101].mxu1 }
 0x1a3   :  { %v9423_v56 = vpack.c.bf16 %v1272_v39, %v1264_v8  ;;  %v1081_v49 = vadd.f32 %v1080_v34, %v9373_v57 }
 0x1a4   :  { %3616 = vmatpush1.bf16.msra.mxu0 %v7464_v54  ;;  %v1279_v23 = vmax.f32 %v1079_v10, 0.0 }
 0x1a5   :  { %v1084_v26 = vpop.f32.mrb[102].mxu1  ;;  %3778 = vmatprep.subr.bf16.mxu0 %v7469_v41  ;;  %v1280_v33 = vmax.f32 %v1081_v49, 0.0 }
 0x1a6   :  { %3505 = vmatmul.mubr.bf16.gmra.mrb[128].mxu0 %v9111_v3  ;;  %4124 = vmatmul.mubr.bf16.gmra.mrb[208].mxu1 %v8692_v12  ;;  %v1085_v24 = vadd.f32 %v1084_v26, %v9371_v45  ;;  %v1086_v13 = vpop.f32.mrb[103].mxu1 }
 0x1a7   :  { %3514 = vmatprep.mubr.bf16.mxu0 %v9158_v22  ;;  %4133 = vmatprep.mubr.bf16.mxu1 %v8745_v18  ;;  %v1087_v55 = vadd.f32 %v1086_v13, %v9373_v57 }
 0x1a8   :  { %v1287_v20 = vmax.f32 %v1085_v24, 0.0 }
 0x1a9   :  { %v1288_v17 = vmax.f32 %v1087_v55, 0.0  ;;  %v1090_v32 = vpop.f32.mrb[104].mxu1 }
 0x1aa   :  { %v9432_v8 = vpack.c.bf16 %v1287_v20, %v1279_v23  ;;  %v1091_v7 = vadd.f32 %v1090_v32, %v9371_v45  ;;  %v1092_v31 = vpop.f32.mrb[105].mxu1 }
 0x1ab   :  { %v9435_v12 = vpack.c.bf16 %v1288_v17, %v1280_v33  ;;  %v1093_v54 = vadd.f32 %v1092_v31, %v9373_v57 }
 0x1ac   :  { %v1295_v18 = vmax.f32 %v1091_v7, 0.0 }
 0x1ad   :  { %v1096_v39 = vpop.f32.mrb[106].mxu1  ;;  %v1296_v10 = vmax.f32 %v1093_v54, 0.0 }
 0x1ae   :  { %3515 = vmatmul.mubr.bf16.gmra.mrb[132].mxu0 %v9152_v53  ;;  %4134 = vmatmul.mubr.bf16.gmra.mrb[212].mxu1 %v8732_v5  ;;  %v1097_v38 = vadd.f32 %v1096_v39, %v9371_v45  ;;  %v1098_v41 = vpop.f32.mrb[107].mxu1 }
 0x1af   :  { %3524 = vmatprep.mubr.bf16.mxu0 %v9202_v47  ;;  %4143 = vmatprep.mubr.bf16.mxu1 %v8789_v28  ;;  %v1099_v34 = vadd.f32 %v1098_v41, %v9373_v57 }
 0x1b0   :  { %v1303_v49 = vmax.f32 %v1097_v38, 0.0 }
 0x1b1   :  { %v1304_v26 = vmax.f32 %v1099_v34, 0.0  ;;  %v1102_v23 = vpop.f32.mrb[108].mxu1 }
 0x1b2   :  { %v9444_v24 = vpack.c.bf16 %v1303_v49, %v1295_v18  ;;  %v1103_v13 = vadd.f32 %v1102_v23, %v9371_v45  ;;  %v1104_v33 = vpop.f32.mrb[109].mxu1 }
 0x1b3   :  { %v9447_v5 = vpack.c.bf16 %v1304_v26, %v1296_v10  ;;  %v1105_v55 = vadd.f32 %v1104_v33, %v9373_v57 }
 0x1b4   :  { %v1311_v28 = vmax.f32 %v1103_v13, 0.0 }
 0x1b5   :  { %v1108_v20 = vpop.f32.mrb[110].mxu1  ;;  %v1312_v7 = vmax.f32 %v1105_v55, 0.0 }
 0x1b6   :  { %3525 = vmatmul.mubr.bf16.gmra.mrb[136].mxu0 %v9196_v27  ;;  %4144 = vmatmul.mubr.bf16.gmra.mrb[216].mxu1 %v8775_v11  ;;  %v1109_v17 = vadd.f32 %v1108_v20, %v9371_v45  ;;  %v1110_v32 = vpop.f32.mrb[111].mxu1 }
 0x1b7   :  { %3534 = vmatprep.mubr.bf16.mxu0 %v9246_v15  ;;  %4153 = vmatprep.mubr.bf16.mxu1 %v8843_v50  ;;  %v1111_v31 = vadd.f32 %v1110_v32, %v9373_v57 }
 0x1b8   :  { %v1319_v54 = vmax.f32 %v1109_v17, 0.0 }
 0x1b9   :  { %v1320_v39 = vmax.f32 %v1111_v31, 0.0  ;;  %v1114_v18 = vpop.f32.mrb[112].mxu1 }
 0x1ba   :  { %v9456_v38 = vpack.c.bf16 %v1319_v54, %v1311_v28  ;;  %v1115_v41 = vadd.f32 %v1114_v18, %v9371_v45  ;;  %v1116_v10 = vpop.f32.mrb[113].mxu1  ;;  %v7470_v54 = vld [vmem:[%s10729_s3 + $0x408] ss:$16 sps:$4 sm:$0xff]  }
 0x1bb   :  { %v9459_v11 = vpack.c.bf16 %v1320_v39, %v1312_v7  ;;  %v1117_v34 = vadd.f32 %v1116_v10, %v9373_v57  ;;  %v7478_v39 = vld [vmem:[%s10729_s3 + $0x42c] ss:$16 sps:$4 sm:$0xff]  }
 0x1bc   :  { %v1327_v50 = vmax.f32 %v1115_v41, 0.0  ;;  %v10824_v18 = vld [vmem:[#allocation7_spill] sm:$0xff] }
 0x1bd   :  { %v1120_v49 = vpop.f32.mrb[114].mxu1  ;;  %v1328_v13 = vmax.f32 %v1117_v34, 0.0 }
 0x1be   :  { %3535 = vmatmul.mubr.bf16.gmra.mrb[140].mxu0 %v9240_v4  ;;  %4154 = vmatmul.mubr.bf16.gmra.mrb[220].mxu1 %v8833_v42  ;;  %v1121_v26 = vadd.f32 %v1120_v49, %v9371_v45  ;;  %v1122_v23 = vpop.f32.mrb[115].mxu1  ;;  %v10825_v49 = vld [vmem:[#allocation11_spill] sm:$0xff] }
 0x1bf   :  { %3544 = vmatprep.mubr.bf16.mxu0 %v9290_v19  ;;  %4196 = vmatprep.mubr.bf16.mxu1 %v8877_v2  ;;  %v1123_v33 = vadd.f32 %v1122_v23, %v9373_v57 }
 0x1c0   :  { %v1335_v55 = vmax.f32 %v1121_v26, 0.0 }
 0x1c1   :  { %v1336_v20 = vmax.f32 %v1123_v33, 0.0  ;;  %v1126_v28 = vpop.f32.mrb[116].mxu1 }
 0x1c2   :  { %v9468_v17 = vpack.c.bf16 %v1335_v55, %v1327_v50  ;;  %v1127_v32 = vadd.f32 %v1126_v28, %v9371_v45  ;;  %v1128_v7 = vpop.f32.mrb[117].mxu1 }
 0x1c3   :  { %v9471_v42 = vpack.c.bf16 %v1336_v20, %v1328_v13  ;;  %v1129_v31 = vadd.f32 %v1128_v7, %v9373_v57  ;;  %v7476_v13 = vld [vmem:[%s10729_s3 + $0x428] ss:$16 sps:$4 sm:$0xff]   ;;  %v7484_v20 = vld [vmem:[%s10729_s3 + $0x44c] ss:$16 sps:$4 sm:$0xff]  }
 0x1c4   :  { %v1343_v41 = vmax.f32 %v1127_v32, 0.0 }
 0x1c5   :  { %v1132_v2 = vpop.f32.mrb[118].mxu1  ;;  %v1344_v50 = vmax.f32 %v1129_v31, 0.0 }
 0x1c6   :  { %3545 = vmatmul.mubr.bf16.gmra.mrb[144].mxu0 %v9284_v48  ;;  %4197 = vmatmul.mubr.bf16.vlgmr.msra.gmra.mrb[160].mxu1 %v10824_v18  ;;  %v1133_v10 = vadd.f32 %v1132_v2, %v9371_v45  ;;  %v1134_v34 = vpop.f32.mrb[119].mxu1  ;;  %v7482_v2 = vld [vmem:[%s10729_s3 + $0x448] ss:$16 sps:$4 sm:$0xff]  }
 0x1c7   :  { %3554 = vmatprep.mubr.bf16.mxu0 %v9325_v9  ;;  %4206 = vmatprep.mubr.bf16.mxu1 %v10825_v49  ;;  %v1135_v26 = vadd.f32 %v1134_v34, %v9373_v57 }
 0x1c8   :  { %v1351_v23 = vmax.f32 %v1133_v10, 0.0  ;;  %4358 = vmatpush1.bf16.msra.mxu1 %v7470_v54 }
 0x1c9   :  { %v1352_v33 = vmax.f32 %v1135_v26, 0.0  ;;  %v1138_v55 = vpop.f32.mrb[120].mxu1  ;;  %4359 = vmatprep.subr.bf16.mxu1 %v7478_v39  ;;  %v7490_v39 = vld [vmem:[%s10729_s3 + $0x46c] ss:$16 sps:$4 sm:$0xff]  }
 0x1ca   :  { %v9492_v28 = vpack.c.bf16 %v1351_v23, %v1343_v41  ;;  %v1139_v32 = vadd.f32 %v1138_v55, %v9371_v45  ;;  %v1140_v7 = vpop.f32.mrb[121].mxu1  ;;  %v7488_v23 = vld [vmem:[%s10729_s3 + $0x468] ss:$16 sps:$4 sm:$0xff]  }
 0x1cb   :  { %v9495_v31 = vpack.c.bf16 %v1352_v33, %v1344_v50  ;;  %v1141_v54 = vadd.f32 %v1140_v7, %v9373_v57 }
 0x1cc   :  { %4360 = vmatpush1.bf16.msra.mxu1 %v7476_v13  ;;  %v1359_v41 = vmax.f32 %v1139_v32, 0.0 }
 0x1cd   :  { %v1144_v18 = vpop.f32.mrb[122].mxu1  ;;  %4361 = vmatprep.subr.bf16.mxu1 %v7484_v20  ;;  %v1360_v49 = vmax.f32 %v1141_v54, 0.0  ;;  %v7494_v54 = vld [vmem:[%s10729_s3 + $0x488] ss:$16 sps:$4 sm:$0xff]  }
 0x1ce   :  { %3555 = vmatmul.mubr.bf16.gmra.mrb[148].mxu0 %v9319_v62  ;;  %4207 = vmatmul.mubr.bf16.gmra.mrb[164].mxu1 %v8898_v43  ;;  %v1145_v10 = vadd.f32 %v1144_v18, %v9371_v45  ;;  %v1146_v34 = vpop.f32.mrb[123].mxu1  ;;  %v7496_v43 = vld [vmem:[%s10729_s3 + $0x48c] ss:$16 sps:$4 sm:$0xff]  }
 0x1cf   :  { %3564 = vmatprep.mubr.bf16.mxu0 %v9359_v16  ;;  %4216 = vmatprep.mubr.bf16.mxu1 %v8933_v63  ;;  %v1147_v50 = vadd.f32 %v1146_v34, %v9373_v57  ;;  %v7502_v18 = vld [vmem:[%s10729_s3 + $0x4ac] ss:$16 sps:$4 sm:$0xff]  }
 0x1d0   :  { %v1367_v26 = vmax.f32 %v1145_v10, 0.0  ;;  %4362 = vmatpush1.bf16.msra.mxu1 %v7482_v2 }
 0x1d1   :  { %v1368_v13 = vmax.f32 %v1147_v50, 0.0  ;;  %v1150_v33 = vpop.f32.mrb[124].mxu1  ;;  %4363 = vmatprep.subr.bf16.mxu1 %v7490_v39 }
 0x1d2   :  { %v9516_v55 = vpack.c.bf16 %v1367_v26, %v1359_v41  ;;  %v1151_v63 = vadd.f32 %v1150_v33, %v9371_v45  ;;  %v1152_v20 = vpop.f32.mrb[125].mxu1  ;;  %v7500_v26 = vld [vmem:[%s10729_s3 + $0x4a8] ss:$16 sps:$4 sm:$0xff]  }
 0x1d3   :  { %v9519_v32 = vpack.c.bf16 %v1368_v13, %v1360_v49  ;;  %v1153_v7 = vadd.f32 %v1152_v20, %v9373_v57 }
 0x1d4   :  { %4364 = vmatpush1.bf16.msra.mxu1 %v7488_v23  ;;  %v1375_v39 = vmax.f32 %v1151_v63, 0.0 }
 0x1d5   :  { %v1156_v2 = vpop.f32.mrb[126].mxu1  ;;  %4365 = vmatprep.subr.bf16.mxu1 %v7496_v43  ;;  %v1376_v34 = vmax.f32 %v1153_v7, 0.0  ;;  %v7506_v7 = vld [vmem:[%s10729_s3 + $0x4c8] ss:$16 sps:$4 sm:$0xff]  }
 0x1d6   :  { %3565 = vmatmul.mubr.bf16.gmra.mrb[152].mxu0 %v9353_v0  ;;  %4217 = vmatmul.mubr.bf16.gmra.mrb[168].mxu1 %v8926_v44  ;;  %v1157_v41 = vadd.f32 %v1156_v2, %v9371_v45  ;;  %v1158_v10 = vpop.f32.mrb[127].mxu1  ;;  %v7508_v44 = vld [vmem:[%s10729_s3 + $0x4cc] ss:$16 sps:$4 sm:$0xff]  }
 0x1d7   :  { %3574 = vmatprep.mubr.bf16.mxu0 %v9397_v1  ;;  %4226 = vmatprep.mubr.bf16.mxu1 %v8961_v37  ;;  %v1159_v49 = vadd.f32 %v1158_v10, %v9373_v57  ;;  %v7514_v2 = vld [vmem:[%s10729_s3 + $0x4ec] ss:$16 sps:$4 sm:$0xff]  }
 0x1d8   :  { %v1383_v50 = vmax.f32 %v1157_v41, 0.0  ;;  %4366 = vmatpush1.bf16.msra.mxu1 %v7494_v54  ;;  %v10826_v10 = vld [vmem:[#allocation9_spill] sm:$0xff] }
 0x1d9   :  { %v1384_v23 = vmax.f32 %v1159_v49, 0.0  ;;  %v1162_v13 = vpop.f32.mrb[128].mxu1  ;;  %4367 = vmatprep.subr.bf16.mxu1 %v7502_v18 }
 0x1da   :  { %v9540_v33 = vpack.c.bf16 %v1383_v50, %v1375_v39  ;;  %v1163_v37 = vadd.f32 %v1162_v13, %v9371_v45  ;;  %v1164_v43 = vpop.f32.mrb[129].mxu1 }
 0x1db   :  { %v9543_v63 = vpack.c.bf16 %v1384_v23, %v1376_v34  ;;  %v1165_v20 = vadd.f32 %v1164_v43, %v9373_v57  ;;  %v7467_v43 = vld [vmem:[%s10729_s3 + $0x600] ss:$16 sps:$4 sm:$0xff]  }
 0x1dc   :  { %4368 = vmatpush1.bf16.msra.mxu1 %v7500_v26  ;;  %v1391_v18 = vmax.f32 %v1163_v37, 0.0  ;;  %v7512_v26 = vld [vmem:[%s10729_s3 + $0x4e8] ss:$16 sps:$4 sm:$0xff]  }
 0x1dd   :  { %v1168_v54 = vpop.f32.mrb[130].mxu1  ;;  %4369 = vmatprep.subr.bf16.mxu1 %v7508_v44  ;;  %v1392_v34 = vmax.f32 %v1165_v20, 0.0 }
 0x1de   :  { %3575 = vmatmul.mubr.bf16.gmra.mrb[156].mxu0 %v9392_v40  ;;  %4227 = vmatmul.mubr.bf16.gmra.mrb[172].mxu1 %v8954_v35  ;;  %v1169_v39 = vadd.f32 %v1168_v54, %v9371_v45  ;;  %v1170_v41 = vpop.f32.mrb[131].mxu1  ;;  %v7520_v35 = vld [vmem:[%s10729_s3 + $0x50c] ss:$16 sps:$4 sm:$0xff]   ;;  %v7475_v54 = vld [vmem:[%s10729_s3 + $0x624] ss:$16 sps:$4 sm:$0xff]  }
 0x1df   :  { %3617 = vmatprep.mubr.bf16.mxu0 %v10826_v10  ;;  %4236 = vmatprep.mubr.bf16.mxu1 %v8989_v58  ;;  %v1171_v49 = vadd.f32 %v1170_v41, %v9373_v57 }
 0x1e0   :  { %v1399_v50 = vmax.f32 %v1169_v39, 0.0  ;;  %4370 = vmatpush1.bf16.msra.mxu1 %v7506_v7  ;;  %v10828_v39 = vld [vmem:[#allocation8_spill] sm:$0xff] }
 0x1e1   :  { %v1400_v23 = vmax.f32 %v1171_v49, 0.0  ;;  %v1174_v13 = vpop.f32.mrb[132].mxu1  ;;  %4371 = vmatprep.subr.bf16.mxu1 %v7514_v2 }
 0x1e2   :  { %v9564_v44 = vpack.c.bf16 %v1399_v50, %v1391_v18  ;;  %v1175_v58 = vadd.f32 %v1174_v13, %v9371_v45  ;;  %v1176_v37 = vpop.f32.mrb[133].mxu1  ;;  %v7518_v18 = vld [vmem:[%s10729_s3 + $0x508] ss:$16 sps:$4 sm:$0xff]   ;;  %v7523_v50 = vld [vmem:[%s10729_s3 + $0x52c] ss:$16 sps:$4 sm:$0xff]  }
 0x1e3   :  { %v9570_v20 = vpack.c.bf16 %v1400_v23, %v1392_v34  ;;  %v1177_v7 = vadd.f32 %v1176_v37, %v9373_v57  ;;  %v7473_v23 = vld [vmem:[%s10729_s3 + $0x620] ss:$16 sps:$4 sm:$0xff]  }
 0x1e4   :  { %10827 = vst [vmem:[#allocation5_spill] sm:$0xff] %v9564_v44  ;;  %4372 = vmatpush1.bf16.msra.mxu1 %v7512_v26  ;;  %v1407_v41 = vmax.f32 %v1175_v58, 0.0  ;;  %v10829_v26 = vld [vmem:[#allocation12_spill] sm:$0xff] }
 0x1e5   :  { %v1180_v2 = vpop.f32.mrb[134].mxu1  ;;  %4373 = vmatprep.subr.bf16.mxu1 %v7520_v35  ;;  %v1408_v13 = vmax.f32 %v1177_v7, 0.0 }
 0x1e6   :  { %3618 = vmatmul.mubr.bf16.vlgmr.msra.gmra.mrb[96].mxu0 %v10828_v39  ;;  %4237 = vmatmul.mubr.bf16.gmra.mrb[176].mxu1 %v8982_v25  ;;  %v1181_v34 = vadd.f32 %v1180_v2, %v9371_v45  ;;  %v1182_v49 = vpop.f32.mrb[135].mxu1  ;;  %v7481_v25 = vld [vmem:[%s10729_s3 + $0x644] ss:$16 sps:$4 sm:$0xff]  }
 0x1e7   :  { %3779 = vmatpush1.bf16.msra.mxu0 %v7467_v43  ;;  %3627 = vmatprep.mubr.bf16.mxu0 %v10829_v26  ;;  %v1183_v35 = vadd.f32 %v1182_v49, %v9373_v57  ;;  %v7521_v43 = vld [vmem:[%s10729_s3 + $0x528] ss:$16 sps:$4 sm:$0xff]  }
 0x1e8   :  { %4246 = vmatprep.mubr.bf16.mxu1 %v9021_v46  ;;  %3780 = vmatprep.subr.bf16.mxu0 %v7475_v54  ;;  %v1415_v58 = vmax.f32 %v1181_v34, 0.0  ;;  %v7479_v34 = vld [vmem:[%s10729_s3 + $0x640] ss:$16 sps:$4 sm:$0xff]  }
 0x1e9   :  { %v1416_v37 = vmax.f32 %v1183_v35, 0.0  ;;  %v1186_v2 = vpop.f32.mrb[136].mxu1  ;;  %4374 = vmatpush1.bf16.msra.mxu1 %v7518_v18  ;;  %v7529_v18 = vld [vmem:[%s10729_s3 + $0x54c] ss:$16 sps:$4 sm:$0xff]  }
 0x1ea   :  { %v9597_v44 = vpack.c.bf16 %v1415_v58, %v1407_v41  ;;  %v1187_v7 = vadd.f32 %v1186_v2, %v9371_v45  ;;  %v1188_v49 = vpop.f32.mrb[137].mxu1  ;;  %4375 = vmatprep.subr.bf16.mxu1 %v7523_v50  ;;  %v7487_v41 = vld [vmem:[%s10729_s3 + $0x664] ss:$16 sps:$4 sm:$0xff]   ;;  %v7527_v50 = vld [vmem:[%s10729_s3 + $0x548] ss:$16 sps:$4 sm:$0xff]  }
 0x1eb   :  { %3781 = vmatpush1.bf16.msra.mxu0 %v7473_v23  ;;  %v9600_v46 = vpack.c.bf16 %v1416_v37, %v1408_v13  ;;  %v1189_v54 = vadd.f32 %v1188_v49, %v9373_v57  ;;  %v10832_v23 = vld [vmem:[#allocation10_spill] sm:$0xff]  ;;  %v7532_v37 = vld [vmem:[%s10729_s3 + $0x56c] ss:$16 sps:$4 sm:$0xff]  }
 0x1ec   :  { %10830 = vst [vmem:[#allocation6_spill] sm:$0xff] %v9597_v44  ;;  %3782 = vmatprep.subr.bf16.mxu0 %v7481_v25  ;;  %v1423_v13 = vmax.f32 %v1187_v7, 0.0  ;;  %v10833_v2 = vld [vmem:[#allocation14_spill] sm:$0xff] }
 0x1ed   :  { %10831 = vst [vmem:[#allocation7_spill] sm:$0xff] %v9600_v46  ;;  %v1192_v35 = vpop.f32.mrb[138].mxu1  ;;  %4376 = vmatpush1.bf16.msra.mxu1 %v7521_v43  ;;  %v1424_v43 = vmax.f32 %v1189_v54, 0.0 }
 0x1ee   :  { %3628 = vmatmul.mubr.bf16.gmra.mrb[100].mxu0 %v10832_v23  ;;  %4247 = vmatmul.mubr.bf16.gmra.mrb[180].mxu1 %v9015_v36  ;;  %v1193_v25 = vadd.f32 %v1192_v35, %v9371_v45  ;;  %v1194_v58 = vpop.f32.mrb[139].mxu1  ;;  %v7485_v36 = vld [vmem:[%s10729_s3 + $0x660] ss:$16 sps:$4 sm:$0xff]   ;;  %v7493_v35 = vld [vmem:[%s10729_s3 + $0x684] ss:$16 sps:$4 sm:$0xff]  }
 0x1ef   :  { %3637 = vmatprep.mubr.bf16.mxu0 %v10833_v2  ;;  %4256 = vmatprep.mubr.bf16.mxu1 %v9053_v52  ;;  %v1195_v49 = vadd.f32 %v1194_v58, %v9373_v57  ;;  %v7530_v52 = vld [vmem:[%s10729_s3 + $0x568] ss:$16 sps:$4 sm:$0xff]  }
 0x1f0   :  { %3783 = vmatpush1.bf16.msra.mxu0 %v7479_v34  ;;  %v1431_v7 = vmax.f32 %v1193_v25, 0.0  ;;  %4377 = vmatprep.subr.bf16.mxu1 %v7529_v18 }
 0x1f1   :  { %3784 = vmatprep.subr.bf16.mxu0 %v7487_v41  ;;  %v1432_v44 = vmax.f32 %v1195_v49, 0.0  ;;  %v1198_v46 = vpop.f32.mrb[140].mxu1  ;;  %4378 = vmatpush1.bf16.msra.mxu1 %v7527_v50  ;;  %v7491_v41 = vld [vmem:[%s10729_s3 + $0x680] ss:$16 sps:$4 sm:$0xff]   ;;  %v7538_v50 = vld [vmem:[%s10729_s3 + $0x58c] ss:$16 sps:$4 sm:$0xff]  }
 0x1f2   :  { %v9633_v54 = vpack.c.bf16 %v1431_v7, %v1423_v13  ;;  %v1199_v34 = vadd.f32 %v1198_v46, %v9371_v45  ;;  %v1200_v58 = vpop.f32.mrb[141].mxu1  ;;  %4379 = vmatprep.subr.bf16.mxu1 %v7532_v37  ;;  %v7499_v46 = vld [vmem:[%s10729_s3 + $0x6a4] ss:$16 sps:$4 sm:$0xff]   ;;  %v10836_v37 = vld [vmem:[#allocation13_spill] sm:$0xff] }
 0x1f3   :  { %v9636_v25 = vpack.c.bf16 %v1432_v44, %v1424_v43  ;;  %v1201_v18 = vadd.f32 %v1200_v58, %v9373_v57  ;;  %v7536_v44 = vld [vmem:[%s10729_s3 + $0x588] ss:$16 sps:$4 sm:$0xff]   ;;  %v7541_v7 = vld [vmem:[%s10729_s3 + $0x5ac] ss:$16 sps:$4 sm:$0xff]  }
 0x1f4   :  { %10834 = vst [vmem:[#allocation11_spill] sm:$0xff] %v9633_v54  ;;  %3785 = vmatpush1.bf16.msra.mxu0 %v7485_v36  ;;  %v1439_v43 = vmax.f32 %v1199_v34, 0.0  ;;  %v7505_v54 = vld [vmem:[%s10729_s3 + $0x6c4] ss:$16 sps:$4 sm:$0xff]  }
 0x1f5   :  { %10835 = vst [vmem:[#allocation9_spill] sm:$0xff] %v9636_v25  ;;  %3786 = vmatprep.subr.bf16.mxu0 %v7493_v35  ;;  %v1204_v13 = vpop.f32.mrb[142].mxu1  ;;  %4380 = vmatpush1.bf16.msra.mxu1 %v7530_v52  ;;  %v10837_v35 = vld [vmem:[#allocation16_spill] sm:$0xff]  ;;  %v1440_v52 = vmax.f32 %v1201_v18, 0.0 }
 0x1f6   :  { %3638 = vmatmul.mubr.bf16.gmra.mrb[104].mxu0 %v10836_v37  ;;  %4257 = vmatmul.mubr.bf16.gmra.mrb[184].mxu1 %v9047_v21  ;;  %v1205_v49 = vadd.f32 %v1204_v13, %v9371_v45  ;;  %v1206_v36 = vpop.f32.mrb[143].mxu1  ;;  %v7497_v21 = vld [vmem:[%s10729_s3 + $0x6a0] ss:$16 sps:$4 sm:$0xff]  }
 0x1f7   :  { %3647 = vmatprep.mubr.bf16.mxu0 %v10837_v35  ;;  %4266 = vmatprep.mubr.bf16.mxu1 %v9085_v14  ;;  %v1207_v58 = vadd.f32 %v1206_v36, %v9373_v57  ;;  %v7539_v14 = vld [vmem:[%s10729_s3 + $0x5a8] ss:$16 sps:$4 sm:$0xff]  }
 0x1f8   :  { %3787 = vmatpush1.bf16.msra.mxu0 %v7491_v41  ;;  %v1447_v34 = vmax.f32 %v1205_v49, 0.0  ;;  %4381 = vmatprep.subr.bf16.mxu1 %v7538_v50 }
 0x1f9   :  { %3788 = vmatprep.subr.bf16.mxu0 %v7499_v46  ;;  %v1448_v13 = vmax.f32 %v1207_v58, 0.0  ;;  %v1210_v25 = vpop.f32.mrb[144].mxu1  ;;  %4382 = vmatpush1.bf16.msra.mxu1 %v7536_v44  ;;  %v7503_v46 = vld [vmem:[%s10729_s3 + $0x6c0] ss:$16 sps:$4 sm:$0xff]   ;;  %v7547_v44 = vld [vmem:[%s10729_s3 + $0x5cc] ss:$16 sps:$4 sm:$0xff]  }
 0x1fa   :  { %v9669_v18 = vpack.c.bf16 %v1447_v34, %v1439_v43  ;;  %v1211_v41 = vadd.f32 %v1210_v25, %v9371_v45  ;;  %v1212_v36 = vpop.f32.mrb[145].mxu1  ;;  %4383 = vmatprep.subr.bf16.mxu1 %v7541_v7  ;;  %v7511_v25 = vld [vmem:[%s10729_s3 + $0x6e4] ss:$16 sps:$4 sm:$0xff]   ;;  %v7545_v7 = vld [vmem:[%s10729_s3 + $0x5c8] ss:$16 sps:$4 sm:$0xff]  }
 0x1fb   :  { %v9672_v49 = vpack.c.bf16 %v1448_v13, %v1440_v52  ;;  %v1213_v50 = vadd.f32 %v1212_v36, %v9373_v57  ;;  %v10840_v52 = vld [vmem:[#allocation15_spill] sm:$0xff]  ;;  %v10841_v13 = vld [vmem:[#allocation18_spill] sm:$0xff] }
 0x1fc   :  { %10838 = vst [vmem:[#allocation8_spill] sm:$0xff] %v9669_v18  ;;  %3789 = vmatpush1.bf16.msra.mxu0 %v7497_v21  ;;  %v1455_v58 = vmax.f32 %v1211_v41, 0.0 }
 0x1fd   :  { %10839 = vst [vmem:[#allocation12_spill] sm:$0xff] %v9672_v49  ;;  %3790 = vmatprep.subr.bf16.mxu0 %v7505_v54  ;;  %v1216_v43 = vpop.f32.mrb[146].mxu1  ;;  %4384 = vmatpush1.bf16.msra.mxu1 %v7539_v14  ;;  %v7550_v54 = vld [vmem:[%s10729_s3 + $0x5ec] ss:$16 sps:$4 sm:$0xff]   ;;  %v1456_v14 = vmax.f32 %v1213_v50, 0.0 }
 0x1fe   :  { %3648 = vmatmul.mubr.bf16.gmra.mrb[108].mxu0 %v10840_v52  ;;  %4267 = vmatmul.mubr.bf16.gmra.mrb[188].mxu1 %v9079_v59  ;;  %v1217_v21 = vadd.f32 %v1216_v43, %v9371_v45  ;;  %v1218_v34 = vpop.f32.mrb[147].mxu1  ;;  %v7509_v59 = vld [vmem:[%s10729_s3 + $0x6e0] ss:$16 sps:$4 sm:$0xff]   ;;  %v7517_v49 = vld [vmem:[%s10729_s3 + $0x704] ss:$16 sps:$4 sm:$0xff]  }
 0x1ff   :  { %3657 = vmatprep.mubr.bf16.mxu0 %v10841_v13  ;;  %4276 = vmatprep.mubr.bf16.mxu1 %v9120_v30  ;;  %v1219_v36 = vadd.f32 %v1218_v34, %v9373_v57  ;;  %v7548_v30 = vld [vmem:[%s10729_s3 + $0x5e8] ss:$16 sps:$4 sm:$0xff]  }
 0x200   :  { %3791 = vmatpush1.bf16.msra.mxu0 %v7503_v46  ;;  %v1463_v18 = vmax.f32 %v1217_v21, 0.0  ;;  %4385 = vmatprep.subr.bf16.mxu1 %v7547_v44 }
 0x201   :  { %v1464_v41 = vmax.f32 %v1219_v36, 0.0  ;;  %3792 = vmatprep.subr.bf16.mxu0 %v7511_v25  ;;  %v1222_v43 = vpop.f32.mrb[148].mxu1  ;;  %4386 = vmatpush1.bf16.msra.mxu1 %v7545_v7  ;;  %v7515_v25 = vld [vmem:[%s10729_s3 + $0x700] ss:$16 sps:$4 sm:$0xff]   ;;  %v7565_v7 = vld [vmem:[%s10729_s3 + $0x60c] ss:$16 sps:$4 sm:$0xff]  }
 0x202   :  { %v9705_v50 = vpack.c.bf16 %v1463_v18, %v1455_v58  ;;  %v1223_v46 = vadd.f32 %v1222_v43, %v9371_v45  ;;  %v1224_v21 = vpop.f32.mrb[149].mxu1  ;;  %4387 = vmatprep.subr.bf16.mxu1 %v7550_v54  ;;  %v7526_v18 = vld [vmem:[%s10729_s3 + $0x724] ss:$16 sps:$4 sm:$0xff]   ;;  %v10843_v58 = vld [vmem:[#allocation17_spill] sm:$0xff] }
 0x203   :  { %v9708_v34 = vpack.c.bf16 %v1464_v41, %v1456_v14  ;;  %v1225_v44 = vadd.f32 %v1224_v21, %v9373_v57  ;;  %v10844_v41 = vld [vmem:[#allocation20_spill] sm:$0xff] }
 0x204   :  { %10842 = vst [vmem:[#allocation10_spill] sm:$0xff] %v9705_v50  ;;  %3793 = vmatpush1.bf16.msra.mxu0 %v7509_v59  ;;  %v1471_v54 = vmax.f32 %v1223_v46, 0.0  ;;  %v7535_v46 = vld [vmem:[%s10729_s3 + $0x744] ss:$16 sps:$4 sm:$0xff]  }
 0x205   :  { %v1228_v36 = vpop.f32.mrb[150].mxu1  ;;  %3794 = vmatprep.subr.bf16.mxu0 %v7517_v49  ;;  %4388 = vmatpush1.bf16.msra.mxu1 %v7548_v30  ;;  %v1472_v43 = vmax.f32 %v1225_v44, 0.0  ;;  %v7524_v30 = vld [vmem:[%s10729_s3 + $0x720] ss:$16 sps:$4 sm:$0xff]  }
 0x206   :  { %3658 = vmatmul.mubr.bf16.gmra.mrb[112].mxu0 %v10843_v58  ;;  %4277 = vmatmul.mubr.bf16.gmra.mrb[192].mxu1 %v9111_v3  ;;  %v1229_v14 = vadd.f32 %v1228_v36, %v9371_v45  ;;  %v1230_v59 = vpop.f32.mrb[151].mxu1 }
 0x207   :  { %3667 = vmatprep.mubr.bf16.mxu0 %v10844_v41  ;;  %4286 = vmatprep.mubr.bf16.mxu1 %v9158_v22  ;;  %v1231_v49 = vadd.f32 %v1230_v59, %v9373_v57 }
 0x208   :  { %v1479_v21 = vmax.f32 %v1229_v14, 0.0  ;;  %3795 = vmatpush1.bf16.msra.mxu0 %v7515_v25  ;;  %4550 = vmatprep.subr.bf16.mxu1 %v7565_v7  ;;  %v7533_v7 = vld [vmem:[%s10729_s3 + $0x740] ss:$16 sps:$4 sm:$0xff]  }
 0x209   :  { %v1480_v50 = vmax.f32 %v1231_v49, 0.0  ;;  %v1234_v3 = vpop.f32.mrb[152].mxu1  ;;  %3796 = vmatprep.subr.bf16.mxu0 %v7526_v18  ;;  %v7544_v18 = vld [vmem:[%s10729_s3 + $0x764] ss:$16 sps:$4 sm:$0xff]  }
 0x20a   :  { %v9732_v36 = vpack.c.bf16 %v1479_v21, %v1471_v54  ;;  %v1235_v22 = vadd.f32 %v1234_v3, %v9371_v45  ;;  %v1236_v44 = vpop.f32.mrb[153].mxu1  ;;  %v10847_v54 = vld [vmem:[#allocation19_spill] sm:$0xff]  ;;  %v10848_v21 = vld [vmem:[#allocation22_spill] sm:$0xff] }
 0x20b   :  { %v9735_v59 = vpack.c.bf16 %v1480_v50, %v1472_v43  ;;  %v1237_v25 = vadd.f32 %v1236_v44, %v9373_v57  ;;  %v7542_v44 = vld [vmem:[%s10729_s3 + $0x760] ss:$16 sps:$4 sm:$0xff]  }
 0x20c   :  { %10845 = vst [vmem:[#allocation14_spill] sm:$0xff] %v9732_v36  ;;  %3797 = vmatpush1.bf16.msra.mxu0 %v7524_v30  ;;  %v1487_v49 = vmax.f32 %v1235_v22, 0.0 }
 0x20d   :  { %10846 = vst [vmem:[#allocation13_spill] sm:$0xff] %v9735_v59  ;;  %v1240_v14 = vpop.f32.mrb[154].mxu1  ;;  %3798 = vmatprep.subr.bf16.mxu0 %v7535_v46  ;;  %v1488_v30 = vmax.f32 %v1237_v25, 0.0 }
 0x20e   :  { %3668 = vmatmul.mubr.bf16.gmra.mrb[116].mxu0 %v10847_v54  ;;  %4287 = vmatmul.mubr.bf16.gmra.mrb[196].mxu1 %v9152_v53  ;;  %v1241_v50 = vadd.f32 %v1240_v14, %v9371_v45  ;;  %v1242_v43 = vpop.f32.mrb[155].mxu1  ;;  %v7553_v53 = vld [vmem:[%s10729_s3 + $0x784] ss:$16 sps:$4 sm:$0xff]  }
 0x20f   :  { %3677 = vmatprep.mubr.bf16.mxu0 %v10848_v21  ;;  %4296 = vmatprep.mubr.bf16.mxu1 %v9202_v47  ;;  %v1243_v3 = vadd.f32 %v1242_v43, %v9373_v57 }
 0x210   :  { %v1495_v46 = vmax.f32 %v1241_v50, 0.0  ;;  %3799 = vmatpush1.bf16.msra.mxu0 %v7533_v7  ;;  %v7551_v50 = vld [vmem:[%s10729_s3 + $0x780] ss:$16 sps:$4 sm:$0xff]  }
 0x211   :  { %v1496_v36 = vmax.f32 %v1243_v3, 0.0  ;;  %v1246_v59 = vpop.f32.mrb[156].mxu1  ;;  %3800 = vmatprep.subr.bf16.mxu0 %v7544_v18  ;;  %v7556_v18 = vld [vmem:[%s10729_s3 + $0x7a4] ss:$16 sps:$4 sm:$0xff]  }
 0x212   :  { %v9756_v22 = vpack.c.bf16 %v1495_v46, %v1487_v49  ;;  %v1247_v47 = vadd.f32 %v1246_v59, %v9371_v45  ;;  %v1248_v25 = vpop.f32.mrb[157].mxu1  ;;  %v10850_v49 = vld [vmem:[#allocation21_spill] sm:$0xff]  ;;  %v10851_v3 = vld [vmem:[#allocation24_spill] sm:$0xff] }
 0x213   :  { %v9759_v14 = vpack.c.bf16 %v1496_v36, %v1488_v30  ;;  %v1249_v7 = vadd.f32 %v1248_v25, %v9373_v57  ;;  %v7554_v25 = vld [vmem:[%s10729_s3 + $0x7a0] ss:$16 sps:$4 sm:$0xff]  }
 0x214   :  { %10849 = vst [vmem:[#allocation16_spill] sm:$0xff] %v9756_v22  ;;  %3801 = vmatpush1.bf16.msra.mxu0 %v7542_v44  ;;  %v1503_v59 = vmax.f32 %v1247_v47, 0.0 }
 0x215   :  { %v1252_v43 = vpop.f32.mrb[158].mxu1  ;;  %3802 = vmatprep.subr.bf16.mxu0 %v7553_v53  ;;  %v1504_v46 = vmax.f32 %v1249_v7, 0.0  ;;  %v10852_v7 = vld [vmem:[#allocation23_spill] sm:$0xff] }
 0x216   :  { %3678 = vmatmul.mubr.bf16.gmra.mrb[120].mxu0 %v10850_v49  ;;  %4297 = vmatmul.mubr.bf16.gmra.mrb[200].mxu1 %v9196_v27  ;;  %v1253_v36 = vadd.f32 %v1252_v43, %v9371_v45  ;;  %v1254_v30 = vpop.f32.mrb[159].mxu1  ;;  %v7559_v27 = vld [vmem:[%s10729_s3 + $0x7c4] ss:$16 sps:$4 sm:$0xff]   ;;  %v10854_v43 = vld [vmem:[#allocation25_spill] sm:$0xff] }
 0x217   :  { %3687 = vmatprep.mubr.bf16.mxu0 %v10851_v3  ;;  %4306 = vmatprep.mubr.bf16.mxu1 %v9246_v15  ;;  %v1255_v44 = vadd.f32 %v1254_v30, %v9373_v57  ;;  %v7557_v15 = vld [vmem:[%s10729_s3 + $0x7c0] ss:$16 sps:$4 sm:$0xff]   ;;  %v7562_v57 = vld [vmem:[%s10729_s3 + $0x7e4] ss:$16 sps:$4 sm:$0xff]   ;;  %v7569_v30 = vld [vmem:[%s10729_s3 + $0x648] ss:$16 sps:$4 sm:$0xff]  }
 0x218   :  { %v1511_v53 = vmax.f32 %v1253_v36, 0.0  ;;  %3803 = vmatpush1.bf16.msra.mxu0 %v7551_v50  ;;  %v10853_v50 = vld [vmem:[#allocation26_spill] sm:$0xff]  ;;  %v10859_v36 = vld [vmem:[#allocation32_spill] sm:$0xff] }
 0x219   :  { %v1512_v22 = vmax.f32 %v1255_v44, 0.0  ;;  %3804 = vmatprep.subr.bf16.mxu0 %v7556_v18  ;;  %v10855_v18 = vld [vmem:[#allocation28_spill] sm:$0xff]  ;;  %v7577_v44 = vld [vmem:[%s10729_s3 + $0x68c] ss:$16 sps:$4 sm:$0xff]  }
 0x21a   :  { %v9780_v45 = vpack.c.bf16 %v1511_v53, %v1503_v59  ;;  %v10858_v59 = vld [vmem:[#allocation29_spill] sm:$0xff] }
 0x21b   :  { %v9782_v47 = vpack.c.bf16 %v1512_v22, %v1504_v46  ;;  %v7560_v22 = vld [vmem:[%s10729_s3 + $0x7e0] ss:$16 sps:$4 sm:$0xff]   ;;  %v7572_v46 = vld [vmem:[%s10729_s3 + $0x668] ss:$16 sps:$4 sm:$0xff]  }
 0x21c   :  { %3805 = vmatpush1.bf16.msra.mxu0 %v7554_v25  ;;  %v7575_v53 = vld [vmem:[%s10729_s3 + $0x688] ss:$16 sps:$4 sm:$0xff]  }
 0x21d   :  { %3806 = vmatprep.subr.bf16.mxu0 %v7559_v27  ;;  %v7578_v25 = vld [vmem:[%s10729_s3 + $0x6a8] ss:$16 sps:$4 sm:$0xff]   ;;  %v7583_v27 = vld [vmem:[%s10729_s3 + $0x6cc] ss:$16 sps:$4 sm:$0xff]  }
 0x21e   :  { %3688 = vmatmul.mubr.bf16.gmra.mrb[124].mxu0 %v10852_v7  ;;  %4307 = vmatmul.mubr.bf16.gmra.mrb[204].mxu1 %v9240_v4  ;;  %v10856_v4 = vld [vmem:[#allocation27_spill] sm:$0xff] }
 0x21f   :  { %3697 = vmatprep.mubr.bf16.mxu0 %v10853_v50  ;;  %4316 = vmatprep.mubr.bf16.mxu1 %v9290_v19  ;;  %v10857_v19 = vld [vmem:[#allocation30_spill] sm:$0xff] }
 0x220   :  { %3807 = vmatpush1.bf16.msra.mxu0 %v7557_v15  ;;  %v7581_v15 = vld [vmem:[%s10729_s3 + $0x6c8] ss:$16 sps:$4 sm:$0xff]  }
 0x221   :  { %3808 = vmatprep.subr.bf16.mxu0 %v7562_v57  ;;  %v7589_v57 = vld [vmem:[%s10729_s3 + $0x70c] ss:$16 sps:$4 sm:$0xff]  }
 0x224   :  { %3809 = vmatpush1.bf16.msra.mxu0 %v7560_v22  ;;  %v7587_v22 = vld [vmem:[%s10729_s3 + $0x708] ss:$16 sps:$4 sm:$0xff]  }
 0x226   :  { %3698 = vmatmul.mubr.bf16.gmra.mrb[128].mxu0 %v10854_v43  ;;  %4317 = vmatmul.mubr.bf16.gmra.mrb[208].mxu1 %v9284_v48  ;;  %v10860_v48 = vld [vmem:[#allocation31_spill] sm:$0xff] }
 0x227   :  { %3707 = vmatprep.mubr.bf16.mxu0 %v10855_v18  ;;  %4326 = vmatprep.mubr.bf16.mxu1 %v9325_v9  ;;  %v7563_v9 = vld [vmem:[%s10729_s3 + $0x608] ss:$16 sps:$4 sm:$0xff]  }
 0x22e   :  { %3708 = vmatmul.mubr.bf16.gmra.mrb[132].mxu0 %v10856_v4  ;;  %4327 = vmatmul.mubr.bf16.gmra.mrb[212].mxu1 %v9319_v62  ;;  %v7613_v62 = vld [vmem:[%s10731_s5 + $0x4] ss:$8 sps:$4 sm:$0xff]  }
 0x22f   :  { %3717 = vmatprep.mubr.bf16.mxu0 %v10857_v19  ;;  %4336 = vmatprep.mubr.bf16.mxu1 %v9359_v16  ;;  %v7568_v16 = vld [vmem:[%s10729_s3 + $0x62c] ss:$16 sps:$4 sm:$0xff]  }
 0x230   :  { %5331 = vmatprep.subr.bf16.mxu0 %v7613_v62  ;;  %v7616_v62 = vld [vmem:[%s10731_s5 + $0x14] ss:$8 sps:$4 sm:$0xff]  }
 0x236   :  { %3718 = vmatmul.mubr.bf16.gmra.mrb[136].mxu0 %v10858_v59  ;;  %4337 = vmatmul.mubr.bf16.gmra.mrb[216].mxu1 %v9353_v0  ;;  %v10861_v0 = vld [vmem:[#allocation33_spill] sm:$0xff] }
 0x237   :  { %3727 = vmatprep.mubr.bf16.mxu0 %v10859_v36  ;;  %4346 = vmatprep.mubr.bf16.mxu1 %v9397_v1  ;;  %v7566_v1 = vld [vmem:[%s10729_s3 + $0x628] ss:$16 sps:$4 sm:$0xff]  }
 0x23e   :  { %3728 = vmatmul.mubr.bf16.gmra.mrb[140].mxu0 %v10860_v48  ;;  %4347 = vmatmul.mubr.bf16.gmra.mrb[220].mxu1 %v9392_v40  ;;  %v10862_v40 = vld [vmem:[#allocation35_spill] sm:$0xff] }
 0x23f   :  { %3737 = vmatprep.mubr.bf16.mxu0 %v9292_v29  ;;  %4389 = vmatprep.mubr.bf16.mxu1 %v10826_v10  ;;  %v7571_v10 = vld [vmem:[%s10729_s3 + $0x64c] ss:$16 sps:$4 sm:$0xff]  }
 0x246   :  { %3738 = vmatmul.mubr.bf16.gmra.mrb[144].mxu0 %v10861_v0  ;;  %4390 = vmatmul.mubr.bf16.vlgmr.msra.gmra.mrb[160].mxu1 %v10828_v39  ;;  %v7574_v39 = vld [vmem:[%s10729_s3 + $0x66c] ss:$16 sps:$4 sm:$0xff]  }
 0x247   :  { %3747 = vmatprep.mubr.bf16.mxu0 %v10862_v40  ;;  %4399 = vmatprep.mubr.bf16.mxu1 %v10829_v26  ;;  %v10863_v26 = vld [vmem:[#allocation34_spill] sm:$0xff] }
 0x248   :  { %4551 = vmatpush1.bf16.msra.mxu1 %v7563_v9  ;;  %v7590_v9 = vld [vmem:[%s10729_s3 + $0x728] ss:$16 sps:$4 sm:$0xff]  }
 0x249   :  { %4552 = vmatprep.subr.bf16.mxu1 %v7568_v16  ;;  %v7614_v16 = vld [vmem:[%s10731_s5 + $0x10] ss:$8 sps:$4 sm:$0xff]  }
 0x24c   :  { %4553 = vmatpush1.bf16.msra.mxu1 %v7566_v1  ;;  %v7595_v1 = vld [vmem:[%s10729_s3 + $0x74c] ss:$16 sps:$4 sm:$0xff]  }
 0x24d   :  { %4554 = vmatprep.subr.bf16.mxu1 %v7571_v10  ;;  %v7617_v10 = vld [vmem:[%s10731_s5 + $0x20] ss:$8 sps:$4 sm:$0xff]  }
 0x24e   :  { %3748 = vmatmul.mubr.bf16.gmra.mrb[148].mxu0 %v10863_v26  ;;  %4400 = vmatmul.mubr.bf16.gmra.mrb[164].mxu1 %v10832_v23  ;;  %v7580_v23 = vld [vmem:[%s10729_s3 + $0x6ac] ss:$16 sps:$4 sm:$0xff]  }
 0x24f   :  { %3757 = vmatprep.mubr.bf16.mxu0 %v9361_v60  ;;  %4409 = vmatprep.mubr.bf16.mxu1 %v10833_v2  ;;  %v10864_v2 = vld [vmem:[#allocation36_spill] sm:$0xff] }
 0x250   :  { %4555 = vmatpush1.bf16.msra.mxu1 %v7569_v30  ;;  %v7598_v30 = vld [vmem:[%s10729_s3 + $0x76c] ss:$16 sps:$4 sm:$0xff]  }
 0x251   :  { %4556 = vmatprep.subr.bf16.mxu1 %v7574_v39  ;;  %v7622_v39 = vld [vmem:[%s10731_s5 + $0x34] ss:$8 sps:$4 sm:$0xff]  }
 0x254   :  { %4557 = vmatpush1.bf16.msra.mxu1 %v7572_v46  ;;  %v7596_v46 = vld [vmem:[%s10729_s3 + $0x768] ss:$16 sps:$4 sm:$0xff]  }
 0x255   :  { %4558 = vmatprep.subr.bf16.mxu1 %v7577_v44  ;;  %v7620_v44 = vld [vmem:[%s10731_s5 + $0x30] ss:$8 sps:$4 sm:$0xff]  }
 0x256   :  { %3758 = vmatmul.mubr.bf16.gmra.mrb[152].mxu0 %v10864_v2  ;;  %4410 = vmatmul.mubr.bf16.gmra.mrb[168].mxu1 %v10836_v37  ;;  %v7586_v37 = vld [vmem:[%s10729_s3 + $0x6ec] ss:$16 sps:$4 sm:$0xff]  }
 0x257   :  { %3767 = vmatprep.mubr.bf16.mxu0 %v9399_v6  ;;  %4419 = vmatprep.mubr.bf16.mxu1 %v10837_v35  ;;  %v7584_v35 = vld [vmem:[%s10729_s3 + $0x6e8] ss:$16 sps:$4 sm:$0xff]  }
 0x258   :  { %4559 = vmatpush1.bf16.msra.mxu1 %v7575_v53  ;;  %v7601_v53 = vld [vmem:[%s10729_s3 + $0x78c] ss:$16 sps:$4 sm:$0xff]  }
 0x259   :  { %4560 = vmatprep.subr.bf16.mxu1 %v7580_v23  ;;  %v7623_v23 = vld [vmem:[%s10731_s5 + $0x40] ss:$8 sps:$4 sm:$0xff]  }
 0x25c   :  { %4561 = vmatpush1.bf16.msra.mxu1 %v7578_v25  ;;  %v7604_v25 = vld [vmem:[%s10729_s3 + $0x7ac] ss:$16 sps:$4 sm:$0xff]  }
 0x25d   :  { %4562 = vmatprep.subr.bf16.mxu1 %v7583_v27  ;;  %v7628_v27 = vld [vmem:[%s10731_s5 + $0x54] ss:$8 sps:$4 sm:$0xff]  }
 0x25e   :  { %3768 = vmatmul.mubr.bf16.gmra.mrb[156].mxu0 %v9394_v51  ;;  %4420 = vmatmul.mubr.bf16.gmra.mrb[172].mxu1 %v10840_v52  ;;  %v7611_v52 = vld [vmem:[%s10731_s5] ss:$8 sps:$4 sm:$0xff]  }
 0x25f   :  { %3810 = vmatprep.mubr.bf16.mxu0 %v9423_v56  ;;  %4429 = vmatprep.mubr.bf16.mxu1 %v10841_v13  ;;  %v7592_v13 = vld [vmem:[%s10729_s3 + $0x72c] ss:$16 sps:$4 sm:$0xff]  }
 0x260   :  { %4563 = vmatpush1.bf16.msra.mxu1 %v7581_v15  ;;  %v7602_v15 = vld [vmem:[%s10729_s3 + $0x7a8] ss:$16 sps:$4 sm:$0xff]  }
 0x261   :  { %4564 = vmatprep.subr.bf16.mxu1 %v7586_v37  ;;  %v7626_v37 = vld [vmem:[%s10731_s5 + $0x50] ss:$8 sps:$4 sm:$0xff]  }
 0x264   :  { %4565 = vmatpush1.bf16.msra.mxu1 %v7584_v35  ;;  %v7607_v35 = vld [vmem:[%s10729_s3 + $0x7cc] ss:$16 sps:$4 sm:$0xff]  }
 0x265   :  { %4566 = vmatprep.subr.bf16.mxu1 %v7589_v57  ;;  %v7629_v57 = vld [vmem:[%s10731_s5 + $0x60] ss:$8 sps:$4 sm:$0xff]  }
 0x266   :  { %3811 = vmatmul.mubr.bf16.vlgmr.msra.gmra.mrb[96].mxu0 %v9420_v61  ;;  %4430 = vmatmul.mubr.bf16.gmra.mrb[176].mxu1 %v10843_v58  ;;  %v7619_v58 = vld [vmem:[%s10731_s5 + $0x24] ss:$8 sps:$4 sm:$0xff]  }
 0x267   :  { %3820 = vmatprep.mubr.bf16.mxu0 %v9435_v12  ;;  %4439 = vmatprep.mubr.bf16.mxu1 %v10844_v41  ;;  %v7593_v41 = vld [vmem:[%s10729_s3 + $0x748] ss:$16 sps:$4 sm:$0xff]  }
 0x268   :  { %4567 = vmatpush1.bf16.msra.mxu1 %v7587_v22  ;;  %5332 = vmatpush1.bf16.msra.mxu0 %v7611_v52  ;;  %v7610_v22 = vld [vmem:[%s10729_s3 + $0x7ec] ss:$16 sps:$4 sm:$0xff]  }
 0x269   :  { %4568 = vmatprep.subr.bf16.mxu1 %v7592_v13  ;;  %5333 = vmatprep.subr.bf16.mxu0 %v7616_v62  ;;  %v7634_v52 = vld [vmem:[%s10731_s5 + $0x74] ss:$8 sps:$4 sm:$0xff]   ;;  %v7608_v13 = vld [vmem:[%s10729_s3 + $0x7e8] ss:$16 sps:$4 sm:$0xff]  }
 0x26a   :  { %v7632_v62 = vld [vmem:[%s10731_s5 + $0x70] ss:$8 sps:$4 sm:$0xff]  }
 0x26c   :  { %4569 = vmatpush1.bf16.msra.mxu1 %v7590_v9  ;;  %5334 = vmatpush1.bf16.msra.mxu0 %v7614_v16  ;;  %v7640_v9 = vld [vmem:[%s10731_s5 + $0x94] ss:$8 sps:$4 sm:$0xff]   ;;  %v7638_v16 = vld [vmem:[%s10731_s5 + $0x90] ss:$8 sps:$4 sm:$0xff]  }
 0x26d   :  { %4570 = vmatprep.subr.bf16.mxu1 %v7595_v1  ;;  %5335 = vmatprep.subr.bf16.mxu0 %v7619_v58  ;;  %v10865_v1 = vld [vmem:[#allocation5_spill] sm:$0xff]  ;;  %v10866_v58 = vld [vmem:[#allocation7_spill] sm:$0xff] }
 0x26e   :  { %3821 = vmatmul.mubr.bf16.gmra.mrb[100].mxu0 %v9432_v8  ;;  %4440 = vmatmul.mubr.bf16.gmra.mrb[180].mxu1 %v10847_v54  ;;  %v7625_v54 = vld [vmem:[%s10731_s5 + $0x44] ss:$8 sps:$4 sm:$0xff]  }
 0x26f   :  { %3830 = vmatprep.mubr.bf16.mxu0 %v9447_v5  ;;  %4449 = vmatprep.mubr.bf16.mxu1 %v10848_v21  ;;  %v7599_v21 = vld [vmem:[%s10729_s3 + $0x788] ss:$16 sps:$4 sm:$0xff]  }
 0x270   :  { %4571 = vmatpush1.bf16.msra.mxu1 %v7593_v41  ;;  %5336 = vmatpush1.bf16.msra.mxu0 %v7617_v10  ;;  %v10867_v41 = vld [vmem:[#allocation6_spill] sm:$0xff]  ;;  %v10868_v10 = vld [vmem:[#allocation9_spill] sm:$0xff] }
 0x271   :  { %4572 = vmatprep.subr.bf16.mxu1 %v7598_v30  ;;  %5337 = vmatprep.subr.bf16.mxu0 %v7622_v39  ;;  %v10869_v30 = vld [vmem:[#allocation11_spill] sm:$0xff]  ;;  %v10870_v39 = vld [vmem:[#allocation12_spill] sm:$0xff] }
 0x274   :  { %4573 = vmatpush1.bf16.msra.mxu1 %v7596_v46  ;;  %5338 = vmatpush1.bf16.msra.mxu0 %v7620_v44  ;;  %v10872_v46 = vld [vmem:[#allocation10_spill] sm:$0xff]  ;;  %v10875_v44 = vld [vmem:[#allocation16_spill] sm:$0xff] }
 0x275   :  { %4574 = vmatprep.subr.bf16.mxu1 %v7601_v53  ;;  %5339 = vmatprep.subr.bf16.mxu0 %v7625_v54  ;;  %v7659_v54 = vld [vmem:[%s10731_s5 + $0x100] ss:$8 sps:$4 sm:$0xff]  }
 0x276   :  { %3831 = vmatmul.mubr.bf16.gmra.mrb[104].mxu0 %v9444_v24  ;;  %4450 = vmatmul.mubr.bf16.gmra.mrb[184].mxu1 %v10850_v49  ;;  %v7631_v49 = vld [vmem:[%s10731_s5 + $0x64] ss:$8 sps:$4 sm:$0xff]  }
 0x277   :  { %3840 = vmatprep.mubr.bf16.mxu0 %v9459_v11  ;;  %4459 = vmatprep.mubr.bf16.mxu1 %v10851_v3  ;;  %v7605_v3 = vld [vmem:[%s10729_s3 + $0x7c8] ss:$16 sps:$4 sm:$0xff]  }
 0x278   :  { %4575 = vmatpush1.bf16.msra.mxu1 %v7599_v21  ;;  %5340 = vmatpush1.bf16.msra.mxu0 %v7623_v23 }
 0x279   :  { %4576 = vmatprep.subr.bf16.mxu1 %v7604_v25  ;;  %5341 = vmatprep.subr.bf16.mxu0 %v7628_v27  ;;  %v7664_v25 = vld [vmem:[%s10731_s5 + $0x114] ss:$8 sps:$4 sm:$0xff]  }
 0x27c   :  { %4577 = vmatpush1.bf16.msra.mxu1 %v7602_v15  ;;  %5342 = vmatpush1.bf16.msra.mxu0 %v7626_v37 }
 0x27d   :  { %4578 = vmatprep.subr.bf16.mxu1 %v7607_v35  ;;  %5343 = vmatprep.subr.bf16.mxu0 %v7631_v49  ;;  %v7662_v49 = vld [vmem:[%s10731_s5 + $0x110] ss:$8 sps:$4 sm:$0xff]  }
 0x27e   :  { %3841 = vmatmul.mubr.bf16.gmra.mrb[108].mxu0 %v9456_v38  ;;  %4460 = vmatmul.mubr.bf16.gmra.mrb[188].mxu1 %v10852_v7  ;;  %v7637_v7 = vld [vmem:[%s10731_s5 + $0x84] ss:$8 sps:$4 sm:$0xff]  }
 0x27f   :  { %3850 = vmatprep.mubr.bf16.mxu0 %v9471_v42  ;;  %4469 = vmatprep.mubr.bf16.mxu1 %v10853_v50  ;;  %v7635_v50 = vld [vmem:[%s10731_s5 + $0x80] ss:$8 sps:$4 sm:$0xff]  }
 0x280   :  { %4579 = vmatpush1.bf16.msra.mxu1 %v7605_v3  ;;  %5344 = vmatpush1.bf16.msra.mxu0 %v7629_v57 }
 0x281   :  { %4580 = vmatprep.subr.bf16.mxu1 %v7610_v22  ;;  %5345 = vmatprep.subr.bf16.mxu0 %v7634_v52  ;;  %v7667_v22 = vld [vmem:[%s10731_s5 + $0x124] ss:$8 sps:$4 sm:$0xff]  }
 0x284   :  { %4581 = vmatpush1.bf16.msra.mxu1 %v7608_v13  ;;  %5346 = vmatpush1.bf16.msra.mxu0 %v7632_v62 }
 0x285   :  { %5347 = vmatprep.subr.bf16.mxu0 %v7637_v7 }
 0x286   :  { %3851 = vmatmul.mubr.bf16.gmra.mrb[112].mxu0 %v9468_v17  ;;  %4470 = vmatmul.mubr.bf16.gmra.mrb[192].mxu1 %v10854_v43  ;;  %v7641_v43 = vld [vmem:[%s10731_s5 + $0xa0] ss:$8 sps:$4 sm:$0xff]  }
 0x287   :  { %3860 = vmatprep.mubr.bf16.mxu0 %v9495_v31  ;;  %4479 = vmatprep.mubr.bf16.mxu1 %v10855_v18  ;;  %v7643_v18 = vld [vmem:[%s10731_s5 + $0xa4] ss:$8 sps:$4 sm:$0xff]  }
 0x288   :  { %5348 = vmatpush1.bf16.msra.mxu0 %v7635_v50 }
 0x289   :  { %5349 = vmatprep.subr.bf16.mxu0 %v7640_v9  ;;  %v7665_v9 = vld [vmem:[%s10731_s5 + $0x120] ss:$8 sps:$4 sm:$0xff]  }
 0x28c   :  { %5350 = vmatpush1.bf16.msra.mxu0 %v7638_v16 }
 0x28d   :  { %5351 = vmatprep.subr.bf16.mxu0 %v7643_v18  ;;  %v7670_v18 = vld [vmem:[%s10731_s5 + $0x134] ss:$8 sps:$4 sm:$0xff]  }
 0x28e   :  { %3861 = vmatmul.mubr.bf16.gmra.mrb[116].mxu0 %v9492_v28  ;;  %4480 = vmatmul.mubr.bf16.gmra.mrb[196].mxu1 %v10856_v4  ;;  %v7644_v4 = vld [vmem:[%s10731_s5 + $0xb0] ss:$8 sps:$4 sm:$0xff]  }
 0x28f   :  { %3870 = vmatprep.mubr.bf16.mxu0 %v9519_v32  ;;  %4489 = vmatprep.mubr.bf16.mxu1 %v10857_v19  ;;  %v7646_v19 = vld [vmem:[%s10731_s5 + $0xb4] ss:$8 sps:$4 sm:$0xff]  }
 0x290   :  { %5352 = vmatpush1.bf16.msra.mxu0 %v7641_v43 }
 0x291   :  { %5353 = vmatprep.subr.bf16.mxu0 %v7646_v19 }
 0x294   :  { %5354 = vmatpush1.bf16.msra.mxu0 %v7644_v4 }
 0x296   :  { %3871 = vmatmul.mubr.bf16.gmra.mrb[120].mxu0 %v9516_v55  ;;  %4490 = vmatmul.mubr.bf16.gmra.mrb[200].mxu1 %v10858_v59  ;;  %v7647_v59 = vld [vmem:[%s10731_s5 + $0xc0] ss:$8 sps:$4 sm:$0xff]  }
 0x297   :  { %3880 = vmatprep.mubr.bf16.mxu0 %v9543_v63  ;;  %4499 = vmatprep.mubr.bf16.mxu1 %v10859_v36  ;;  %v7649_v36 = vld [vmem:[%s10731_s5 + $0xc4] ss:$8 sps:$4 sm:$0xff]  }
 0x298   :  { %5355 = vmatprep.subr.bf16.mxu0 %v7649_v36 }
 0x299   :  { %5356 = vmatpush1.bf16.msra.mxu0 %v7647_v59 }
 0x29e   :  { %3881 = vmatmul.mubr.bf16.gmra.mrb[124].mxu0 %v9540_v33  ;;  %4500 = vmatmul.mubr.bf16.gmra.mrb[204].mxu1 %v10860_v48  ;;  %v7652_v48 = vld [vmem:[%s10731_s5 + $0xd4] ss:$8 sps:$4 sm:$0xff]  }
 0x29f   :  { %3890 = vmatprep.mubr.bf16.mxu0 %v9570_v20  ;;  %4509 = vmatprep.mubr.bf16.mxu1 %v9292_v29  ;;  %v7650_v29 = vld [vmem:[%s10731_s5 + $0xd0] ss:$8 sps:$4 sm:$0xff]  }
 0x2a0   :  { %5357 = vmatprep.subr.bf16.mxu0 %v7652_v48 }
 0x2a1   :  { %5358 = vmatpush1.bf16.msra.mxu0 %v7650_v29 }
 0x2a6   :  { %3891 = vmatmul.mubr.bf16.gmra.mrb[128].mxu0 %v10865_v1  ;;  %4510 = vmatmul.mubr.bf16.gmra.mrb[208].mxu1 %v10861_v0  ;;  %v7653_v0 = vld [vmem:[%s10731_s5 + $0xe0] ss:$8 sps:$4 sm:$0xff]  }
 0x2a7   :  { %3900 = vmatprep.mubr.bf16.mxu0 %v10866_v58  ;;  %4519 = vmatprep.mubr.bf16.mxu1 %v10862_v40  ;;  %v7655_v40 = vld [vmem:[%s10731_s5 + $0xe4] ss:$8 sps:$4 sm:$0xff]  }
 0x2a8   :  { %5359 = vmatprep.subr.bf16.mxu0 %v7655_v40 }
 0x2a9   :  { %5360 = vmatpush1.bf16.msra.mxu0 %v7653_v0 }
 0x2ae   :  { %3901 = vmatmul.mubr.bf16.gmra.mrb[132].mxu0 %v10867_v41  ;;  %4520 = vmatmul.mubr.bf16.gmra.mrb[212].mxu1 %v10863_v26  ;;  %v10871_v26 = vld [vmem:[#allocation8_spill] sm:$0xff] }
 0x2af   :  { %3910 = vmatprep.mubr.bf16.mxu0 %v10868_v10  ;;  %4529 = vmatprep.mubr.bf16.mxu1 %v9361_v60  ;;  %v7658_v60 = vld [vmem:[%s10731_s5 + $0xf4] ss:$8 sps:$4 sm:$0xff]  }
 0x2b0   :  { %5361 = vmatprep.subr.bf16.mxu0 %v7658_v60 }
 0x2b6   :  { %3911 = vmatmul.mubr.bf16.gmra.mrb[136].mxu0 %v10869_v30  ;;  %4530 = vmatmul.mubr.bf16.gmra.mrb[216].mxu1 %v10864_v2  ;;  %v7656_v2 = vld [vmem:[%s10731_s5 + $0xf0] ss:$8 sps:$4 sm:$0xff]  }
 0x2b7   :  { %3920 = vmatprep.mubr.bf16.mxu0 %v10870_v39  ;;  %4539 = vmatprep.mubr.bf16.mxu1 %v9399_v6  ;;  %v10873_v6 = vld [vmem:[#allocation13_spill] sm:$0xff] }
 0x2b8   :  { %5362 = vmatpush1.bf16.msra.mxu0 %v7656_v2 }
 0x2be   :  { %3921 = vmatmul.mubr.bf16.gmra.mrb[140].mxu0 %v10871_v26  ;;  %4540 = vmatmul.mubr.bf16.gmra.mrb[220].mxu1 %v9394_v51  ;;  %v7661_v51 = vld [vmem:[%s10731_s5 + $0x104] ss:$8 sps:$4 sm:$0xff]  }
 0x2bf   :  { %3930 = vmatprep.mubr.bf16.mxu0 %v9708_v34  ;;  %4582 = vmatprep.mubr.bf16.mxu1 %v9423_v56  ;;  %v10874_v56 = vld [vmem:[#allocation14_spill] sm:$0xff] }
 0x2c0   :  { %5524 = vmatprep.subr.bf16.mxu0 %v7661_v51 }
 0x2c6   :  { %3931 = vmatmul.mubr.bf16.gmra.mrb[144].mxu0 %v10872_v46  ;;  %4583 = vmatmul.mubr.bf16.vlgmr.msra.gmra.mrb[160].mxu1 %v9420_v61  ;;  %v10107_v61 = vld [vmem:[%s10732_s4] sm:$0xf] }
 0x2c7   :  { %3940 = vmatprep.mubr.bf16.mxu0 %v10873_v6  ;;  %4592 = vmatprep.mubr.bf16.mxu1 %v9435_v12 }
 0x2ce   :  { %3941 = vmatmul.mubr.bf16.gmra.mrb[148].mxu0 %v10874_v56  ;;  %4593 = vmatmul.mubr.bf16.gmra.mrb[164].mxu1 %v9432_v8  ;;  %v10876_v8 = vld [vmem:[#allocation3_spill] sm:$0xff] }
 0x2cf   :  { %3950 = vmatprep.mubr.bf16.mxu0 %v9759_v14  ;;  %4602 = vmatprep.mubr.bf16.mxu1 %v9447_v5  ;;  %v10112_v12 = vrot.slane %v10107_v61, %v10876_v8 }
 0x2d6   :  { %3951 = vmatmul.mubr.bf16.gmra.mrb[152].mxu0 %v10875_v44  ;;  %4603 = vmatmul.mubr.bf16.gmra.mrb[168].mxu1 %v9444_v24  ;;  %v10877_v24 = vld [vmem:[#allocation4_spill] sm:$0xff] }
 0x2d7   :  { %3960 = vmatprep.mubr.bf16.mxu0 %v9782_v47  ;;  %4612 = vmatprep.mubr.bf16.mxu1 %v9459_v11  ;;  %v10117_v5 = vrot.slane %v10107_v61, %v10877_v24 }
 0x2de   :  { %3961 = vmatmul.mubr.bf16.gmra.mrb[156].mxu0 %v9780_v45  ;;  %4613 = vmatmul.mubr.bf16.gmra.mrb[172].mxu1 %v9456_v38 }
 0x2df   :  { %4622 = vmatprep.mubr.bf16.mxu1 %v9471_v42 }
 0x2e6   :  { %4623 = vmatmul.mubr.bf16.gmra.mrb[176].mxu1 %v9468_v17 }
 0x2e7   :  { %4632 = vmatprep.mubr.bf16.mxu1 %v9495_v31 }
 0x2ee   :  { %4633 = vmatmul.mubr.bf16.gmra.mrb[180].mxu1 %v9492_v28 }
 0x2ef   :  { %4642 = vmatprep.mubr.bf16.mxu1 %v9519_v32 }
 0x2f6   :  { %4643 = vmatmul.mubr.bf16.gmra.mrb[184].mxu1 %v9516_v55 }
 0x2f7   :  { %4652 = vmatprep.mubr.bf16.mxu1 %v9543_v63 }
 0x2fe   :  { %4653 = vmatmul.mubr.bf16.gmra.mrb[188].mxu1 %v9540_v33 }
 0x2ff   :  { %4662 = vmatprep.mubr.bf16.mxu1 %v9570_v20 }
 0x306   :  { %4663 = vmatmul.mubr.bf16.gmra.mrb[192].mxu1 %v10865_v1 }
 0x307   :  { %4672 = vmatprep.mubr.bf16.mxu1 %v10866_v58  ;;  %v7668_v58 = vld [vmem:[%s10731_s5 + $0x130] ss:$8 sps:$4 sm:$0xff]  }
 0x30e   :  { %4673 = vmatmul.mubr.bf16.gmra.mrb[196].mxu1 %v10867_v41  ;;  %v7673_v41 = vld [vmem:[%s10731_s5 + $0x144] ss:$8 sps:$4 sm:$0xff]  }
 0x30f   :  { %4682 = vmatprep.mubr.bf16.mxu1 %v10868_v10 }
 0x316   :  { %4683 = vmatmul.mubr.bf16.gmra.mrb[200].mxu1 %v10869_v30 }
 0x317   :  { %4692 = vmatprep.mubr.bf16.mxu1 %v10870_v39 }
 0x31e   :  { %4693 = vmatmul.mubr.bf16.gmra.mrb[204].mxu1 %v10871_v26  ;;  %v7671_v26 = vld [vmem:[%s10731_s5 + $0x140] ss:$8 sps:$4 sm:$0xff]  }
 0x31f   :  { %4702 = vmatprep.mubr.bf16.mxu1 %v9708_v34 }
 0x326   :  { %4703 = vmatmul.mubr.bf16.gmra.mrb[208].mxu1 %v10872_v46  ;;  %v7676_v46 = vld [vmem:[%s10731_s5 + $0x154] ss:$8 sps:$4 sm:$0xff]  }
 0x327   :  { %4712 = vmatprep.mubr.bf16.mxu1 %v10873_v6 }
 0x32e   :  { %4713 = vmatmul.mubr.bf16.gmra.mrb[212].mxu1 %v10874_v56 }
 0x32f   :  { %4722 = vmatprep.mubr.bf16.mxu1 %v9759_v14 }
 0x336   :  { %4723 = vmatmul.mubr.bf16.gmra.mrb[216].mxu1 %v10875_v44 }
 0x337   :  { %4732 = vmatprep.mubr.bf16.mxu1 %v9782_v47 }
 0x339   :  { %v3812_v38 = vpop.f32.mrb[96].mxu0 }
 0x33a   :  { %v6581_v11 = vadd.f32 %v3812_v38, %v10112_v12  ;;  %v3814_v17 = vpop.f32.mrb[97].mxu0 }
 0x33b   :  { %v6582_v42 = vadd.f32 %v3814_v17, %v10117_v5  ;;  %v3816_v28 = vpop.f32.mrb[98].mxu0 }
 0x33c   :  { %v6583_v31 = vadd.f32 %v3816_v28, %v10112_v12  ;;  %v3818_v55 = vpop.f32.mrb[99].mxu0  ;;  %v4743_v33 = vmax.f32 %v6581_v11, 0.0  ;;  %v7674_v11 = vld [vmem:[%s10731_s5 + $0x150] ss:$8 sps:$4 sm:$0xff]   ;;  %v7679_v28 = vld [vmem:[%s10731_s5 + $0x164] ss:$8 sps:$4 sm:$0xff]  }
 0x33d   :  { %v6584_v32 = vadd.f32 %v3818_v55, %v10117_v5  ;;  %v4744_v20 = vmax.f32 %v6582_v42, 0.0 }
 0x33e   :  { %v4747_v63 = vmax.f32 %v6583_v31, 0.0  ;;  %4733 = vmatmul.mubr.bf16.gmra.mrb[220].mxu1 %v9780_v45 }
 0x33f   :  { %v4748_v34 = vmax.f32 %v6584_v32, 0.0 }
 0x340   :  { %v4871_v14 = vpack.c.bf16 %v4747_v63, %v4743_v33 }
 0x341   :  { %v4872_v47 = vpack.c.bf16 %v4748_v34, %v4744_v20  ;;  %v3822_v53 = vpop.f32.mrb[100].mxu0  ;;  %v7677_v20 = vld [vmem:[%s10731_s5 + $0x160] ss:$8 sps:$4 sm:$0xff]  }
 0x342   :  { %v6585_v21 = vadd.f32 %v3822_v53, %v10112_v12  ;;  %v3824_v23 = vpop.f32.mrb[101].mxu0 }
 0x343   :  { %v6586_v27 = vadd.f32 %v3824_v23, %v10117_v5  ;;  %v3826_v15 = vpop.f32.mrb[102].mxu0  ;;  %5363 = vmatprep.mubr.bf16.mxu0 %v4872_v47  ;;  %v7682_v47 = vld [vmem:[%s10731_s5 + $0x174] ss:$8 sps:$4 sm:$0xff]  }
 0x344   :  { %v6587_v45 = vadd.f32 %v3826_v15, %v10112_v12  ;;  %v3828_v37 = vpop.f32.mrb[103].mxu0  ;;  %5364 = vmatmul.mubr.bf16.vlgmr.msra.gmra.mrb[160].mxu0 %v4871_v14  ;;  %v4751_v3 = vmax.f32 %v6585_v21, 0.0 }
 0x345   :  { %v6588_v35 = vadd.f32 %v3828_v37, %v10117_v5  ;;  %5525 = vmatpush1.bf16.msra.mxu0 %v7659_v54  ;;  %v4752_v52 = vmax.f32 %v6586_v27, 0.0  ;;  %v7680_v27 = vld [vmem:[%s10731_s5 + $0x170] ss:$8 sps:$4 sm:$0xff]   ;;  %v7685_v37 = vld [vmem:[%s10731_s5 + $0x184] ss:$8 sps:$4 sm:$0xff]  }
 0x346   :  { %v4755_v57 = vmax.f32 %v6587_v45, 0.0  ;;  %5526 = vmatprep.subr.bf16.mxu0 %v7664_v25 }
 0x347   :  { %v4756_v13 = vmax.f32 %v6588_v35, 0.0 }
 0x348   :  { %v4875_v62 = vpack.c.bf16 %v4755_v57, %v4751_v3 }
 0x349   :  { %v4876_v7 = vpack.c.bf16 %v4756_v13, %v4752_v52  ;;  %v3832_v50 = vpop.f32.mrb[104].mxu0  ;;  %5527 = vmatpush1.bf16.msra.mxu0 %v7662_v49  ;;  %v7683_v52 = vld [vmem:[%s10731_s5 + $0x180] ss:$8 sps:$4 sm:$0xff]  }
 0x34a   :  { %v6589_v16 = vadd.f32 %v3832_v50, %v10112_v12  ;;  %v3834_v43 = vpop.f32.mrb[105].mxu0  ;;  %5528 = vmatprep.subr.bf16.mxu0 %v7667_v22 }
 0x34b   :  { %v6590_v4 = vadd.f32 %v3834_v43, %v10117_v5  ;;  %v3836_v19 = vpop.f32.mrb[106].mxu0  ;;  %5373 = vmatprep.mubr.bf16.mxu0 %v4876_v7  ;;  %v7688_v7 = vld [vmem:[%s10731_s5 + $0x194] ss:$8 sps:$4 sm:$0xff]  }
 0x34c   :  { %v6591_v59 = vadd.f32 %v3836_v19, %v10112_v12  ;;  %v3838_v36 = vpop.f32.mrb[107].mxu0  ;;  %5374 = vmatmul.mubr.bf16.gmra.mrb[164].mxu0 %v4875_v62  ;;  %v4759_v29 = vmax.f32 %v6589_v16, 0.0 }
 0x34d   :  { %v6592_v1 = vadd.f32 %v3838_v36, %v10117_v5  ;;  %5529 = vmatpush1.bf16.msra.mxu0 %v7665_v9  ;;  %v4760_v10 = vmax.f32 %v6590_v4, 0.0  ;;  %v7686_v4 = vld [vmem:[%s10731_s5 + $0x190] ss:$8 sps:$4 sm:$0xff]   ;;  %v7691_v36 = vld [vmem:[%s10731_s5 + $0x1a4] ss:$8 sps:$4 sm:$0xff]  }
 0x34e   :  { %v4763_v48 = vmax.f32 %v6591_v59, 0.0  ;;  %5530 = vmatprep.subr.bf16.mxu0 %v7670_v18 }
 0x34f   :  { %v4764_v0 = vmax.f32 %v6592_v1, 0.0 }
 0x350   :  { %v4879_v40 = vpack.c.bf16 %v4763_v48, %v4759_v29 }
 0x351   :  { %v4880_v30 = vpack.c.bf16 %v4764_v0, %v4760_v10  ;;  %v3842_v39 = vpop.f32.mrb[108].mxu0  ;;  %5531 = vmatpush1.bf16.msra.mxu0 %v7668_v58  ;;  %v7689_v10 = vld [vmem:[%s10731_s5 + $0x1a0] ss:$8 sps:$4 sm:$0xff]  }
 0x352   :  { %v6593_v60 = vadd.f32 %v3842_v39, %v10112_v12  ;;  %v3844_v2 = vpop.f32.mrb[109].mxu0  ;;  %5532 = vmatprep.subr.bf16.mxu0 %v7673_v41 }
 0x353   :  { %v6594_v6 = vadd.f32 %v3844_v2, %v10117_v5  ;;  %v3846_v51 = vpop.f32.mrb[110].mxu0  ;;  %5383 = vmatprep.mubr.bf16.mxu0 %v4880_v30  ;;  %v7694_v30 = vld [vmem:[%s10731_s5 + $0x1b4] ss:$8 sps:$4 sm:$0xff]  }
 0x354   :  { %v6595_v56 = vadd.f32 %v3846_v51, %v10112_v12  ;;  %v3848_v44 = vpop.f32.mrb[111].mxu0  ;;  %5384 = vmatmul.mubr.bf16.gmra.mrb[168].mxu0 %v4879_v40  ;;  %v4767_v17 = vmax.f32 %v6593_v60, 0.0 }
 0x355   :  { %v6596_v38 = vadd.f32 %v3848_v44, %v10117_v5  ;;  %5533 = vmatpush1.bf16.msra.mxu0 %v7671_v26  ;;  %v4768_v31 = vmax.f32 %v6594_v6, 0.0  ;;  %v7692_v6 = vld [vmem:[%s10731_s5 + $0x1b0] ss:$8 sps:$4 sm:$0xff]   ;;  %v7697_v44 = vld [vmem:[%s10731_s5 + $0x1c4] ss:$8 sps:$4 sm:$0xff]  }
 0x356   :  { %v4771_v42 = vmax.f32 %v6595_v56, 0.0  ;;  %5534 = vmatprep.subr.bf16.mxu0 %v7676_v46 }
 0x357   :  { %v4772_v55 = vmax.f32 %v6596_v38, 0.0 }
 0x358   :  { %v4883_v32 = vpack.c.bf16 %v4771_v42, %v4767_v17 }
 0x359   :  { %v4884_v33 = vpack.c.bf16 %v4772_v55, %v4768_v31  ;;  %v3852_v63 = vpop.f32.mrb[112].mxu0  ;;  %5535 = vmatpush1.bf16.msra.mxu0 %v7674_v11  ;;  %v7695_v31 = vld [vmem:[%s10731_s5 + $0x1c0] ss:$8 sps:$4 sm:$0xff]  }
 0x35a   :  { %v6597_v34 = vadd.f32 %v3852_v63, %v10112_v12  ;;  %v3854_v14 = vpop.f32.mrb[113].mxu0  ;;  %5536 = vmatprep.subr.bf16.mxu0 %v7679_v28 }
 0x35b   :  { %v6598_v53 = vadd.f32 %v3854_v14, %v10117_v5  ;;  %v3856_v54 = vpop.f32.mrb[114].mxu0  ;;  %5393 = vmatprep.mubr.bf16.mxu0 %v4884_v33  ;;  %v7700_v33 = vld [vmem:[%s10731_s5 + $0x1d4] ss:$8 sps:$4 sm:$0xff]  }
 0x35c   :  { %v6599_v21 = vadd.f32 %v3856_v54, %v10112_v12  ;;  %v3858_v23 = vpop.f32.mrb[115].mxu0  ;;  %5394 = vmatmul.mubr.bf16.gmra.mrb[172].mxu0 %v4883_v32  ;;  %v4775_v15 = vmax.f32 %v6597_v34, 0.0 }
 0x35d   :  { %v6600_v25 = vadd.f32 %v3858_v23, %v10117_v5  ;;  %5537 = vmatpush1.bf16.msra.mxu0 %v7677_v20  ;;  %v4776_v35 = vmax.f32 %v6598_v53, 0.0  ;;  %v7698_v53 = vld [vmem:[%s10731_s5 + $0x1d0] ss:$8 sps:$4 sm:$0xff]   ;;  %v7703_v23 = vld [vmem:[%s10731_s5 + $0x1e4] ss:$8 sps:$4 sm:$0xff]  }
 0x35e   :  { %v4779_v45 = vmax.f32 %v6599_v21, 0.0  ;;  %5538 = vmatprep.subr.bf16.mxu0 %v7682_v47 }
 0x35f   :  { %v4780_v49 = vmax.f32 %v6600_v25, 0.0 }
 0x360   :  { %v4887_v3 = vpack.c.bf16 %v4779_v45, %v4775_v15 }
 0x361   :  { %v4888_v57 = vpack.c.bf16 %v4780_v49, %v4776_v35  ;;  %v3862_v22 = vpop.f32.mrb[116].mxu0  ;;  %5539 = vmatpush1.bf16.msra.mxu0 %v7680_v27  ;;  %v7701_v35 = vld [vmem:[%s10731_s5 + $0x1e0] ss:$8 sps:$4 sm:$0xff]  }
 0x362   :  { %v6601_v13 = vadd.f32 %v3862_v22, %v10112_v12  ;;  %v3864_v62 = vpop.f32.mrb[117].mxu0  ;;  %5540 = vmatprep.subr.bf16.mxu0 %v7685_v37 }
 0x363   :  { %v6602_v50 = vadd.f32 %v3864_v62, %v10117_v5  ;;  %v3866_v9 = vpop.f32.mrb[118].mxu0  ;;  %5403 = vmatprep.mubr.bf16.mxu0 %v4888_v57  ;;  %v7706_v57 = vld [vmem:[%s10731_s5 + $0x1f4] ss:$8 sps:$4 sm:$0xff]  }
 0x364   :  { %v6603_v16 = vadd.f32 %v3866_v9, %v10112_v12  ;;  %v3868_v43 = vpop.f32.mrb[119].mxu0  ;;  %5404 = vmatmul.mubr.bf16.gmra.mrb[176].mxu0 %v4887_v3  ;;  %v4783_v19 = vmax.f32 %v6601_v13, 0.0 }
 0x365   :  { %v6604_v18 = vadd.f32 %v3868_v43, %v10117_v5  ;;  %5541 = vmatpush1.bf16.msra.mxu0 %v7683_v52  ;;  %v4784_v1 = vmax.f32 %v6602_v50, 0.0  ;;  %v7704_v50 = vld [vmem:[%s10731_s5 + $0x1f0] ss:$8 sps:$4 sm:$0xff]  }
 0x366   :  { %v4787_v59 = vmax.f32 %v6603_v16, 0.0  ;;  %5542 = vmatprep.subr.bf16.mxu0 %v7688_v7 }
 0x367   :  { %v4788_v58 = vmax.f32 %v6604_v18, 0.0 }
 0x368   :  { %v4891_v29 = vpack.c.bf16 %v4787_v59, %v4783_v19 }
 0x369   :  { %v4892_v48 = vpack.c.bf16 %v4788_v58, %v4784_v1  ;;  %v3872_v41 = vpop.f32.mrb[120].mxu0  ;;  %5543 = vmatpush1.bf16.msra.mxu0 %v7686_v4 }
 0x36a   :  { %v6605_v0 = vadd.f32 %v3872_v41, %v10112_v12  ;;  %v3874_v40 = vpop.f32.mrb[121].mxu0  ;;  %5544 = vmatprep.subr.bf16.mxu0 %v7691_v36 }
 0x36b   :  { %v6606_v39 = vadd.f32 %v3874_v40, %v10117_v5  ;;  %v3876_v26 = vpop.f32.mrb[122].mxu0  ;;  %5413 = vmatprep.mubr.bf16.mxu0 %v4892_v48 }
 0x36c   :  { %v6607_v60 = vadd.f32 %v3876_v26, %v10112_v12  ;;  %v3878_v2 = vpop.f32.mrb[123].mxu0  ;;  %5414 = vmatmul.mubr.bf16.gmra.mrb[180].mxu0 %v4891_v29  ;;  %v4791_v51 = vmax.f32 %v6605_v0, 0.0 }
 0x36d   :  { %v6608_v46 = vadd.f32 %v3878_v2, %v10117_v5  ;;  %5545 = vmatpush1.bf16.msra.mxu0 %v7689_v10  ;;  %v4792_v38 = vmax.f32 %v6606_v39, 0.0 }
 0x36e   :  { %v4795_v56 = vmax.f32 %v6607_v60, 0.0  ;;  %5546 = vmatprep.subr.bf16.mxu0 %v7694_v30 }
 0x36f   :  { %v4796_v11 = vmax.f32 %v6608_v46, 0.0 }
 0x370   :  { %v4895_v17 = vpack.c.bf16 %v4795_v56, %v4791_v51 }
 0x371   :  { %v4896_v42 = vpack.c.bf16 %v4796_v11, %v4792_v38  ;;  %v3882_v28 = vpop.f32.mrb[124].mxu0  ;;  %5547 = vmatpush1.bf16.msra.mxu0 %v7692_v6 }
 0x372   :  { %v6609_v55 = vadd.f32 %v3882_v28, %v10112_v12  ;;  %v3884_v32 = vpop.f32.mrb[125].mxu0  ;;  %5548 = vmatprep.subr.bf16.mxu0 %v7697_v44 }
 0x373   :  { %v6610_v63 = vadd.f32 %v3884_v32, %v10117_v5  ;;  %v3886_v20 = vpop.f32.mrb[126].mxu0  ;;  %5423 = vmatprep.mubr.bf16.mxu0 %v4896_v42 }
 0x374   :  { %v6611_v34 = vadd.f32 %v3886_v20, %v10112_v12  ;;  %v3888_v14 = vpop.f32.mrb[127].mxu0  ;;  %5424 = vmatmul.mubr.bf16.gmra.mrb[184].mxu0 %v4895_v17  ;;  %v4799_v54 = vmax.f32 %v6609_v55, 0.0 }
 0x375   :  { %v6612_v47 = vadd.f32 %v3888_v14, %v10117_v5  ;;  %5549 = vmatpush1.bf16.msra.mxu0 %v7695_v31  ;;  %v4800_v25 = vmax.f32 %v6610_v63, 0.0 }
 0x376   :  { %v4803_v21 = vmax.f32 %v6611_v34, 0.0  ;;  %5550 = vmatprep.subr.bf16.mxu0 %v7700_v33 }
 0x377   :  { %v4804_v27 = vmax.f32 %v6612_v47, 0.0 }
 0x378   :  { %v4899_v15 = vpack.c.bf16 %v4803_v21, %v4799_v54 }
 0x379   :  { %v4900_v45 = vpack.c.bf16 %v4804_v27, %v4800_v25  ;;  %v3892_v37 = vpop.f32.mrb[128].mxu0  ;;  %5551 = vmatpush1.bf16.msra.mxu0 %v7698_v53  ;;  %v10878_v25 = vld [vmem:[#allocation2_spill] sm:$0xff] }
 0x37a   :  { %v6613_v49 = vadd.f32 %v3892_v37, %v10112_v12  ;;  %v3894_v3 = vpop.f32.mrb[129].mxu0  ;;  %5552 = vmatprep.subr.bf16.mxu0 %v7703_v23  ;;  %v10879_v27 = vsub.s32 2, %v10878_v25 }
 0x37b   :  { %v6614_v22 = vadd.f32 %v3894_v3, %v10117_v5  ;;  %v3896_v52 = vpop.f32.mrb[130].mxu0  ;;  %5433 = vmatprep.mubr.bf16.mxu0 %v4900_v45 }
 0x37c   :  { %v6615_v13 = vadd.f32 %v3896_v52, %v10112_v12  ;;  %v3898_v62 = vpop.f32.mrb[131].mxu0  ;;  %5434 = vmatmul.mubr.bf16.gmra.mrb[188].mxu0 %v4899_v15  ;;  %v4807_v9 = vmax.f32 %v6613_v49, 0.0  ;;  %v10264_v15 = vrot.slane %v10107_v61, %v10879_v27 }
 0x37d   :  { %v6616_v7 = vadd.f32 %v3898_v62, %v10117_v5  ;;  %5553 = vmatpush1.bf16.msra.mxu0 %v7701_v35  ;;  %v4808_v43 = vmax.f32 %v6614_v22, 0.0  ;;  %v10880_v35 = vsub.s32 3, %v10878_v25 }
 0x37e   :  { %v4811_v16 = vmax.f32 %v6615_v13, 0.0  ;;  %5554 = vmatprep.subr.bf16.mxu0 %v7706_v57 }
 0x37f   :  { %v4812_v18 = vmax.f32 %v6616_v7, 0.0  ;;  %v10269_v49 = vrot.slane %v10107_v61, %v10880_v35 }
 0x380   :  { %v4903_v4 = vpack.c.bf16 %v4811_v16, %v4807_v9 }
 0x381   :  { %v4904_v19 = vpack.c.bf16 %v4812_v18, %v4808_v43  ;;  %v3902_v59 = vpop.f32.mrb[132].mxu0  ;;  %5555 = vmatpush1.bf16.msra.mxu0 %v7704_v50 }
 0x382   :  { %v6617_v36 = vadd.f32 %v3902_v59, %v10112_v12  ;;  %v3904_v1 = vpop.f32.mrb[133].mxu0 }
 0x383   :  { %v6618_v58 = vadd.f32 %v3904_v1, %v10117_v5  ;;  %v3906_v29 = vpop.f32.mrb[134].mxu0  ;;  %5443 = vmatprep.mubr.bf16.mxu0 %v4904_v19 }
 0x384   :  { %v6619_v48 = vadd.f32 %v3906_v29, %v10112_v12  ;;  %v3908_v41 = vpop.f32.mrb[135].mxu0  ;;  %5444 = vmatmul.mubr.bf16.gmra.mrb[192].mxu0 %v4903_v4  ;;  %v4815_v0 = vmax.f32 %v6617_v36, 0.0 }
 0x385   :  { %v6620_v10 = vadd.f32 %v3908_v41, %v10117_v5  ;;  %v4816_v30 = vmax.f32 %v6618_v58, 0.0 }
 0x386   :  { %v4819_v40 = vmax.f32 %v6619_v48, 0.0 }
 0x387   :  { %v4820_v39 = vmax.f32 %v6620_v10, 0.0 }
 0x388   :  { %v4907_v26 = vpack.c.bf16 %v4819_v40, %v4815_v0  ;;  %v5781_v0 = vld [vmem:[%s10733_s7] sm:$0xff]  ;;  %v5782_v40 = vld [vmem:[%s10733_s7 + $0x8] sm:$0xff] }
 0x389   :  { %v4908_v60 = vpack.c.bf16 %v4820_v39, %v4816_v30  ;;  %v3912_v2 = vpop.f32.mrb[136].mxu0 }
 0x38a   :  { %v6621_v46 = vadd.f32 %v3912_v2, %v10112_v12  ;;  %v3914_v6 = vpop.f32.mrb[137].mxu0  ;;  %v6532_v2 = vpack.c.bf16 %v5782_v40, %v5781_v0  ;;  %v5785_v40 = vld [vmem:[%s10733_s7 + $0x20] sm:$0xff] }
 0x38b   :  { %v6622_v51 = vadd.f32 %v3914_v6, %v10117_v5  ;;  %v3916_v56 = vpop.f32.mrb[138].mxu0  ;;  %5453 = vmatprep.mubr.bf16.mxu0 %v4908_v60  ;;  %v7741_v60 = vmov 0.0|0.0  }
 0x38c   :  { %v6623_v44 = vadd.f32 %v3916_v56, %v10112_v12  ;;  %v3918_v38 = vpop.f32.mrb[139].mxu0  ;;  %5454 = vmatmul.mubr.bf16.gmra.mrb[196].mxu0 %v4907_v26  ;;  %v4823_v17 = vmax.f32 %v6621_v46, 0.0  ;;  %6531 = vmatprep.subr.bf16.mxu1 %v7741_v60 }
 0x38d   :  { %v6624_v11 = vadd.f32 %v3918_v38, %v10117_v5  ;;  %v4824_v28 = vmax.f32 %v6622_v51, 0.0  ;;  %6533 = vmatpush1.bf16.msra.mxu1 %v6532_v2 }
 0x38e   :  { %v4827_v42 = vmax.f32 %v6623_v44, 0.0  ;;  %6534 = vmatprep.subr.bf16.mxu1 %v7741_v60 }
 0x38f   :  { %v4828_v31 = vmax.f32 %v6624_v11, 0.0 }
 0x390   :  { %v4911_v55 = vpack.c.bf16 %v4827_v42, %v4823_v17 }
 0x391   :  { %v4912_v32 = vpack.c.bf16 %v4828_v31, %v4824_v28  ;;  %v3922_v33 = vpop.f32.mrb[140].mxu0 }
 0x392   :  { %v6625_v63 = vadd.f32 %v3922_v33, %v10112_v12  ;;  %v3924_v20 = vpop.f32.mrb[141].mxu0 }
 0x393   :  { %v6626_v34 = vadd.f32 %v3924_v20, %v10117_v5  ;;  %v3926_v14 = vpop.f32.mrb[142].mxu0  ;;  %5463 = vmatprep.mubr.bf16.mxu0 %v4912_v32 }
 0x394   :  { %v6627_v47 = vadd.f32 %v3926_v14, %v10112_v12  ;;  %v3928_v53 = vpop.f32.mrb[143].mxu0  ;;  %5464 = vmatmul.mubr.bf16.gmra.mrb[200].mxu0 %v4911_v55  ;;  %v4831_v21 = vmax.f32 %v6625_v63, 0.0 }
 0x395   :  { %v6628_v54 = vadd.f32 %v3928_v53, %v10117_v5  ;;  %v4832_v45 = vmax.f32 %v6626_v34, 0.0 }
 0x396   :  { %v4835_v23 = vmax.f32 %v6627_v47, 0.0 }
 0x397   :  { %v4836_v37 = vmax.f32 %v6628_v54, 0.0 }
 0x398   :  { %v4915_v3 = vpack.c.bf16 %v4835_v23, %v4831_v21  ;;  %v5783_v21 = vld [vmem:[%s10733_s7 + $0x10] sm:$0xff]  ;;  %v5784_v23 = vld [vmem:[%s10733_s7 + $0x18] sm:$0xff] }
 0x399   :  { %v4916_v57 = vpack.c.bf16 %v4836_v37, %v4832_v45  ;;  %v3932_v22 = vpop.f32.mrb[144].mxu0  ;;  %v4584_v52 = vpop.f32.mrb[160].mxu1  ;;  %v6535_v37 = vpack.c.bf16 %v5784_v23, %v5783_v21 }
 0x39a   :  { %v6629_v13 = vadd.f32 %v3932_v22, %v10112_v12  ;;  %v6645_v62 = vadd.f32 %v4584_v52, %v10264_v15  ;;  %v3934_v7 = vpop.f32.mrb[145].mxu0  ;;  %v4586_v50 = vpop.f32.mrb[161].mxu1 }
 0x39b   :  { %v6630_v9 = vadd.f32 %v3934_v7, %v10117_v5  ;;  %v6646_v16 = vadd.f32 %v4586_v50, %v10269_v49  ;;  %v3936_v43 = vpop.f32.mrb[146].mxu0  ;;  %v4588_v18 = vpop.f32.mrb[162].mxu1  ;;  %5473 = vmatprep.mubr.bf16.mxu0 %v4916_v57  ;;  %6536 = vmatpush1.bf16.msra.mxu1 %v6535_v37 }
 0x39c   :  { %v6631_v61 = vadd.f32 %v3936_v43, %v10112_v12  ;;  %v6647_v4 = vadd.f32 %v4588_v18, %v10264_v15  ;;  %v3938_v19 = vpop.f32.mrb[147].mxu0  ;;  %v4590_v59 = vpop.f32.mrb[163].mxu1  ;;  %5474 = vmatmul.mubr.bf16.gmra.mrb[204].mxu0 %v4915_v3  ;;  %v4839_v36 = vmax.f32 %v6629_v13, 0.0  ;;  %v4745_v1 = vmax.f32 %v6645_v62, 0.0  ;;  %6537 = vmatprep.subr.bf16.mxu1 %v7741_v60 }
 0x39d   :  { %v6632_v58 = vadd.f32 %v3938_v19, %v10117_v5  ;;  %v6648_v29 = vadd.f32 %v4590_v59, %v10269_v49  ;;  %v4840_v48 = vmax.f32 %v6630_v9, 0.0  ;;  %v4746_v30 = vmax.f32 %v6646_v16, 0.0 }
 0x39e   :  { %v4843_v41 = vmax.f32 %v6631_v61, 0.0  ;;  %v4749_v10 = vmax.f32 %v6647_v4, 0.0 }
 0x39f   :  { %v4844_v39 = vmax.f32 %v6632_v58, 0.0  ;;  %v4750_v26 = vmax.f32 %v6648_v29, 0.0 }
 0x3a0   :  { %v4919_v46 = vpack.c.bf16 %v4843_v41, %v4839_v36  ;;  %v10286_v6 = vpack.c.bf16 %v4749_v10, %v4745_v1 }
 0x3a1   :  { %v4920_v51 = vpack.c.bf16 %v4844_v39, %v4840_v48  ;;  %v10288_v56 = vpack.c.bf16 %v4750_v26, %v4746_v30  ;;  %v3942_v44 = vpop.f32.mrb[148].mxu0  ;;  %v4594_v38 = vpop.f32.mrb[164].mxu1  ;;  %v5786_v30 = vld [vmem:[%s10733_s7 + $0x28] sm:$0xff] }
 0x3a2   :  { %v6633_v11 = vadd.f32 %v3942_v44, %v10112_v12  ;;  %v6649_v17 = vadd.f32 %v4594_v38, %v10264_v15  ;;  %v3944_v42 = vpop.f32.mrb[149].mxu0  ;;  %v4596_v28 = vpop.f32.mrb[165].mxu1 }
 0x3a3   :  { %v6634_v31 = vadd.f32 %v3944_v42, %v10117_v5  ;;  %v6650_v55 = vadd.f32 %v4596_v28, %v10269_v49  ;;  %v3946_v32 = vpop.f32.mrb[150].mxu0  ;;  %v4598_v33 = vpop.f32.mrb[166].mxu1  ;;  %5483 = vmatprep.mubr.bf16.mxu0 %v4920_v51 }
 0x3a4   :  { %v6635_v63 = vadd.f32 %v3946_v32, %v10112_v12  ;;  %v6651_v20 = vadd.f32 %v4598_v33, %v10264_v15  ;;  %v3948_v34 = vpop.f32.mrb[151].mxu0  ;;  %v4600_v14 = vpop.f32.mrb[167].mxu1  ;;  %5484 = vmatmul.mubr.bf16.gmra.mrb[208].mxu0 %v4919_v46  ;;  %v4847_v47 = vmax.f32 %v6633_v11, 0.0  ;;  %v4753_v25 = vmax.f32 %v6649_v17, 0.0 }
 0x3a5   :  { %v6636_v53 = vadd.f32 %v3948_v34, %v10117_v5  ;;  %v6652_v54 = vadd.f32 %v4600_v14, %v10269_v49  ;;  %v4848_v35 = vmax.f32 %v6634_v31, 0.0  ;;  %v4754_v3 = vmax.f32 %v6650_v55, 0.0 }
 0x3a6   :  { %v4851_v27 = vmax.f32 %v6635_v63, 0.0  ;;  %v4757_v45 = vmax.f32 %v6651_v20, 0.0  ;;  %v6538_v46 = vpack.c.bf16 %v5786_v30, %v5785_v40 }
 0x3a7   :  { %v4852_v57 = vmax.f32 %v6636_v53, 0.0  ;;  %v4758_v22 = vmax.f32 %v6652_v54, 0.0 }
 0x3a8   :  { %v4923_v52 = vpack.c.bf16 %v4851_v27, %v4847_v47  ;;  %v10305_v13 = vpack.c.bf16 %v4757_v45, %v4753_v25  ;;  %6539 = vmatpush1.bf16.msra.mxu1 %v6538_v46 }
 0x3a9   :  { %v4924_v62 = vpack.c.bf16 %v4852_v57, %v4848_v35  ;;  %v10307_v7 = vpack.c.bf16 %v4758_v22, %v4754_v3  ;;  %v3952_v50 = vpop.f32.mrb[152].mxu0  ;;  %v4604_v9 = vpop.f32.mrb[168].mxu1  ;;  %6540 = vmatprep.subr.bf16.mxu1 %v7741_v60  ;;  %v5787_v3 = vld [vmem:[%s10733_s7 + $0x30] sm:$0xff]  ;;  %v5788_v57 = vld [vmem:[%s10733_s7 + $0x38] sm:$0xff] }
 0x3aa   :  { %v6637_v16 = vadd.f32 %v3952_v50, %v10112_v12  ;;  %v6653_v43 = vadd.f32 %v4604_v9, %v10264_v15  ;;  %v3954_v18 = vpop.f32.mrb[153].mxu0  ;;  %v4606_v61 = vpop.f32.mrb[169].mxu1 }
 0x3ab   :  { %v6638_v4 = vadd.f32 %v3954_v18, %v10117_v5  ;;  %v6654_v19 = vadd.f32 %v4606_v61, %v10269_v49  ;;  %v3956_v59 = vpop.f32.mrb[154].mxu0  ;;  %v4608_v36 = vpop.f32.mrb[170].mxu1  ;;  %5493 = vmatprep.mubr.bf16.mxu0 %v4924_v62  ;;  %v6541_v62 = vpack.c.bf16 %v5788_v57, %v5787_v3 }
 0x3ac   :  { %v6639_v1 = vadd.f32 %v3956_v59, %v10112_v12  ;;  %v6655_v58 = vadd.f32 %v4608_v36, %v10264_v15  ;;  %v3958_v29 = vpop.f32.mrb[155].mxu0  ;;  %v4610_v48 = vpop.f32.mrb[171].mxu1  ;;  %5494 = vmatmul.mubr.bf16.gmra.mrb[212].mxu0 %v4923_v52  ;;  %v4855_v41 = vmax.f32 %v6637_v16, 0.0  ;;  %v4761_v39 = vmax.f32 %v6653_v43, 0.0 }
 0x3ad   :  { %v6640_v10 = vadd.f32 %v3958_v29, %v10117_v5  ;;  %v6656_v0 = vadd.f32 %v4610_v48, %v10269_v49  ;;  %v4856_v51 = vmax.f32 %v6638_v4, 0.0  ;;  %v4762_v44 = vmax.f32 %v6654_v19, 0.0  ;;  %6542 = vmatpush1.bf16.msra.mxu1 %v6541_v62 }
 0x3ae   :  { %v4859_v26 = vmax.f32 %v6639_v1, 0.0  ;;  %v4765_v2 = vmax.f32 %v6655_v58, 0.0  ;;  %6543 = vmatprep.subr.bf16.mxu1 %v7741_v60 }
 0x3af   :  { %v4860_v38 = vmax.f32 %v6640_v10, 0.0  ;;  %v4766_v11 = vmax.f32 %v6656_v0, 0.0  ;;  %v5790_v10 = vld [vmem:[%s10733_s7 + $0x48] sm:$0xff]  ;;  %v5791_v0 = vld [vmem:[%s10733_s7 + $0x50] sm:$0xff] }
 0x3b0   :  { %v4927_v17 = vpack.c.bf16 %v4859_v26, %v4855_v41  ;;  %v10324_v42 = vpack.c.bf16 %v4765_v2, %v4761_v39  ;;  %v5789_v41 = vld [vmem:[%s10733_s7 + $0x40] sm:$0xff]  ;;  %v5792_v39 = vld [vmem:[%s10733_s7 + $0x58] sm:$0xff] }
 0x3b1   :  { %v4928_v28 = vpack.c.bf16 %v4860_v38, %v4856_v51  ;;  %v10326_v31 = vpack.c.bf16 %v4766_v11, %v4762_v44  ;;  %v3962_v55 = vpop.f32.mrb[156].mxu0  ;;  %v4614_v32 = vpop.f32.mrb[172].mxu1  ;;  %v6544_v30 = vpack.c.bf16 %v5790_v10, %v5789_v41  ;;  %v6547_v44 = vpack.c.bf16 %v5792_v39, %v5791_v0  ;;  %v5793_v11 = vld [vmem:[%s10733_s7 + $0x60] sm:$0xff] }
 0x3b2   :  { %v6641_v33 = vadd.f32 %v3962_v55, %v10112_v12  ;;  %v6657_v63 = vadd.f32 %v4614_v32, %v10264_v15  ;;  %v3964_v20 = vpop.f32.mrb[157].mxu0  ;;  %v4616_v34 = vpop.f32.mrb[173].mxu1 }
 0x3b3   :  { %v6642_v14 = vadd.f32 %v3964_v20, %v10117_v5  ;;  %v6658_v47 = vadd.f32 %v4616_v34, %v10269_v49  ;;  %v3966_v53 = vpop.f32.mrb[158].mxu0  ;;  %v4618_v54 = vpop.f32.mrb[174].mxu1  ;;  %5503 = vmatprep.mubr.bf16.mxu0 %v4928_v28  ;;  %6545 = vmatpush1.bf16.msra.mxu1 %v6544_v30 }
 0x3b4   :  { %v6643_v21 = vadd.f32 %v3966_v53, %v10112_v12  ;;  %v6659_v23 = vadd.f32 %v4618_v54, %v10264_v15  ;;  %v3968_v25 = vpop.f32.mrb[159].mxu0  ;;  %v4620_v27 = vpop.f32.mrb[175].mxu1  ;;  %5504 = vmatmul.mubr.bf16.gmra.mrb[216].mxu0 %v4927_v17  ;;  %v4863_v45 = vmax.f32 %v6641_v33, 0.0  ;;  %v4769_v22 = vmax.f32 %v6657_v63, 0.0  ;;  %6546 = vmatprep.subr.bf16.mxu1 %v7741_v60  ;;  %v5796_v53 = vld [vmem:[%s10733_s7 + $0x78] sm:$0xff] }
 0x3b5   :  { %v6644_v37 = vadd.f32 %v3968_v25, %v10117_v5  ;;  %v6660_v35 = vadd.f32 %v4620_v27, %v10269_v49  ;;  %v4864_v50 = vmax.f32 %v6642_v14, 0.0  ;;  %v4770_v9 = vmax.f32 %v6658_v47, 0.0  ;;  %v5795_v47 = vld [vmem:[%s10733_s7 + $0x70] sm:$0xff] }
 0x3b6   :  { %v4867_v12 = vmax.f32 %v6643_v21, 0.0  ;;  %v4773_v52 = vmax.f32 %v6659_v23, 0.0 }
 0x3b7   :  { %v4868_v16 = vmax.f32 %v6644_v37, 0.0  ;;  %v4774_v43 = vmax.f32 %v6660_v35, 0.0  ;;  %6548 = vmatpush1.bf16.msra.mxu1 %v6547_v44  ;;  %v5797_v37 = vld [vmem:[%s10733_s7 + $0x80] sm:$0xff]  ;;  %v5798_v35 = vld [vmem:[%s10733_s7 + $0x88] sm:$0xff] }
 0x3b8   :  { %v4931_v18 = vpack.c.bf16 %v4867_v12, %v4863_v45  ;;  %v10343_v5 = vpack.c.bf16 %v4773_v52, %v4769_v22  ;;  %6549 = vmatprep.subr.bf16.mxu1 %v7741_v60  ;;  %v6556_v62 = vpack.c.bf16 %v5798_v35, %v5797_v37 }
 0x3b9   :  { %v4932_v61 = vpack.c.bf16 %v4868_v16, %v4864_v50  ;;  %v10345_v4 = vpack.c.bf16 %v4774_v43, %v4770_v9  ;;  %v4624_v19 = vpop.f32.mrb[176].mxu1  ;;  %v5799_v16 = vld [vmem:[%s10733_s7 + $0x90] sm:$0xff]  ;;  %v5800_v43 = vld [vmem:[%s10733_s7 + $0x98] sm:$0xff] }
 0x3ba   :  { %v6661_v59 = vadd.f32 %v4624_v19, %v10264_v15  ;;  %v4626_v36 = vpop.f32.mrb[177].mxu1 }
 0x3bb   :  { %v6662_v1 = vadd.f32 %v4626_v36, %v10269_v49  ;;  %v4628_v58 = vpop.f32.mrb[178].mxu1  ;;  %5513 = vmatprep.mubr.bf16.mxu0 %v4932_v61 }
 0x3bc   :  { %v6663_v29 = vadd.f32 %v4628_v58, %v10264_v15  ;;  %v4630_v48 = vpop.f32.mrb[179].mxu1  ;;  %5514 = vmatmul.mubr.bf16.gmra.mrb[220].mxu0 %v4931_v18  ;;  %v4777_v26 = vmax.f32 %v6661_v59, 0.0  ;;  %v5801_v58 = vld [vmem:[%s10733_s7 + $0xa0] sm:$0xff] }
 0x3bd   :  { %v6664_v40 = vadd.f32 %v4630_v48, %v10269_v49  ;;  %5556 = vmatprep.mubr.bf16.mxu0 %v10288_v56  ;;  %v4778_v46 = vmax.f32 %v6662_v1, 0.0  ;;  %v5794_v56 = vld [vmem:[%s10733_s7 + $0x68] sm:$0xff] }
 0x3be   :  { %v4781_v2 = vmax.f32 %v6663_v29, 0.0  ;;  %v6550_v20 = vpack.c.bf16 %v5794_v56, %v5793_v11  ;;  %v5802_v29 = vld [vmem:[%s10733_s7 + $0xa8] sm:$0xff] }
 0x3bf   :  { %v4782_v51 = vmax.f32 %v6664_v40, 0.0  ;;  %v6562_v30 = vpack.c.bf16 %v5802_v29, %v5801_v58 }
 0x3c0   :  { %v10365_v38 = vpack.c.bf16 %v4781_v2, %v4777_v26  ;;  %6551 = vmatpush1.bf16.msra.mxu1 %v6550_v20  ;;  %v5803_v2 = vld [vmem:[%s10733_s7 + $0xb0] sm:$0xff] }
 0x3c1   :  { %v10374_v17 = vpack.c.bf16 %v4782_v51, %v4778_v46  ;;  %v4634_v28 = vpop.f32.mrb[180].mxu1  ;;  %6552 = vmatprep.subr.bf16.mxu1 %v7741_v60  ;;  %v5804_v46 = vld [vmem:[%s10733_s7 + $0xb8] sm:$0xff] }
 0x3c2   :  { %v6665_v55 = vadd.f32 %v4634_v28, %v10264_v15  ;;  %v4636_v32 = vpop.f32.mrb[181].mxu1 }
 0x3c3   :  { %v6666_v33 = vadd.f32 %v4636_v32, %v10269_v49  ;;  %v4638_v63 = vpop.f32.mrb[182].mxu1  ;;  %v5805_v32 = vld [vmem:[%s10733_s7 + $0xc0] sm:$0xff] }
 0x3c4   :  { %v6667_v34 = vadd.f32 %v4638_v63, %v10264_v15  ;;  %v4640_v14 = vpop.f32.mrb[183].mxu1  ;;  %5557 = vmatmul.mubr.bf16.vlgmr.msra.gmra.mrb[160].mxu0 %v10286_v6  ;;  %v4785_v21 = vmax.f32 %v6665_v55, 0.0  ;;  %v6553_v6 = vpack.c.bf16 %v5796_v53, %v5795_v47 }
 0x3c5   :  { %v6668_v54 = vadd.f32 %v4640_v14, %v10269_v49  ;;  %5566 = vmatprep.mubr.bf16.mxu0 %v10307_v7  ;;  %v4786_v25 = vmax.f32 %v6666_v33, 0.0  ;;  %v5806_v33 = vld [vmem:[%s10733_s7 + $0xc8] sm:$0xff] }
 0x3c6   :  { %v4789_v23 = vmax.f32 %v6667_v34, 0.0  ;;  %6554 = vmatpush1.bf16.msra.mxu1 %v6553_v6  ;;  %v6568_v53 = vpack.c.bf16 %v5806_v33, %v5805_v32 }
 0x3c7   :  { %v4790_v27 = vmax.f32 %v6668_v54, 0.0  ;;  %6555 = vmatprep.subr.bf16.mxu1 %v7741_v60 }
 0x3c8   :  { %v10389_v45 = vpack.c.bf16 %v4789_v23, %v4785_v21  ;;  %v5807_v23 = vld [vmem:[%s10733_s7 + $0xd0] sm:$0xff] }
 0x3c9   :  { %v10398_v3 = vpack.c.bf16 %v4790_v27, %v4786_v25  ;;  %v4644_v7 = vpop.f32.mrb[184].mxu1  ;;  %v5808_v25 = vld [vmem:[%s10733_s7 + $0xd8] sm:$0xff] }
 0x3ca   :  { %v6669_v57 = vadd.f32 %v4644_v7, %v10264_v15  ;;  %v4646_v22 = vpop.f32.mrb[185].mxu1  ;;  %6557 = vmatpush1.bf16.msra.mxu1 %v6556_v62 }
 0x3cb   :  { %v6670_v12 = vadd.f32 %v4646_v22, %v10269_v49  ;;  %v4648_v52 = vpop.f32.mrb[186].mxu1  ;;  %6558 = vmatprep.subr.bf16.mxu1 %v7741_v60  ;;  %v5809_v22 = vld [vmem:[%s10733_s7 + $0xe0] sm:$0xff] }
 0x3cc   :  { %v6671_v50 = vadd.f32 %v4648_v52, %v10264_v15  ;;  %v4650_v9 = vpop.f32.mrb[187].mxu1  ;;  %5567 = vmatmul.mubr.bf16.gmra.mrb[164].mxu0 %v10305_v13  ;;  %v4793_v61 = vmax.f32 %v6669_v57, 0.0  ;;  %v6559_v13 = vpack.c.bf16 %v5800_v43, %v5799_v16 }
 0x3cd   :  { %v6672_v18 = vadd.f32 %v4650_v9, %v10269_v49  ;;  %5576 = vmatprep.mubr.bf16.mxu0 %v10326_v31  ;;  %v4794_v59 = vmax.f32 %v6670_v12, 0.0  ;;  %v5810_v12 = vld [vmem:[%s10733_s7 + $0xe8] sm:$0xff] }
 0x3ce   :  { %v4797_v19 = vmax.f32 %v6671_v50, 0.0  ;;  %6560 = vmatpush1.bf16.msra.mxu1 %v6559_v13  ;;  %v6574_v43 = vpack.c.bf16 %v5810_v12, %v5809_v22 }
 0x3cf   :  { %v4798_v36 = vmax.f32 %v6672_v18, 0.0  ;;  %6561 = vmatprep.subr.bf16.mxu1 %v7741_v60 }
 0x3d0   :  { %v10413_v1 = vpack.c.bf16 %v4797_v19, %v4793_v61  ;;  %v5811_v19 = vld [vmem:[%s10733_s7 + $0xf0] sm:$0xff] }
 0x3d1   :  { %v10422_v48 = vpack.c.bf16 %v4798_v36, %v4794_v59  ;;  %v4654_v31 = vpop.f32.mrb[188].mxu1  ;;  %v5812_v59 = vld [vmem:[%s10733_s7 + $0xf8] sm:$0xff] }
 0x3d2   :  { %v6673_v41 = vadd.f32 %v4654_v31, %v10264_v15  ;;  %v4656_v10 = vpop.f32.mrb[189].mxu1  ;;  %6563 = vmatpush1.bf16.msra.mxu1 %v6562_v30 }
 0x3d3   :  { %v6674_v0 = vadd.f32 %v4656_v10, %v10269_v49  ;;  %v4658_v40 = vpop.f32.mrb[190].mxu1  ;;  %6564 = vmatprep.subr.bf16.mxu1 %v7741_v60 }
 0x3d4   :  { %v6675_v39 = vadd.f32 %v4658_v40, %v10264_v15  ;;  %v4660_v26 = vpop.f32.mrb[191].mxu1  ;;  %5577 = vmatmul.mubr.bf16.gmra.mrb[168].mxu0 %v10324_v42  ;;  %v4801_v44 = vmax.f32 %v6673_v41, 0.0  ;;  %v6565_v42 = vpack.c.bf16 %v5804_v46, %v5803_v2 }
 0x3d5   :  { %v6676_v51 = vadd.f32 %v4660_v26, %v10269_v49  ;;  %5586 = vmatprep.mubr.bf16.mxu0 %v10345_v4  ;;  %v4802_v56 = vmax.f32 %v6674_v0, 0.0 }
 0x3d6   :  { %v4805_v11 = vmax.f32 %v6675_v39, 0.0  ;;  %6566 = vmatpush1.bf16.msra.mxu1 %v6565_v42 }
 0x3d7   :  { %v4806_v28 = vmax.f32 %v6676_v51, 0.0  ;;  %6567 = vmatprep.subr.bf16.mxu1 %v7741_v60 }
 0x3d8   :  { %v10437_v55 = vpack.c.bf16 %v4805_v11, %v4801_v44 }
 0x3d9   :  { %v10446_v63 = vpack.c.bf16 %v4806_v28, %v4802_v56  ;;  %v4664_v4 = vpop.f32.mrb[192].mxu1 }
 0x3da   :  { %v6677_v20 = vadd.f32 %v4664_v4, %v10264_v15  ;;  %v4666_v34 = vpop.f32.mrb[193].mxu1  ;;  %6569 = vmatpush1.bf16.msra.mxu1 %v6568_v53 }
 0x3db   :  { %v6678_v14 = vadd.f32 %v4666_v34, %v10269_v49  ;;  %v4668_v47 = vpop.f32.mrb[194].mxu1  ;;  %6570 = vmatprep.subr.bf16.mxu1 %v7741_v60 }
 0x3dc   :  { %v6679_v54 = vadd.f32 %v4668_v47, %v10264_v15  ;;  %v4670_v21 = vpop.f32.mrb[195].mxu1  ;;  %5587 = vmatmul.mubr.bf16.gmra.mrb[172].mxu0 %v10343_v5  ;;  %v4809_v6 = vmax.f32 %v6677_v20, 0.0  ;;  %v6571_v5 = vpack.c.bf16 %v5808_v25, %v5807_v23 }
 0x3dd   :  { %v6680_v27 = vadd.f32 %v4670_v21, %v10269_v49  ;;  %5596 = vmatprep.mubr.bf16.mxu0 %v10374_v17  ;;  %v4810_v35 = vmax.f32 %v6678_v14, 0.0 }
 0x3de   :  { %v4813_v37 = vmax.f32 %v6679_v54, 0.0  ;;  %6572 = vmatpush1.bf16.msra.mxu1 %v6571_v5 }
 0x3df   :  { %v4814_v7 = vmax.f32 %v6680_v27, 0.0  ;;  %6573 = vmatprep.subr.bf16.mxu1 %v7741_v60 }
 0x3e0   :  { %v10461_v57 = vpack.c.bf16 %v4813_v37, %v4809_v6 }
 0x3e1   :  { %v10470_v52 = vpack.c.bf16 %v4814_v7, %v4810_v35  ;;  %v4674_v17 = vpop.f32.mrb[196].mxu1 }
 0x3e2   :  { %v6681_v62 = vadd.f32 %v4674_v17, %v10264_v15  ;;  %v4676_v50 = vpop.f32.mrb[197].mxu1  ;;  %6575 = vmatpush1.bf16.msra.mxu1 %v6574_v43 }
 0x3e3   :  { %v6682_v9 = vadd.f32 %v4676_v50, %v10269_v49  ;;  %v4678_v16 = vpop.f32.mrb[198].mxu1  ;;  %6576 = vmatprep.subr.bf16.mxu1 %v7741_v60 }
 0x3e4   :  { %v6683_v18 = vadd.f32 %v4678_v16, %v10264_v15  ;;  %v4680_v61 = vpop.f32.mrb[199].mxu1  ;;  %5597 = vmatmul.mubr.bf16.gmra.mrb[176].mxu0 %v10365_v38  ;;  %v4817_v13 = vmax.f32 %v6681_v62, 0.0  ;;  %v6577_v38 = vpack.c.bf16 %v5812_v59, %v5811_v19 }
 0x3e5   :  { %v6684_v36 = vadd.f32 %v4680_v61, %v10269_v49  ;;  %5606 = vmatprep.mubr.bf16.mxu0 %v10398_v3  ;;  %v4818_v29 = vmax.f32 %v6682_v9, 0.0 }
 0x3e6   :  { %v4821_v58 = vmax.f32 %v6683_v18, 0.0  ;;  %6578 = vmatpush1.bf16.msra.mxu1 %v6577_v38 }
 0x3e7   :  { %v4822_v31 = vmax.f32 %v6684_v36, 0.0 }
 0x3e8   :  { %v10485_v41 = vpack.c.bf16 %v4821_v58, %v4817_v13 }
 0x3e9   :  { %v4910_v10 = vpack.c.bf16 %v4822_v31, %v4818_v29  ;;  %v4684_v0 = vpop.f32.mrb[200].mxu1 }
 0x3ea   :  { %v6685_v40 = vadd.f32 %v4684_v0, %v10264_v15  ;;  %v4686_v30 = vpop.f32.mrb[201].mxu1 }
 0x3eb   :  { %v6686_v39 = vadd.f32 %v4686_v30, %v10269_v49  ;;  %v4688_v26 = vpop.f32.mrb[202].mxu1 }
 0x3ec   :  { %v6687_v3 = vadd.f32 %v4688_v26, %v10264_v15  ;;  %v4690_v2 = vpop.f32.mrb[203].mxu1  ;;  %5607 = vmatmul.mubr.bf16.gmra.mrb[180].mxu0 %v10389_v45  ;;  %v4825_v51 = vmax.f32 %v6685_v40, 0.0 }
 0x3ed   :  { %v6688_v46 = vadd.f32 %v4690_v2, %v10269_v49  ;;  %5616 = vmatprep.mubr.bf16.mxu0 %v10422_v48  ;;  %v4826_v44 = vmax.f32 %v6686_v39, 0.0 }
 0x3ee   :  { %v4829_v60 = vmax.f32 %v6687_v3, 0.0 }
 0x3ef   :  { %v4830_v11 = vmax.f32 %v6688_v46, 0.0 }
 0x3f0   :  { %v10494_v56 = vpack.c.bf16 %v4829_v60, %v4825_v51 }
 0x3f1   :  { %v4914_v28 = vpack.c.bf16 %v4830_v11, %v4826_v44  ;;  %v4694_v42 = vpop.f32.mrb[204].mxu1 }
 0x3f2   :  { %v6689_v32 = vadd.f32 %v4694_v42, %v10264_v15  ;;  %v4696_v33 = vpop.f32.mrb[205].mxu1 }
 0x3f3   :  { %v6690_v4 = vadd.f32 %v4696_v33, %v10269_v49  ;;  %v4698_v20 = vpop.f32.mrb[206].mxu1 }
 0x3f4   :  { %v6691_v45 = vadd.f32 %v4698_v20, %v10264_v15  ;;  %v4700_v34 = vpop.f32.mrb[207].mxu1  ;;  %5617 = vmatmul.mubr.bf16.gmra.mrb[184].mxu0 %v10413_v1  ;;  %v4833_v14 = vmax.f32 %v6689_v32, 0.0 }
 0x3f5   :  { %v6692_v48 = vadd.f32 %v4700_v34, %v10269_v49  ;;  %5626 = vmatprep.mubr.bf16.mxu0 %v10446_v63  ;;  %v4834_v53 = vmax.f32 %v6690_v4, 0.0 }
 0x3f6   :  { %v4837_v47 = vmax.f32 %v6691_v45, 0.0 }
 0x3f7   :  { %v4838_v54 = vmax.f32 %v6692_v48, 0.0 }
 0x3f8   :  { %v10502_v21 = vpack.c.bf16 %v4837_v47, %v4833_v14 }
 0x3f9   :  { %v4918_v23 = vpack.c.bf16 %v4838_v54, %v4834_v53  ;;  %v4704_v25 = vpop.f32.mrb[208].mxu1 }
 0x3fa   :  { %v6693_v27 = vadd.f32 %v4704_v25, %v10264_v15  ;;  %v4706_v6 = vpop.f32.mrb[209].mxu1 }
 0x3fb   :  { %v6694_v37 = vadd.f32 %v4706_v6, %v10269_v49  ;;  %v4708_v35 = vpop.f32.mrb[210].mxu1 }
 0x3fc   :  { %v6695_v1 = vadd.f32 %v4708_v35, %v10264_v15  ;;  %v4710_v7 = vpop.f32.mrb[211].mxu1  ;;  %5627 = vmatmul.mubr.bf16.gmra.mrb[188].mxu0 %v10437_v55  ;;  %v4841_v5 = vmax.f32 %v6693_v27, 0.0 }
 0x3fd   :  { %v6696_v63 = vadd.f32 %v4710_v7, %v10269_v49  ;;  %5636 = vmatprep.mubr.bf16.mxu0 %v10470_v52  ;;  %v4842_v12 = vmax.f32 %v6694_v37, 0.0 }
 0x3fe   :  { %v4845_v22 = vmax.f32 %v6695_v1, 0.0 }
 0x3ff   :  { %v4846_v17 = vmax.f32 %v6696_v63, 0.0 }
 0x400   :  { %v4921_v62 = vpack.c.bf16 %v4845_v22, %v4841_v5 }
 0x401   :  { %v4922_v50 = vpack.c.bf16 %v4846_v17, %v4842_v12  ;;  %v4714_v9 = vpop.f32.mrb[212].mxu1 }
 0x402   :  { %v6697_v16 = vadd.f32 %v4714_v9, %v10264_v15  ;;  %v4716_v43 = vpop.f32.mrb[213].mxu1 }
 0x403   :  { %v6698_v18 = vadd.f32 %v4716_v43, %v10269_v49  ;;  %v4718_v61 = vpop.f32.mrb[214].mxu1 }
 0x404   :  { %v6699_v19 = vadd.f32 %v4718_v61, %v10264_v15  ;;  %v4720_v55 = vpop.f32.mrb[215].mxu1  ;;  %5637 = vmatmul.mubr.bf16.gmra.mrb[192].mxu0 %v10461_v57  ;;  %v4849_v59 = vmax.f32 %v6697_v16, 0.0 }
 0x405   :  { %v6700_v52 = vadd.f32 %v4720_v55, %v10269_v49  ;;  %5646 = vmatprep.mubr.bf16.mxu0 %v4910_v10  ;;  %v4850_v13 = vmax.f32 %v6698_v18, 0.0 }
 0x406   :  { %v4853_v36 = vmax.f32 %v6699_v19, 0.0 }
 0x407   :  { %v4854_v58 = vmax.f32 %v6700_v52, 0.0 }
 0x408   :  { %v4925_v29 = vpack.c.bf16 %v4853_v36, %v4849_v59 }
 0x409   :  { %v4926_v31 = vpack.c.bf16 %v4854_v58, %v4850_v13  ;;  %v4724_v38 = vpop.f32.mrb[216].mxu1 }
 0x40a   :  { %v6701_v0 = vadd.f32 %v4724_v38, %v10264_v15  ;;  %v4726_v40 = vpop.f32.mrb[217].mxu1 }
 0x40b   :  { %v6702_v30 = vadd.f32 %v4726_v40, %v10269_v49  ;;  %v4728_v39 = vpop.f32.mrb[218].mxu1 }
 0x40c   :  { %v6703_v26 = vadd.f32 %v4728_v39, %v10264_v15  ;;  %v4730_v3 = vpop.f32.mrb[219].mxu1  ;;  %5647 = vmatmul.mubr.bf16.gmra.mrb[196].mxu0 %v10485_v41  ;;  %v4857_v10 = vmax.f32 %v6701_v0, 0.0 }
 0x40d   :  { %v6704_v57 = vadd.f32 %v4730_v3, %v10269_v49  ;;  %5656 = vmatprep.mubr.bf16.mxu0 %v4914_v28  ;;  %v4858_v46 = vmax.f32 %v6702_v30, 0.0 }
 0x40e   :  { %v4861_v2 = vmax.f32 %v6703_v26, 0.0 }
 0x40f   :  { %v4862_v51 = vmax.f32 %v6704_v57, 0.0 }
 0x410   :  { %v4929_v60 = vpack.c.bf16 %v4861_v2, %v4857_v10 }
 0x411   :  { %v4930_v44 = vpack.c.bf16 %v4862_v51, %v4858_v46  ;;  %v4734_v11 = vpop.f32.mrb[220].mxu1 }
 0x412   :  { %v6705_v42 = vadd.f32 %v4734_v11, %v10264_v15  ;;  %v4736_v32 = vpop.f32.mrb[221].mxu1 }
 0x413   :  { %v6706_v33 = vadd.f32 %v4736_v32, %v10269_v49  ;;  %v4738_v4 = vpop.f32.mrb[222].mxu1 }
 0x414   :  { %v6707_v20 = vadd.f32 %v4738_v4, %v10264_v15  ;;  %v4740_v45 = vpop.f32.mrb[223].mxu1  ;;  %5657 = vmatmul.mubr.bf16.gmra.mrb[200].mxu0 %v10494_v56  ;;  %v4865_v28 = vmax.f32 %v6705_v42, 0.0  ;;  %v4999_v15 = vld [vmem:[%s10734_s6] sm:$0x3] }
 0x415   :  { %v6708_v41 = vadd.f32 %v4740_v45, %v10269_v49  ;;  %5666 = vmatprep.mubr.bf16.mxu0 %v4918_v23  ;;  %v4866_v48 = vmax.f32 %v6706_v33, 0.0  ;;  %v10530_v49 = vrot.slane %v4999_v15, %v10876_v8  ;;  %v10533_v56 = vrot.slane %v4999_v15, %v10877_v24 }
 0x416   :  { %v4869_v34 = vmax.f32 %v6707_v20, 0.0 }
 0x417   :  { %v4870_v14 = vmax.f32 %v6708_v41, 0.0 }
 0x418   :  { %v4933_v47 = vpack.c.bf16 %v4869_v34, %v4865_v28 }
 0x419   :  { %v4934_v53 = vpack.c.bf16 %v4870_v14, %v4866_v48 }
 0x41c   :  { %5667 = vmatmul.mubr.bf16.gmra.mrb[204].mxu0 %v10502_v21 }
 0x41d   :  { %5676 = vmatprep.mubr.bf16.mxu0 %v4922_v50 }
 0x424   :  { %5677 = vmatmul.mubr.bf16.gmra.mrb[208].mxu0 %v4921_v62 }
 0x425   :  { %5686 = vmatprep.mubr.bf16.mxu0 %v4926_v31 }
 0x42c   :  { %5687 = vmatmul.mubr.bf16.gmra.mrb[212].mxu0 %v4925_v29 }
 0x42d   :  { %5696 = vmatprep.mubr.bf16.mxu0 %v4930_v44 }
 0x434   :  { %5697 = vmatmul.mubr.bf16.gmra.mrb[216].mxu0 %v4929_v60 }
 0x435   :  { %5706 = vmatprep.mubr.bf16.mxu0 %v4934_v53 }
 0x43c   :  { %5707 = vmatmul.mubr.bf16.gmra.mrb[220].mxu0 %v4933_v47 }
 0x497   :  { %v5558_v54 = vpop.f32.mrb[160].mxu0 }
 0x498   :  { %v6709_v21 = vadd.f32 %v5558_v54, %v10530_v49  ;;  %v5560_v23 = vpop.f32.mrb[161].mxu0 }
 0x499   :  { %v6710_v25 = vadd.f32 %v5560_v23, %v10533_v56  ;;  %v5562_v27 = vpop.f32.mrb[162].mxu0 }
 0x49a   :  { %v5564_v6 = vpop.f32.mrb[163].mxu0  ;;  %v5717_v1 = vmax.f32 %v6709_v21, 0.0  ;;  %v6711_v7 = vadd.f32 %v5562_v27, %v10530_v49 }
 0x49b   :  { %v5718_v37 = vmax.f32 %v6710_v25, 0.0  ;;  %v6712_v35 = vadd.f32 %v5564_v6, %v10533_v56 }
 0x49c   :  { %v5719_v24 = vmax.f32 %v6711_v7, 0.0 }
 0x49d   :  { %v5720_v63 = vmax.f32 %v6712_v35, 0.0  ;;  %5877 = vmatprep.mubr.f32.mxu1 %v5718_v37 }
 0x49e   :  { %5878 = vmatmul.mubr.f32.vlgmr.msra.gmra.mrb[224].mxu1 %v5717_v1 }
 0x49f   :  { %v5568_v8 = vpop.f32.mrb[164].mxu0  ;;  %5882 = vmatprep.mubr.f32.mxu1 %v5720_v63 }
 0x4a0   :  { %v6713_v5 = vadd.f32 %v5568_v8, %v10530_v49  ;;  %v5570_v22 = vpop.f32.mrb[165].mxu0 }
 0x4a1   :  { %v6714_v12 = vadd.f32 %v5570_v22, %v10533_v56  ;;  %v5572_v17 = vpop.f32.mrb[166].mxu0 }
 0x4a2   :  { %v5574_v62 = vpop.f32.mrb[167].mxu0  ;;  %5883 = vmatmul.mubr.f32.gmra.mrb[226].mxu1 %v5719_v24  ;;  %v5721_v16 = vmax.f32 %v6713_v5, 0.0  ;;  %v6715_v43 = vadd.f32 %v5572_v17, %v10530_v49 }
 0x4a3   :  { %v5722_v50 = vmax.f32 %v6714_v12, 0.0  ;;  %v6716_v9 = vadd.f32 %v5574_v62, %v10533_v56 }
 0x4a4   :  { %v5723_v19 = vmax.f32 %v6715_v43, 0.0 }
 0x4a5   :  { %v5724_v18 = vmax.f32 %v6716_v9, 0.0  ;;  %5887 = vmatprep.mubr.f32.mxu1 %v5722_v50 }
 0x4a6   :  { %5888 = vmatmul.mubr.f32.gmra.mrb[228].mxu1 %v5721_v16 }
 0x4a7   :  { %v5578_v61 = vpop.f32.mrb[168].mxu0  ;;  %5892 = vmatprep.mubr.f32.mxu1 %v5724_v18 }
 0x4a8   :  { %v6717_v55 = vadd.f32 %v5578_v61, %v10530_v49  ;;  %v5580_v52 = vpop.f32.mrb[169].mxu0 }
 0x4a9   :  { %v6718_v59 = vadd.f32 %v5580_v52, %v10533_v56  ;;  %v5582_v36 = vpop.f32.mrb[170].mxu0 }
 0x4aa   :  { %v5584_v13 = vpop.f32.mrb[171].mxu0  ;;  %5893 = vmatmul.mubr.f32.gmra.mrb[230].mxu1 %v5723_v19  ;;  %v5725_v31 = vmax.f32 %v6717_v55, 0.0  ;;  %v6719_v38 = vadd.f32 %v5582_v36, %v10530_v49 }
 0x4ab   :  { %v5726_v58 = vmax.f32 %v6718_v59, 0.0  ;;  %v6720_v29 = vadd.f32 %v5584_v13, %v10533_v56 }
 0x4ac   :  { %v5727_v30 = vmax.f32 %v6719_v38, 0.0 }
 0x4ad   :  { %v5728_v0 = vmax.f32 %v6720_v29, 0.0  ;;  %5897 = vmatprep.mubr.f32.mxu1 %v5726_v58 }
 0x4ae   :  { %5898 = vmatmul.mubr.f32.gmra.mrb[232].mxu1 %v5725_v31 }
 0x4af   :  { %v5588_v40 = vpop.f32.mrb[172].mxu0  ;;  %5902 = vmatprep.mubr.f32.mxu1 %v5728_v0 }
 0x4b0   :  { %v6721_v39 = vadd.f32 %v5588_v40, %v10530_v49  ;;  %v5590_v26 = vpop.f32.mrb[173].mxu0 }
 0x4b1   :  { %v6722_v3 = vadd.f32 %v5590_v26, %v10533_v56  ;;  %v5592_v57 = vpop.f32.mrb[174].mxu0 }
 0x4b2   :  { %v5594_v10 = vpop.f32.mrb[175].mxu0  ;;  %5903 = vmatmul.mubr.f32.gmra.mrb[234].mxu1 %v5727_v30  ;;  %v5729_v51 = vmax.f32 %v6721_v39, 0.0  ;;  %v6723_v60 = vadd.f32 %v5592_v57, %v10530_v49 }
 0x4b3   :  { %v5730_v2 = vmax.f32 %v6722_v3, 0.0  ;;  %v6724_v46 = vadd.f32 %v5594_v10, %v10533_v56 }
 0x4b4   :  { %v5731_v42 = vmax.f32 %v6723_v60, 0.0 }
 0x4b5   :  { %v5732_v44 = vmax.f32 %v6724_v46, 0.0  ;;  %5907 = vmatprep.mubr.f32.mxu1 %v5730_v2 }
 0x4b6   :  { %5908 = vmatmul.mubr.f32.gmra.mrb[236].mxu1 %v5729_v51 }
 0x4b7   :  { %v5598_v11 = vpop.f32.mrb[176].mxu0  ;;  %5912 = vmatprep.mubr.f32.mxu1 %v5732_v44 }
 0x4b8   :  { %v6725_v32 = vadd.f32 %v5598_v11, %v10530_v49  ;;  %v5600_v33 = vpop.f32.mrb[177].mxu0 }
 0x4b9   :  { %v6726_v4 = vadd.f32 %v5600_v33, %v10533_v56  ;;  %v5602_v20 = vpop.f32.mrb[178].mxu0 }
 0x4ba   :  { %v5604_v45 = vpop.f32.mrb[179].mxu0  ;;  %5913 = vmatmul.mubr.f32.gmra.mrb[238].mxu1 %v5731_v42  ;;  %v5733_v34 = vmax.f32 %v6725_v32, 0.0  ;;  %v6727_v48 = vadd.f32 %v5602_v20, %v10530_v49 }
 0x4bb   :  { %v5734_v41 = vmax.f32 %v6726_v4, 0.0  ;;  %v6728_v28 = vadd.f32 %v5604_v45, %v10533_v56 }
 0x4bc   :  { %v5735_v53 = vmax.f32 %v6727_v48, 0.0 }
 0x4bd   :  { %v5736_v14 = vmax.f32 %v6728_v28, 0.0  ;;  %5917 = vmatprep.mubr.f32.mxu1 %v5734_v41 }
 0x4be   :  { %5918 = vmatmul.mubr.f32.gmra.mrb[240].mxu1 %v5733_v34 }
 0x4bf   :  { %v5608_v47 = vpop.f32.mrb[180].mxu0  ;;  %5922 = vmatprep.mubr.f32.mxu1 %v5736_v14 }
 0x4c0   :  { %v6729_v15 = vadd.f32 %v5608_v47, %v10530_v49  ;;  %v5610_v54 = vpop.f32.mrb[181].mxu0 }
 0x4c1   :  { %v6730_v21 = vadd.f32 %v5610_v54, %v10533_v56  ;;  %v5612_v23 = vpop.f32.mrb[182].mxu0 }
 0x4c2   :  { %v5614_v25 = vpop.f32.mrb[183].mxu0  ;;  %5923 = vmatmul.mubr.f32.gmra.mrb[242].mxu1 %v5735_v53  ;;  %v5737_v37 = vmax.f32 %v6729_v15, 0.0  ;;  %v6731_v35 = vadd.f32 %v5612_v23, %v10530_v49 }
 0x4c3   :  { %v5738_v27 = vmax.f32 %v6730_v21, 0.0  ;;  %v6732_v6 = vadd.f32 %v5614_v25, %v10533_v56 }
 0x4c4   :  { %v5739_v63 = vmax.f32 %v6731_v35, 0.0 }
 0x4c5   :  { %v5740_v1 = vmax.f32 %v6732_v6, 0.0  ;;  %5927 = vmatprep.mubr.f32.mxu1 %v5738_v27 }
 0x4c6   :  { %5928 = vmatmul.mubr.f32.gmra.mrb[244].mxu1 %v5737_v37 }
 0x4c7   :  { %v5618_v7 = vpop.f32.mrb[184].mxu0  ;;  %5932 = vmatprep.mubr.f32.mxu1 %v5740_v1 }
 0x4c8   :  { %v6733_v8 = vadd.f32 %v5618_v7, %v10530_v49  ;;  %v5620_v24 = vpop.f32.mrb[185].mxu0 }
 0x4c9   :  { %v6734_v5 = vadd.f32 %v5620_v24, %v10533_v56  ;;  %v5622_v22 = vpop.f32.mrb[186].mxu0 }
 0x4ca   :  { %v5624_v12 = vpop.f32.mrb[187].mxu0  ;;  %5933 = vmatmul.mubr.f32.gmra.mrb[246].mxu1 %v5739_v63  ;;  %v5741_v50 = vmax.f32 %v6733_v8, 0.0  ;;  %v6735_v9 = vadd.f32 %v5622_v22, %v10530_v49 }
 0x4cb   :  { %v5742_v17 = vmax.f32 %v6734_v5, 0.0  ;;  %v6736_v62 = vadd.f32 %v5624_v12, %v10533_v56 }
 0x4cc   :  { %v5743_v18 = vmax.f32 %v6735_v9, 0.0 }
 0x4cd   :  { %v5744_v16 = vmax.f32 %v6736_v62, 0.0  ;;  %5937 = vmatprep.mubr.f32.mxu1 %v5742_v17 }
 0x4ce   :  { %5938 = vmatmul.mubr.f32.gmra.mrb[248].mxu1 %v5741_v50 }
 0x4cf   :  { %v5628_v43 = vpop.f32.mrb[188].mxu0  ;;  %5942 = vmatprep.mubr.f32.mxu1 %v5744_v16 }
 0x4d0   :  { %v6737_v61 = vadd.f32 %v5628_v43, %v10530_v49  ;;  %v5630_v19 = vpop.f32.mrb[189].mxu0 }
 0x4d1   :  { %v6738_v55 = vadd.f32 %v5630_v19, %v10533_v56  ;;  %v5632_v52 = vpop.f32.mrb[190].mxu0 }
 0x4d2   :  { %v5634_v59 = vpop.f32.mrb[191].mxu0  ;;  %5943 = vmatmul.mubr.f32.gmra.mrb[250].mxu1 %v5743_v18  ;;  %v5745_v58 = vmax.f32 %v6737_v61, 0.0  ;;  %v6739_v29 = vadd.f32 %v5632_v52, %v10530_v49 }
 0x4d3   :  { %v5746_v36 = vmax.f32 %v6738_v55, 0.0  ;;  %v6740_v13 = vadd.f32 %v5634_v59, %v10533_v56 }
 0x4d4   :  { %v5747_v0 = vmax.f32 %v6739_v29, 0.0 }
 0x4d5   :  { %v5748_v31 = vmax.f32 %v6740_v13, 0.0  ;;  %5947 = vmatprep.mubr.f32.mxu1 %v5746_v36 }
 0x4d6   :  { %5948 = vmatmul.mubr.f32.gmra.mrb[252].mxu1 %v5745_v58 }
 0x4d7   :  { %v5638_v38 = vpop.f32.mrb[192].mxu0  ;;  %5952 = vmatprep.mubr.f32.mxu1 %v5748_v31 }
 0x4d8   :  { %v6741_v40 = vadd.f32 %v5638_v38, %v10530_v49  ;;  %v5640_v30 = vpop.f32.mrb[193].mxu0 }
 0x4d9   :  { %v6742_v39 = vadd.f32 %v5640_v30, %v10533_v56  ;;  %v5642_v26 = vpop.f32.mrb[194].mxu0 }
 0x4da   :  { %v5644_v3 = vpop.f32.mrb[195].mxu0  ;;  %5953 = vmatmul.mubr.f32.gmra.mrb[254].mxu1 %v5747_v0  ;;  %v5749_v2 = vmax.f32 %v6741_v40, 0.0  ;;  %v6743_v46 = vadd.f32 %v5642_v26, %v10530_v49 }
 0x4db   :  { %v5750_v57 = vmax.f32 %v6742_v39, 0.0  ;;  %v6744_v10 = vadd.f32 %v5644_v3, %v10533_v56 }
 0x4dc   :  { %v5751_v44 = vmax.f32 %v6743_v46, 0.0 }
 0x4dd   :  { %v5752_v51 = vmax.f32 %v6744_v10, 0.0  ;;  %5957 = vmatprep.mubr.f32.mxu1 %v5750_v57 }
 0x4de   :  { %5958 = vmatmul.mubr.f32.gmra.mrb[0].mxu1 %v5749_v2 }
 0x4df   :  { %v5648_v60 = vpop.f32.mrb[196].mxu0  ;;  %5962 = vmatprep.mubr.f32.mxu1 %v5752_v51 }
 0x4e0   :  { %v6745_v11 = vadd.f32 %v5648_v60, %v10530_v49  ;;  %v5650_v42 = vpop.f32.mrb[197].mxu0 }
 0x4e1   :  { %v6746_v32 = vadd.f32 %v5650_v42, %v10533_v56  ;;  %v5652_v33 = vpop.f32.mrb[198].mxu0 }
 0x4e2   :  { %v5654_v4 = vpop.f32.mrb[199].mxu0  ;;  %5963 = vmatmul.mubr.f32.gmra.mrb[2].mxu1 %v5751_v44  ;;  %v5753_v41 = vmax.f32 %v6745_v11, 0.0  ;;  %v6747_v28 = vadd.f32 %v5652_v33, %v10530_v49 }
 0x4e3   :  { %v5754_v20 = vmax.f32 %v6746_v32, 0.0  ;;  %v6748_v45 = vadd.f32 %v5654_v4, %v10533_v56 }
 0x4e4   :  { %v5755_v14 = vmax.f32 %v6747_v28, 0.0 }
 0x4e5   :  { %v5756_v34 = vmax.f32 %v6748_v45, 0.0  ;;  %5967 = vmatprep.mubr.f32.mxu1 %v5754_v20 }
 0x4e6   :  { %5968 = vmatmul.mubr.f32.gmra.mrb[4].mxu1 %v5753_v41 }
 0x4e7   :  { %v5658_v48 = vpop.f32.mrb[200].mxu0  ;;  %5972 = vmatprep.mubr.f32.mxu1 %v5756_v34 }
 0x4e8   :  { %v6749_v47 = vadd.f32 %v5658_v48, %v10530_v49  ;;  %v5660_v53 = vpop.f32.mrb[201].mxu0 }
 0x4e9   :  { %v6750_v15 = vadd.f32 %v5660_v53, %v10533_v56  ;;  %v5662_v54 = vpop.f32.mrb[202].mxu0 }
 0x4ea   :  { %v5664_v21 = vpop.f32.mrb[203].mxu0  ;;  %5973 = vmatmul.mubr.f32.gmra.mrb[6].mxu1 %v5755_v14  ;;  %v5757_v27 = vmax.f32 %v6749_v47, 0.0  ;;  %v6751_v6 = vadd.f32 %v5662_v54, %v10530_v49 }
 0x4eb   :  { %v5758_v23 = vmax.f32 %v6750_v15, 0.0  ;;  %v6752_v25 = vadd.f32 %v5664_v21, %v10533_v56 }
 0x4ec   :  { %v5759_v1 = vmax.f32 %v6751_v6, 0.0 }
 0x4ed   :  { %v5760_v37 = vmax.f32 %v6752_v25, 0.0  ;;  %5977 = vmatprep.mubr.f32.mxu1 %v5758_v23 }
 0x4ee   :  { %5978 = vmatmul.mubr.f32.gmra.mrb[8].mxu1 %v5757_v27 }
 0x4ef   :  { %v5668_v35 = vpop.f32.mrb[204].mxu0  ;;  %5982 = vmatprep.mubr.f32.mxu1 %v5760_v37 }
 0x4f0   :  { %v6753_v7 = vadd.f32 %v5668_v35, %v10530_v49  ;;  %v5670_v63 = vpop.f32.mrb[205].mxu0 }
 0x4f1   :  { %v6754_v8 = vadd.f32 %v5670_v63, %v10533_v56  ;;  %v5672_v24 = vpop.f32.mrb[206].mxu0 }
 0x4f2   :  { %v5674_v5 = vpop.f32.mrb[207].mxu0  ;;  %5983 = vmatmul.mubr.f32.gmra.mrb[10].mxu1 %v5759_v1  ;;  %v5761_v17 = vmax.f32 %v6753_v7, 0.0  ;;  %v6755_v62 = vadd.f32 %v5672_v24, %v10530_v49 }
 0x4f3   :  { %v5762_v22 = vmax.f32 %v6754_v8, 0.0  ;;  %v6756_v12 = vadd.f32 %v5674_v5, %v10533_v56 }
 0x4f4   :  { %v5763_v16 = vmax.f32 %v6755_v62, 0.0 }
 0x4f5   :  { %v5764_v50 = vmax.f32 %v6756_v12, 0.0  ;;  %5987 = vmatprep.mubr.f32.mxu1 %v5762_v22 }
 0x4f6   :  { %5988 = vmatmul.mubr.f32.gmra.mrb[12].mxu1 %v5761_v17 }
 0x4f7   :  { %v5678_v9 = vpop.f32.mrb[208].mxu0  ;;  %5992 = vmatprep.mubr.f32.mxu1 %v5764_v50 }
 0x4f8   :  { %v6757_v43 = vadd.f32 %v5678_v9, %v10530_v49  ;;  %v5680_v18 = vpop.f32.mrb[209].mxu0 }
 0x4f9   :  { %v6758_v61 = vadd.f32 %v5680_v18, %v10533_v56  ;;  %v5682_v19 = vpop.f32.mrb[210].mxu0 }
 0x4fa   :  { %v5684_v55 = vpop.f32.mrb[211].mxu0  ;;  %5993 = vmatmul.mubr.f32.gmra.mrb[14].mxu1 %v5763_v16  ;;  %v5765_v36 = vmax.f32 %v6757_v43, 0.0  ;;  %v6759_v13 = vadd.f32 %v5682_v19, %v10530_v49 }
 0x4fb   :  { %v5766_v52 = vmax.f32 %v6758_v61, 0.0  ;;  %v6760_v59 = vadd.f32 %v5684_v55, %v10533_v56 }
 0x4fc   :  { %v5767_v31 = vmax.f32 %v6759_v13, 0.0 }
 0x4fd   :  { %v5768_v58 = vmax.f32 %v6760_v59, 0.0  ;;  %5997 = vmatprep.mubr.f32.mxu1 %v5766_v52 }
 0x4fe   :  { %5998 = vmatmul.mubr.f32.gmra.mrb[16].mxu1 %v5765_v36 }
 0x4ff   :  { %v5688_v29 = vpop.f32.mrb[212].mxu0  ;;  %6002 = vmatprep.mubr.f32.mxu1 %v5768_v58 }
 0x500   :  { %v6761_v38 = vadd.f32 %v5688_v29, %v10530_v49  ;;  %v5690_v0 = vpop.f32.mrb[213].mxu0 }
 0x501   :  { %v6762_v40 = vadd.f32 %v5690_v0, %v10533_v56  ;;  %v5692_v30 = vpop.f32.mrb[214].mxu0 }
 0x502   :  { %v5694_v39 = vpop.f32.mrb[215].mxu0  ;;  %6003 = vmatmul.mubr.f32.gmra.mrb[18].mxu1 %v5767_v31  ;;  %v5769_v57 = vmax.f32 %v6761_v38, 0.0  ;;  %v6763_v10 = vadd.f32 %v5692_v30, %v10530_v49 }
 0x503   :  { %v5770_v26 = vmax.f32 %v6762_v40, 0.0  ;;  %v6764_v3 = vadd.f32 %v5694_v39, %v10533_v56 }
 0x504   :  { %v5771_v51 = vmax.f32 %v6763_v10, 0.0 }
 0x505   :  { %v5772_v2 = vmax.f32 %v6764_v3, 0.0  ;;  %6007 = vmatprep.mubr.f32.mxu1 %v5770_v26 }
 0x506   :  { %6008 = vmatmul.mubr.f32.gmra.mrb[20].mxu1 %v5769_v57 }
 0x507   :  { %v5698_v46 = vpop.f32.mrb[216].mxu0  ;;  %6012 = vmatprep.mubr.f32.mxu1 %v5772_v2 }
 0x508   :  { %v6765_v60 = vadd.f32 %v5698_v46, %v10530_v49  ;;  %v5700_v44 = vpop.f32.mrb[217].mxu0 }
 0x509   :  { %v6766_v11 = vadd.f32 %v5700_v44, %v10533_v56  ;;  %v5702_v42 = vpop.f32.mrb[218].mxu0 }
 0x50a   :  { %v5704_v32 = vpop.f32.mrb[219].mxu0  ;;  %6013 = vmatmul.mubr.f32.gmra.mrb[22].mxu1 %v5771_v51  ;;  %v5773_v20 = vmax.f32 %v6765_v60, 0.0  ;;  %v6767_v45 = vadd.f32 %v5702_v42, %v10530_v49 }
 0x50b   :  { %v5774_v33 = vmax.f32 %v6766_v11, 0.0  ;;  %v6768_v4 = vadd.f32 %v5704_v32, %v10533_v56 }
 0x50c   :  { %v5775_v34 = vmax.f32 %v6767_v45, 0.0 }
 0x50d   :  { %v5776_v41 = vmax.f32 %v6768_v4, 0.0  ;;  %6017 = vmatprep.mubr.f32.mxu1 %v5774_v33 }
 0x50e   :  { %6018 = vmatmul.mubr.f32.gmra.mrb[24].mxu1 %v5773_v20 }
 0x50f   :  { %v5708_v28 = vpop.f32.mrb[220].mxu0  ;;  %6022 = vmatprep.mubr.f32.mxu1 %v5776_v41 }
 0x510   :  { %v6769_v48 = vadd.f32 %v5708_v28, %v10530_v49  ;;  %v5710_v14 = vpop.f32.mrb[221].mxu0 }
 0x511   :  { %v6770_v47 = vadd.f32 %v5710_v14, %v10533_v56  ;;  %v5712_v53 = vpop.f32.mrb[222].mxu0 }
 0x512   :  { %v5714_v15 = vpop.f32.mrb[223].mxu0  ;;  %6023 = vmatmul.mubr.f32.gmra.mrb[26].mxu1 %v5775_v34  ;;  %v5777_v23 = vmax.f32 %v6769_v48, 0.0  ;;  %v6771_v25 = vadd.f32 %v5712_v53, %v10530_v49 }
 0x513   :  { %v5778_v54 = vmax.f32 %v6770_v47, 0.0  ;;  %v6772_v21 = vadd.f32 %v5714_v15, %v10533_v56 }
 0x514   :  { %v5779_v6 = vmax.f32 %v6771_v25, 0.0 }
 0x515   :  { %v5780_v27 = vmax.f32 %v6772_v21, 0.0  ;;  %6027 = vmatprep.mubr.f32.mxu1 %v5778_v54 }
 0x516   :  { %6028 = vmatmul.mubr.f32.gmra.mrb[28].mxu1 %v5777_v23 }
 0x517   :  { %6032 = vmatprep.mubr.f32.mxu1 %v5780_v27 }
 0x51a   :  { %6033 = vmatmul.mubr.f32.gmra.mrb[30].mxu1 %v5779_v6 }
 0x571   :  { %v5879_v37 = vpop.f32.mrb[224].mxu1 }
 0x572   :  { %6039 = vst.msk [vmem:[%s10735_s8] sm:$0xff] %vm6038_vm2, %v5879_v37  ;;  %v5881_v35 = vpop.f32.mrb[225].mxu1 }
 0x575   :  { %v5884_v1 = vpop.f32.mrb[226].mxu1 }
 0x576   :  { %6040 = vst.msk [vmem:[%s10735_s8 + $0x8] sm:$0xff] %vm6038_vm2, %v5884_v1  ;;  %v5886_v49 = vpop.f32.mrb[227].mxu1 }
 0x579   :  { %v5889_v56 = vpop.f32.mrb[228].mxu1 }
 0x57a   :  { %6041 = vst.msk [vmem:[%s10735_s8 + $0x10] sm:$0xff] %vm6038_vm2, %v5889_v56  ;;  %v5891_v7 = vpop.f32.mrb[229].mxu1 }
 0x57d   :  { %v5894_v63 = vpop.f32.mrb[230].mxu1 }
 0x57e   :  { %6042 = vst.msk [vmem:[%s10735_s8 + $0x18] sm:$0xff] %vm6038_vm2, %v5894_v63  ;;  %v5896_v8 = vpop.f32.mrb[231].mxu1 }
 0x581   :  { %v5899_v24 = vpop.f32.mrb[232].mxu1 }
 0x582   :  { %6043 = vst.msk [vmem:[%s10735_s8 + $0x20] sm:$0xff] %vm6038_vm2, %v5899_v24  ;;  %v5901_v5 = vpop.f32.mrb[233].mxu1 }
 0x585   :  { %v5904_v22 = vpop.f32.mrb[234].mxu1 }
 0x586   :  { %6044 = vst.msk [vmem:[%s10735_s8 + $0x28] sm:$0xff] %vm6038_vm2, %v5904_v22  ;;  %v5906_v12 = vpop.f32.mrb[235].mxu1 }
 0x589   :  { %v5909_v17 = vpop.f32.mrb[236].mxu1 }
 0x58a   :  { %6045 = vst.msk [vmem:[%s10735_s8 + $0x30] sm:$0xff] %vm6038_vm2, %v5909_v17  ;;  %v5911_v62 = vpop.f32.mrb[237].mxu1 }
 0x58d   :  { %v5914_v50 = vpop.f32.mrb[238].mxu1 }
 0x58e   :  { %6046 = vst.msk [vmem:[%s10735_s8 + $0x38] sm:$0xff] %vm6038_vm2, %v5914_v50  ;;  %v5916_v9 = vpop.f32.mrb[239].mxu1 }
 0x591   :  { %v5919_v16 = vpop.f32.mrb[240].mxu1 }
 0x592   :  { %6047 = vst.msk [vmem:[%s10735_s8 + $0x40] sm:$0xff] %vm6038_vm2, %v5919_v16  ;;  %v5921_v43 = vpop.f32.mrb[241].mxu1 }
 0x595   :  { %v5924_v18 = vpop.f32.mrb[242].mxu1 }
 0x596   :  { %6048 = vst.msk [vmem:[%s10735_s8 + $0x48] sm:$0xff] %vm6038_vm2, %v5924_v18  ;;  %v5926_v61 = vpop.f32.mrb[243].mxu1 }
 0x599   :  { %v5929_v19 = vpop.f32.mrb[244].mxu1 }
 0x59a   :  { %6049 = vst.msk [vmem:[%s10735_s8 + $0x50] sm:$0xff] %vm6038_vm2, %v5929_v19  ;;  %v5931_v55 = vpop.f32.mrb[245].mxu1 }
 0x59d   :  { %v5934_v52 = vpop.f32.mrb[246].mxu1 }
 0x59e   :  { %6050 = vst.msk [vmem:[%s10735_s8 + $0x58] sm:$0xff] %vm6038_vm2, %v5934_v52  ;;  %v5936_v59 = vpop.f32.mrb[247].mxu1 }
 0x5a1   :  { %v5939_v36 = vpop.f32.mrb[248].mxu1 }
 0x5a2   :  { %6051 = vst.msk [vmem:[%s10735_s8 + $0x60] sm:$0xff] %vm6038_vm2, %v5939_v36  ;;  %v5941_v13 = vpop.f32.mrb[249].mxu1 }
 0x5a5   :  { %v5944_v58 = vpop.f32.mrb[250].mxu1 }
 0x5a6   :  { %6052 = vst.msk [vmem:[%s10735_s8 + $0x68] sm:$0xff] %vm6038_vm2, %v5944_v58  ;;  %v5946_v29 = vpop.f32.mrb[251].mxu1 }
 0x5a9   :  { %v5949_v31 = vpop.f32.mrb[252].mxu1 }
 0x5aa   :  { %6053 = vst.msk [vmem:[%s10735_s8 + $0x70] sm:$0xff] %vm6038_vm2, %v5949_v31  ;;  %v5951_v38 = vpop.f32.mrb[253].mxu1 }
 0x5ad   :  { %v5954_v0 = vpop.f32.mrb[254].mxu1 }
 0x5ae   :  { %6054 = vst.msk [vmem:[%s10735_s8 + $0x78] sm:$0xff] %vm6038_vm2, %v5954_v0  ;;  %v5956_v40 = vpop.f32.mrb[255].mxu1 }
 0x5b1   :  { %v5959_v30 = vpop.f32.mrb[0].mxu1 }
 0x5b2   :  { %6055 = vst.msk [vmem:[%s10735_s8 + $0x80] sm:$0xff] %vm6038_vm2, %v5959_v30  ;;  %v5961_v39 = vpop.f32.mrb[1].mxu1 }
 0x5b5   :  { %v5964_v26 = vpop.f32.mrb[2].mxu1 }
 0x5b6   :  { %6056 = vst.msk [vmem:[%s10735_s8 + $0x88] sm:$0xff] %vm6038_vm2, %v5964_v26  ;;  %v5966_v3 = vpop.f32.mrb[3].mxu1 }
 0x5b9   :  { %v5969_v57 = vpop.f32.mrb[4].mxu1 }
 0x5ba   :  { %6057 = vst.msk [vmem:[%s10735_s8 + $0x90] sm:$0xff] %vm6038_vm2, %v5969_v57  ;;  %v5971_v10 = vpop.f32.mrb[5].mxu1 }
 0x5bd   :  { %v5974_v2 = vpop.f32.mrb[6].mxu1 }
 0x5be   :  { %6058 = vst.msk [vmem:[%s10735_s8 + $0x98] sm:$0xff] %vm6038_vm2, %v5974_v2  ;;  %v5976_v46 = vpop.f32.mrb[7].mxu1 }
 0x5c1   :  { %v5979_v51 = vpop.f32.mrb[8].mxu1 }
 0x5c2   :  { %6059 = vst.msk [vmem:[%s10735_s8 + $0xa0] sm:$0xff] %vm6038_vm2, %v5979_v51  ;;  %v5981_v60 = vpop.f32.mrb[9].mxu1 }
 0x5c5   :  { %v5984_v44 = vpop.f32.mrb[10].mxu1 }
 0x5c6   :  { %6060 = vst.msk [vmem:[%s10735_s8 + $0xa8] sm:$0xff] %vm6038_vm2, %v5984_v44  ;;  %v5986_v11 = vpop.f32.mrb[11].mxu1 }
 0x5c9   :  { %v5989_v42 = vpop.f32.mrb[12].mxu1 }
 0x5ca   :  { %6061 = vst.msk [vmem:[%s10735_s8 + $0xb0] sm:$0xff] %vm6038_vm2, %v5989_v42  ;;  %v5991_v32 = vpop.f32.mrb[13].mxu1 }
 0x5cd   :  { %v5994_v33 = vpop.f32.mrb[14].mxu1 }
 0x5ce   :  { %6062 = vst.msk [vmem:[%s10735_s8 + $0xb8] sm:$0xff] %vm6038_vm2, %v5994_v33  ;;  %v5996_v4 = vpop.f32.mrb[15].mxu1 }
 0x5d1   :  { %v5999_v20 = vpop.f32.mrb[16].mxu1 }
 0x5d2   :  { %6063 = vst.msk [vmem:[%s10735_s8 + $0xc0] sm:$0xff] %vm6038_vm2, %v5999_v20  ;;  %v6001_v45 = vpop.f32.mrb[17].mxu1 }
 0x5d5   :  { %v6004_v41 = vpop.f32.mrb[18].mxu1 }
 0x5d6   :  { %6064 = vst.msk [vmem:[%s10735_s8 + $0xc8] sm:$0xff] %vm6038_vm2, %v6004_v41  ;;  %v6006_v28 = vpop.f32.mrb[19].mxu1 }
 0x5d9   :  { %v6009_v34 = vpop.f32.mrb[20].mxu1 }
 0x5da   :  { %6065 = vst.msk [vmem:[%s10735_s8 + $0xd0] sm:$0xff] %vm6038_vm2, %v6009_v34  ;;  %v6011_v48 = vpop.f32.mrb[21].mxu1 }
 0x5dd   :  { %v6014_v14 = vpop.f32.mrb[22].mxu1 }
 0x5de   :  { %6066 = vst.msk [vmem:[%s10735_s8 + $0xd8] sm:$0xff] %vm6038_vm2, %v6014_v14  ;;  %v6016_v47 = vpop.f32.mrb[23].mxu1 }
 0x5e1   :  { %v6019_v53 = vpop.f32.mrb[24].mxu1 }
 0x5e2   :  { %6067 = vst.msk [vmem:[%s10735_s8 + $0xe0] sm:$0xff] %vm6038_vm2, %v6019_v53  ;;  %v6021_v15 = vpop.f32.mrb[25].mxu1 }
 0x5e5   :  { %v6024_v54 = vpop.f32.mrb[26].mxu1 }
 0x5e6   :  { %6068 = vst.msk [vmem:[%s10735_s8 + $0xe8] sm:$0xff] %vm6038_vm2, %v6024_v54  ;;  %v6026_v21 = vpop.f32.mrb[27].mxu1 }
 0x5e9   :  { %v6029_v23 = vpop.f32.mrb[28].mxu1 }
 0x5ea   :  { %6069 = vst.msk [vmem:[%s10735_s8 + $0xf0] sm:$0xff] %vm6038_vm2, %v6029_v23  ;;  %v6031_v25 = vpop.f32.mrb[29].mxu1 }
 0x5ed   :  { %v6034_v27 = vpop.f32.mrb[30].mxu1 }
 0x5ee   :  { %6070 = vst.msk [vmem:[%s10735_s8 + $0xf8] sm:$0xff] %vm6038_vm2, %v6034_v27  ;;  %v6036_v6 = vpop.f32.mrb[31].mxu1 }

</bundles_post_ra>
